<compile_context>
chip_gen: v5e
topology: v5e:2x2
jax: 0.10.0
libtpu: 0.0.40
codegen_flags: <defaults>
</compile_context>

<pallas_src>
import functools

import jax
import jax.numpy as jnp
from jax import lax
from jax.experimental import pallas as pl
from jax.experimental.pallas import tpu as pltpu

# Full-f32 matmuls on the XLA side (hoisted projections + reference) so they agree
# with the Pallas MXU matmuls to tight tolerance.
jax.config.update("jax_default_matmul_precision", "highest")


def _vmem_limit_bytes(arrays, extra_bytes=0):
    total = sum(int(a.size) * a.dtype.itemsize for a in arrays) + int(extra_bytes)
    return int(min(100 * 2**20, max(32 * 2**20, 2 * total)))


# -----------------------------------------------------------------------------
# Pallas kernel 1: fused bidirectional encoder LSTM recurrence (one call/layer).
# Inputs are the precomputed input projections; only h @ W_hh + elementwise runs
# serially in-kernel, with both directions interleaved so their independent
# matmuls hide each other's latency.
# TODO(synk): on v7x the two directions could be split across the two TensorCores
# with a size-2 "parallel" grid axis instead of being interleaved on one core.
# -----------------------------------------------------------------------------
def _make_enc_layer_kernel(T, hid):
    def kernel(gf_ref, gb_ref, whhf_ref, whhb_ref,
               outf_ref, outb_ref, hN_ref, cN_ref):
        B = gf_ref.shape[1]
        whhf = whhf_ref[...]
        whhb = whhb_ref[...]

        def cell(gates, c):
            # TODO(synk): gate slices are not 128-lane aligned for small `hid`;
            # pad hid to a multiple of 128 for production sizes.
            i = jax.nn.sigmoid(gates[:, 0 * hid:1 * hid])
            f = jax.nn.sigmoid(gates[:, 1 * hid:2 * hid])
            g = jnp.tanh(gates[:, 2 * hid:3 * hid])
            o = jax.nn.sigmoid(gates[:, 3 * hid:4 * hid])
            c_new = f * c + i * g
            return o * jnp.tanh(c_new), c_new

        def step(t, carry):
            hf, cf, hb, cb = carry
            tb = T - 1 - t
            gates_f = gf_ref[t] + jnp.dot(hf, whhf, preferred_element_type=jnp.float32)
            hf, cf = cell(gates_f, cf)
            outf_ref[t] = hf
            gates_b = gb_ref[tb] + jnp.dot(hb, whhb, preferred_element_type=jnp.float32)
            hb, cb = cell(gates_b, cb)
            outb_ref[tb] = hb
            return hf, cf, hb, cb

        z = jnp.zeros((B, hid), jnp.float32)
        hf, cf, hb, cb = lax.fori_loop(0, T, step, (z, z, z, z))
        # Final (h, c): fwd state after x[T-1], bwd state after x[0] == PyTorch h_n/c_n.
        hN_ref[0] = hf
        hN_ref[1] = hb
        cN_ref[0] = cf
        cN_ref[1] = cb

    return kernel


def encoder_layer(gates_f, gates_b, whh_f, whh_b, *, hid):
    """gates_*: (T, B, 4*hid) precomputed input projections (x @ W_ih + b).
    Returns (out_fwd (T,B,hid), out_bwd (T,B,hid), h_final (2,B,hid), c_final (2,B,hid))."""
    T, B, _ = gates_f.shape
    out_shape = (
        jax.ShapeDtypeStruct((T, B, hid), jnp.float32),
        jax.ShapeDtypeStruct((T, B, hid), jnp.float32),
        jax.ShapeDtypeStruct((2, B, hid), jnp.float32),
        jax.ShapeDtypeStruct((2, B, hid), jnp.float32),
    )
    vmem = _vmem_limit_bytes([gates_f, gates_b, whh_f, whh_b],
                             extra_bytes=4 * (2 * T * B * hid + 4 * B * hid))
    return pl.pallas_call(
        _make_enc_layer_kernel(T, hid),
        out_shape=out_shape,
        compiler_params=pltpu.CompilerParams(vmem_limit_bytes=vmem),
    )(gates_f, gates_b, whh_f, whh_b)


# -----------------------------------------------------------------------------
# Pallas kernel 2: fused decoder (all decode steps, one call, in-kernel fori_loop).
#   Per step: stacked LSTM layers -> attention (linin, MXU scores, softmax,
#   MXU context, linout+tanh).  Greedy path additionally does the gen matmul,
#   first-argmax and embedding lookup in-kernel.
# -----------------------------------------------------------------------------
def _make_dec_kernel(layers, B, hsz, vsz, outp, start, greedy):
    def kernel(*refs):
        it = iter(refs)
        if greedy:
            emb_ref = next(it)        # (vsz, hsz) decoder embedding table
            genw_ref = next(it)       # (hsz, vsz)
            genb_ref = next(it)       # (1, vsz)
            wih0d_ref = next(it)      # (hsz, 4*hsz)  dec layer 0, demb half of W_ih
            b0_ref = next(it)         # (1, 4*hsz)
        else:
            g0in_ref = next(it)       # (outp, B, 4*hsz): demb @ W_ih_demb + b, precomputed
        enc_ref = next(it)            # (B, T, hsz) resident
        h0_ref = next(it)             # (layers, B, hsz)
        c0_ref = next(it)
        wih0o_ref = next(it)          # (hsz, 4*hsz)  dec layer 0, op half of W_ih
        whh0_ref = next(it)
        layer_w = [(next(it), next(it), next(it)) for _ in range(1, layers)]
        lininw_ref = next(it)
        lininb_ref = next(it)
        wloc_ref = next(it)           # linout weight, context half (hsz, hsz)
        wlod_ref = next(it)           # linout weight, decout half  (hsz, hsz)
        lob_ref = next(it)
        out_ref = next(it)            # (outp, B, hsz)
        h_scr = next(it)              # (layers, B, hsz) VMEM scratch
        c_scr = next(it)

        h_scr[...] = h0_ref[...]
        c_scr[...] = c0_ref[...]

        if greedy:
            # loop-invariant column iota, hoisted out of the decode loop
            colf = lax.broadcasted_iota(jnp.int32, (B, vsz), 1).astype(jnp.float32)

        def cell(gates, c):
            i = jax.nn.sigmoid(gates[:, 0 * hsz:1 * hsz])
            f = jax.nn.sigmoid(gates[:, 1 * hsz:2 * hsz])
            g = jnp.tanh(gates[:, 2 * hsz:3 * hsz])
            o = jax.nn.sigmoid(gates[:, 3 * hsz:4 * hsz])
            c_new = f * c + i * g
            return o * jnp.tanh(c_new), c_new

        def step(i, op):
            if greedy:
                # prev = argmax(gen(op)); forced to `start` at i == 0.
                logits = (jnp.dot(op, genw_ref[...], preferred_element_type=jnp.float32)
                          + genb_ref[...])
                mx = jnp.max(logits, axis=-1, keepdims=True)
                # first-argmax via min winning index; f32 index encoding is exact
                # for vsz < 2**24.
                prevf = jnp.min(jnp.where(logits >= mx, colf, jnp.float32(vsz)),
                                axis=-1, keepdims=True)
                prevf = jnp.where(i == 0, jnp.float32(start), prevf)
                onehot = (colf == prevf).astype(jnp.float32)
                # TODO(synk): for realistic vocab sizes replace the one-hot matmul
                # lookup with a per-token DMA gather and stream gen_w/decemb over
                # vocab tiles instead of keeping them VMEM-resident.
                demb = jnp.dot(onehot, emb_ref[...], preferred_element_type=jnp.float32)
                g0_in = (jnp.dot(demb, wih0d_ref[...], preferred_element_type=jnp.float32)
                         + b0_ref[...])
            else:
                g0_in = g0in_ref[i]

            # decoder layer 0: input is cat(demb, op) -> split weights (no concat)
            gates0 = (g0_in
                      + jnp.dot(op, wih0o_ref[...], preferred_element_type=jnp.float32)
                      + jnp.dot(h_scr[0], whh0_ref[...], preferred_element_type=jnp.float32))
            h_new, c_new = cell(gates0, c_scr[0])
            h_scr[0] = h_new
            c_scr[0] = c_new
            x = h_new
            for l in range(1, layers):
                wih_ref, whh_ref, b_ref = layer_w[l - 1]
                gates = (jnp.dot(x, wih_ref[...], preferred_element_type=jnp.float32)
                         + jnp.dot(h_scr[l], whh_ref[...], preferred_element_type=jnp.float32)
                         + b_ref[...])
                h_new, c_new = cell(gates, c_scr[l])
                h_scr[l] = h_new
                c_scr[l] = c_new
                x = h_new
            decout = x                                                      # (B, hsz)

            # attention over source positions
            enc = enc_ref[...]                                              # (B, T, hsz)
            q = (jnp.dot(decout, lininw_ref[...], preferred_element_type=jnp.float32)
                 + lininb_ref[...])                                         # (B, hsz)
            scores = jnp.einsum('bqd,bkd->bqk', q[:, None, :], enc,
                                preferred_element_type=jnp.float32)         # (B, 1, T)
            scores = scores - jnp.max(scores, axis=-1, keepdims=True)
            e = jnp.exp(scores)
            w = e / jnp.sum(e, axis=-1, keepdims=True)
            cc = jnp.einsum('bqk,bkd->bqd', w, enc,
                            preferred_element_type=jnp.float32)[:, 0, :]    # (B, hsz)

            op_new = jnp.tanh(
                jnp.dot(cc, wloc_ref[...], preferred_element_type=jnp.float32)
                + jnp.dot(decout, wlod_ref[...], preferred_element_type=jnp.float32)
                + lob_ref[...])
            out_ref[i] = op_new
            return op_new

        lax.fori_loop(0, outp, step, jnp.zeros((B, hsz), jnp.float32))

    return kernel


def decoder_forward(params, enc_bth, h0, c0, *, layers, hsz, vsz, outp, start,
                    out_tokens=None):
    B = enc_bth.shape[0]
    greedy = out_tokens is None

    wih0 = params['dec_0_wih']                        # (2*hsz, 4*hsz): rows = [demb; op]
    wih0d, wih0o = wih0[:hsz], wih0[hsz:]
    wlo = params['linout_w']                          # (2*hsz, hsz): rows = [cc; decout]
    wloc, wlod = wlo[:hsz], wlo[hsz:]

    args = []
    if greedy:
        args += [params['decemb'], params['gen_w'], params['gen_b'],
                 wih0d, params['dec_0_b']]
    else:
        # teacher forcing: prev token at step 0 is `start`, else out[:, i]
        tokens = jnp.concatenate(
            [jnp.full((B, 1), start, dtype=out_tokens.dtype), out_tokens[:, 1:]], axis=1)
        demb_seq = jnp.transpose(jnp.take(params['decemb'], tokens, axis=0),
                                 (1, 0, 2))           # (outp, B, hsz)
        # hoisted input projection for all decode steps: one big MXU matmul
        g0in = (demb_seq.reshape(outp * B, hsz) @ wih0d
                + params['dec_0_b']).reshape(outp, B, 4 * hsz)
        args.append(g0in)

    args += [enc_bth, h0, c0, wih0o, params['dec_0_whh']]
    for l in range(1, layers):
        args += [params[f'dec_{l}_wih'], params[f'dec_{l}_whh'], params[f'dec_{l}_b']]
    args += [params['linin_w'], params['linin_b'], wloc, wlod, params['linout_b']]

    vmem = _vmem_limit_bytes(args,
                             extra_bytes=4 * (outp * B * hsz + 2 * layers * B * hsz))
    ops = pl.pallas_call(
        _make_dec_kernel(layers, B, hsz, vsz, outp, start, greedy),
        out_shape=jax.ShapeDtypeStruct((outp, B, hsz), jnp.float32),
        scratch_shapes=[pltpu.VMEM((layers, B, hsz), jnp.float32),
                        pltpu.VMEM((layers, B, hsz), jnp.float32)],
        compiler_params=pltpu.CompilerParams(vmem_limit_bytes=vmem),
    )(*args)
    return jnp.transpose(ops, (1, 0, 2))              # (B, outp, hsz)


# -----------------------------------------------------------------------------
# Parameters + full forward pass
# -----------------------------------------------------------------------------
def init_params(key, *, hsz, vsz, layers, in_dim=300):
    hid = hsz // 2
    keys = iter(jax.random.split(key, 256))

    def uni(shape, k):
        return jax.random.uniform(next(keys), shape, jnp.float32, -k, k)

    p = {}
    ke = 1.0 / float(jnp.sqrt(hid))
    for l in range(layers):
        in_l = in_dim if l == 0 else hsz
        for d in ('fwd', 'bwd'):
            p[f'enc_{l}_{d}_wih'] = uni((in_l, 4 * hid), ke)
            p[f'enc_{l}_{d}_whh'] = uni((hid, 4 * hid), ke)
            p[f'enc_{l}_{d}_b'] = uni((1, 4 * hid), ke) + uni((1, 4 * hid), ke)
    emb = jax.random.normal(next(keys), (vsz, hsz), jnp.float32)
    p['decemb'] = emb.at[0].set(0.0)                  # padding_idx=0
    kd = 1.0 / float(jnp.sqrt(hsz))
    for l in range(layers):
        in_l = 2 * hsz if l == 0 else hsz
        p[f'dec_{l}_wih'] = uni((in_l, 4 * hsz), kd)
        p[f'dec_{l}_whh'] = uni((hsz, 4 * hsz), kd)
        p[f'dec_{l}_b'] = uni((1, 4 * hsz), kd) + uni((1, 4 * hsz), kd)
    p['gen_w'] = uni((hsz, vsz), kd)
    p['gen_b'] = uni((1, vsz), kd)
    p['linin_w'] = uni((hsz, hsz), kd)
    p['linin_b'] = uni((1, hsz), kd)
    klo = 1.0 / float(jnp.sqrt(2 * hsz))
    p['linout_w'] = uni((2 * hsz, hsz), klo)
    p['linout_b'] = uni((1, hsz), klo)
    return p


def model_forward(params, inp, out_tokens, *, hsz, vsz, layers, maxlen, start):
    """Pallas-accelerated forward. out_tokens=None -> greedy (gen+argmax) path."""
    B, T, _ = inp.shape
    hid = hsz // 2

    # ---- bidirectional encoder: hoisted input projections + one kernel/layer ----
    x = jnp.transpose(inp, (1, 0, 2))                 # (T, B, in_dim)
    outf = outb = None
    h_list, c_list = [], []
    for l in range(layers):
        wf, bf = params[f'enc_{l}_fwd_wih'], params[f'enc_{l}_fwd_b']
        wb, bb = params[f'enc_{l}_bwd_wih'], params[f'enc_{l}_bwd_b']
        if l == 0:
            xin = x.reshape(T * B, -1)
            gf = (xin @ wf + bf).reshape(T, B, 4 * hid)
            gb = (xin @ wb + bb).reshape(T, B, 4 * hid)
        else:
            # split W_ih rows instead of concatenating (outf, outb)
            f2 = outf.reshape(T * B, hid)
            b2 = outb.reshape(T * B, hid)
            gf = (f2 @ wf[:hid] + b2 @ wf[hid:] + bf).reshape(T, B, 4 * hid)
            gb = (f2 @ wb[:hid] + b2 @ wb[hid:] + bb).reshape(T, B, 4 * hid)
        outf, outb, hN, cN = encoder_layer(
            gf, gb, params[f'enc_{l}_fwd_whh'], params[f'enc_{l}_bwd_whh'], hid=hid)
        h_list.append(jnp.concatenate([hN[0], hN[1]], axis=-1))
        c_list.append(jnp.concatenate([cN[0], cN[1]], axis=-1))

    enc = jnp.transpose(jnp.concatenate([outf, outb], axis=-1), (1, 0, 2))  # (B,T,hsz)
    h0 = jnp.stack(h_list, axis=0)                    # (layers, B, hsz)
    c0 = jnp.stack(c_list, axis=0)

    # ---- fused decoder (all steps, one kernel) ----
    outp = maxlen if out_tokens is None else out_tokens.shape[1]
    return decoder_forward(params, enc, h0, c0, layers=layers, hsz=hsz, vsz=vsz,
                           outp=outp, start=start, out_tokens=out_tokens)


# -----------------------------------------------------------------------------
# Pure-JAX reference (mirrors the PyTorch module) for correctness checking
# -----------------------------------------------------------------------------
def _ref_lstm_cell(x, h, c, wih, whh, b):
    hid = h.shape[-1]
    gates = x @ wih + h @ whh + b
    i = jax.nn.sigmoid(gates[:, :hid])
    f = jax.nn.sigmoid(gates[:, hid:2 * hid])
    g = jnp.tanh(gates[:, 2 * hid:3 * hid])
    o = jax.nn.sigmoid(gates[:, 3 * hid:])
    c_new = f * c + i * g
    return o * jnp.tanh(c_new), c_new


def ref_forward(params, inp, out_tokens, *, hsz, vsz, layers, maxlen, start):
    B, T, _ = inp.shape
    hid = hsz // 2
    x = jnp.transpose(inp, (1, 0, 2))
    hs, cs = [], []
    for l in range(layers):
        def run(wih, whh, b, reverse, xs):
            def step(carry, x_t):
                h, c = carry
                h, c = _ref_lstm_cell(x_t, h, c, wih, whh, b)
                return (h, c), h
            init = (jnp.zeros((B, hid), jnp.float32), jnp.zeros((B, hid), jnp.float32))
            (h, c), outs = lax.scan(step, init, xs, reverse=reverse)
            return outs, h, c
        fwd, hf, cf = run(params[f'enc_{l}_fwd_wih'], params[f'enc_{l}_fwd_whh'],
                          params[f'enc_{l}_fwd_b'], False, x)
        bwd, hb, cb = run(params[f'enc_{l}_bwd_wih'], params[f'enc_{l}_bwd_whh'],
                          params[f'enc_{l}_bwd_b'], True, x)
        x = jnp.concatenate([fwd, bwd], axis=-1)
        hs += [hf, hb]
        cs += [cf, cb]
    enc = jnp.transpose(x, (1, 0, 2))
    h_list = [jnp.concatenate([hs[2 * l], hs[2 * l + 1]], -1) for l in range(layers)]
    c_list = [jnp.concatenate([cs[2 * l], cs[2 * l + 1]], -1) for l in range(layers)]

    op = jnp.zeros((B, hsz), jnp.float32)
    outputs = []
    outp = maxlen if out_tokens is None else out_tokens.shape[1]
    for i in range(outp):
        if i == 0:
            prev = jnp.full((B,), start, dtype=jnp.int32)
        elif out_tokens is None:
            logits = op @ params['gen_w'] + params['gen_b']
            prev = jnp.argmax(logits, axis=-1)
        else:
            prev = out_tokens[:, i]
        demb = jnp.take(params['decemb'], prev, axis=0)
        layer_in = jnp.concatenate([demb, op], axis=1)
        for l in range(layers):
            h_list[l], c_list[l] = _ref_lstm_cell(layer_in, h_list[l], c_list[l],
                                                  params[f'dec_{l}_wih'],
                                                  params[f'dec_{l}_whh'],
                                                  params[f'dec_{l}_b'])
            layer_in = h_list[l]
        decout = layer_in
        q = decout @ params['linin_w'] + params['linin_b']
        scores = jnp.einsum('btd,bd->bt', enc, q)
        w = jax.nn.softmax(scores, axis=-1)
        cc = jnp.einsum('bt,btd->bd', w, enc)
        op = jnp.tanh(jnp.concatenate([cc, decout], axis=1) @ params['linout_w']
                      + params['linout_b'])
        outputs.append(op[:, None, :])
    return jnp.concatenate(outputs, axis=1)


if __name__ == "__main__":
    # B=8 keeps the f32 sublane dimension full (the biggest utilization lever).
    B, T_SRC, IN_DIM = 8, 8, 300
    HSZ, VSZ, LAYERS = 32, 50, 2
    OUT_LEN, MAXLEN, START = 5, 5, 1

    key = jax.random.PRNGKey(0)
    kp, kx, ko = jax.random.split(key, 3)
    params = init_params(kp, hsz=HSZ, vsz=VSZ, layers=LAYERS, in_dim=IN_DIM)
    inp = jax.random.normal(kx, (B, T_SRC, IN_DIM), jnp.float32)
    out_tokens = jax.random.randint(ko, (B, OUT_LEN), 1, VSZ)

    kwargs = dict(hsz=HSZ, vsz=VSZ, layers=LAYERS, maxlen=MAXLEN, start=START)
    fwd = jax.jit(functools.partial(model_forward, **kwargs))
    ref = jax.jit(functools.partial(ref_forward, **kwargs))

    # teacher-forcing path (out provided): verify against the pure-JAX reference
    y = jax.block_until_ready(fwd(params, inp, out_tokens))
    y_ref = jax.block_until_ready(ref(params, inp, out_tokens))
    assert y.shape == (B, OUT_LEN, HSZ), y.shape
    assert bool(jnp.all(jnp.isfinite(y)))
    err = float(jnp.max(jnp.abs(y - y_ref)))
    assert jnp.allclose(y, y_ref, atol=1e-4, rtol=1e-4), err

    # greedy path (out=None): gen matmul + in-kernel argmax + embedding lookup
    y2 = jax.block_until_ready(fwd(params, inp, None))
    assert y2.shape == (B, MAXLEN, HSZ), y2.shape
    assert bool(jnp.all(jnp.isfinite(y2)))

    print("KERNEL_OK")
</pallas_src>

<mosaic_0001>
module attributes {stable_mosaic.version = 11 : i64} {
  func.func @kernel(%arg0: memref<8x8x64xf32, #tpu.memory_space<vmem>>, %arg1: memref<8x8x64xf32, #tpu.memory_space<vmem>>, %arg2: memref<16x64xf32, #tpu.memory_space<vmem>>, %arg3: memref<16x64xf32, #tpu.memory_space<vmem>>, %arg4: memref<8x8x16xf32, #tpu.memory_space<vmem>>, %arg5: memref<8x8x16xf32, #tpu.memory_space<vmem>>, %arg6: memref<2x8x16xf32, #tpu.memory_space<vmem>>, %arg7: memref<2x8x16xf32, #tpu.memory_space<vmem>>) attributes {dimension_semantics = [], scalar_prefetch = 0 : i64, scratch_operands = 0 : i64, tpu.core_type = #tpu.core_type<tc>} {
    %c0 = arith.constant 0 : index
    %c0_0 = arith.constant 0 : index
    %0 = vector.load %arg2[%c0, %c0_0] : memref<16x64xf32, #tpu.memory_space<vmem>>, vector<16x64xf32>
    %c0_1 = arith.constant 0 : index
    %c0_2 = arith.constant 0 : index
    %1 = vector.load %arg3[%c0_1, %c0_2] : memref<16x64xf32, #tpu.memory_space<vmem>>, vector<16x64xf32>
    %cst = arith.constant 0.000000e+00 : f32
    %2 = vector.broadcast %cst : f32 to vector<8x16xf32>
    %c0_i32 = arith.constant 0 : i32
    %c8_i32 = arith.constant 8 : i32
    %3 = arith.addi %c0_i32, %c8_i32 : i32
    %c1_i32 = arith.constant 1 : i32
    %4:4 = scf.for %arg8 = %c0_i32 to %3 step %c1_i32 iter_args(%arg9 = %2, %arg10 = %2, %arg11 = %2, %arg12 = %2) -> (vector<8x16xf32>, vector<8x16xf32>, vector<8x16xf32>, vector<8x16xf32>)  : i32 {
      %c7_i32 = arith.constant 7 : i32
      %17 = arith.subi %c7_i32, %arg8 : i32
      %18 = arith.index_cast %arg8 : i32 to index
      %c0_15 = arith.constant 0 : index
      %c0_16 = arith.constant 0 : index
      %19 = vector.load %arg0[%18, %c0_15, %c0_16] : memref<8x8x64xf32, #tpu.memory_space<vmem>>, vector<1x8x64xf32>
      %20 = vector.shape_cast %19 : vector<1x8x64xf32> to vector<8x64xf32>
      %cst_17 = arith.constant dense<0.000000e+00> : vector<8x64xf32>
      %21 = tpu.matmul %arg9, %0, %cst_17 {dimension_numbers = #tpu.dot_dimension_numbers<[1], [0], [0], [1], [0, 0, 1, 1], [], []>, precision = #tpu.contract_precision<fp32>} : vector<8x16xf32>, vector<16x64xf32>, vector<8x64xf32> -> vector<8x64xf32>
      %22 = arith.addf %20, %21 : vector<8x64xf32>
      %23 = vector.extract_strided_slice %22 {offsets = [0, 0], sizes = [8, 16], strides = [1, 1]} : vector<8x64xf32> to vector<8x16xf32>
      %24 = arith.negf %23 : vector<8x16xf32>
      %25 = math.exp %24 : vector<8x16xf32>
      %cst_18 = arith.constant 1.000000e+00 : f32
      %26 = vector.broadcast %cst_18 : f32 to vector<8x16xf32>
      %27 = arith.addf %26, %25 : vector<8x16xf32>
      %28 = arith.divf %26, %27 : vector<8x16xf32>
      %29 = vector.extract_strided_slice %22 {offsets = [0, 16], sizes = [8, 16], strides = [1, 1]} : vector<8x64xf32> to vector<8x16xf32>
      %30 = arith.negf %29 : vector<8x16xf32>
      %31 = math.exp %30 : vector<8x16xf32>
      %cst_19 = arith.constant 1.000000e+00 : f32
      %32 = vector.broadcast %cst_19 : f32 to vector<8x16xf32>
      %33 = arith.addf %32, %31 : vector<8x16xf32>
      %34 = arith.divf %32, %33 : vector<8x16xf32>
      %35 = vector.extract_strided_slice %22 {offsets = [0, 32], sizes = [8, 16], strides = [1, 1]} : vector<8x64xf32> to vector<8x16xf32>
      %36 = math.tanh %35 : vector<8x16xf32>
      %37 = vector.extract_strided_slice %22 {offsets = [0, 48], sizes = [8, 16], strides = [1, 1]} : vector<8x64xf32> to vector<8x16xf32>
      %38 = arith.negf %37 : vector<8x16xf32>
      %39 = math.exp %38 : vector<8x16xf32>
      %cst_20 = arith.constant 1.000000e+00 : f32
      %40 = vector.broadcast %cst_20 : f32 to vector<8x16xf32>
      %41 = arith.addf %40, %39 : vector<8x16xf32>
      %42 = arith.divf %40, %41 : vector<8x16xf32>
      %43 = arith.mulf %34, %arg10 : vector<8x16xf32>
      %44 = arith.mulf %28, %36 : vector<8x16xf32>
      %45 = arith.addf %43, %44 : vector<8x16xf32>
      %46 = math.tanh %45 : vector<8x16xf32>
      %47 = arith.mulf %42, %46 : vector<8x16xf32>
      %48 = arith.index_cast %arg8 : i32 to index
      %c0_21 = arith.constant 0 : index
      %c0_22 = arith.constant 0 : index
      %49 = vector.load %arg4[%48, %c0_21, %c0_22] : memref<8x8x16xf32, #tpu.memory_space<vmem>>, vector<1x8x16xf32>
      %50 = vector.shape_cast %49 : vector<1x8x16xf32> to vector<8x16xf32>
      %51 = vector.shape_cast %47 : vector<8x16xf32> to vector<1x8x16xf32>
      tpu.vector_store %arg4[%48, %c0_21, %c0_22], %51 {strides = array<i32>} : memref<8x8x16xf32, #tpu.memory_space<vmem>>, vector<1x8x16xf32>,
      %52 = arith.index_cast %17 : i32 to index
      %c0_23 = arith.constant 0 : index
      %c0_24 = arith.constant 0 : index
      %53 = vector.load %arg1[%52, %c0_23, %c0_24] : memref<8x8x64xf32, #tpu.memory_space<vmem>>, vector<1x8x64xf32>
      %54 = vector.shape_cast %53 : vector<1x8x64xf32> to vector<8x64xf32>
      %cst_25 = arith.constant dense<0.000000e+00> : vector<8x64xf32>
      %55 = tpu.matmul %arg11, %1, %cst_25 {dimension_numbers = #tpu.dot_dimension_numbers<[1], [0], [0], [1], [0, 0, 1, 1], [], []>, precision = #tpu.contract_precision<fp32>} : vector<8x16xf32>, vector<16x64xf32>, vector<8x64xf32> -> vector<8x64xf32>
      %56 = arith.addf %54, %55 : vector<8x64xf32>
      %57 = vector.extract_strided_slice %56 {offsets = [0, 0], sizes = [8, 16], strides = [1, 1]} : vector<8x64xf32> to vector<8x16xf32>
      %58 = arith.negf %57 : vector<8x16xf32>
      %59 = math.exp %58 : vector<8x16xf32>
      %cst_26 = arith.constant 1.000000e+00 : f32
      %60 = vector.broadcast %cst_26 : f32 to vector<8x16xf32>
      %61 = arith.addf %60, %59 : vector<8x16xf32>
      %62 = arith.divf %60, %61 : vector<8x16xf32>
      %63 = vector.extract_strided_slice %56 {offsets = [0, 16], sizes = [8, 16], strides = [1, 1]} : vector<8x64xf32> to vector<8x16xf32>
      %64 = arith.negf %63 : vector<8x16xf32>
      %65 = math.exp %64 : vector<8x16xf32>
      %cst_27 = arith.constant 1.000000e+00 : f32
      %66 = vector.broadcast %cst_27 : f32 to vector<8x16xf32>
      %67 = arith.addf %66, %65 : vector<8x16xf32>
      %68 = arith.divf %66, %67 : vector<8x16xf32>
      %69 = vector.extract_strided_slice %56 {offsets = [0, 32], sizes = [8, 16], strides = [1, 1]} : vector<8x64xf32> to vector<8x16xf32>
      %70 = math.tanh %69 : vector<8x16xf32>
      %71 = vector.extract_strided_slice %56 {offsets = [0, 48], sizes = [8, 16], strides = [1, 1]} : vector<8x64xf32> to vector<8x16xf32>
      %72 = arith.negf %71 : vector<8x16xf32>
      %73 = math.exp %72 : vector<8x16xf32>
      %cst_28 = arith.constant 1.000000e+00 : f32
      %74 = vector.broadcast %cst_28 : f32 to vector<8x16xf32>
      %75 = arith.addf %74, %73 : vector<8x16xf32>
      %76 = arith.divf %74, %75 : vector<8x16xf32>
      %77 = arith.mulf %68, %arg12 : vector<8x16xf32>
      %78 = arith.mulf %62, %70 : vector<8x16xf32>
      %79 = arith.addf %77, %78 : vector<8x16xf32>
      %80 = math.tanh %79 : vector<8x16xf32>
      %81 = arith.mulf %76, %80 : vector<8x16xf32>
      %82 = arith.index_cast %17 : i32 to index
      %c0_29 = arith.constant 0 : index
      %c0_30 = arith.constant 0 : index
      %83 = vector.load %arg5[%82, %c0_29, %c0_30] : memref<8x8x16xf32, #tpu.memory_space<vmem>>, vector<1x8x16xf32>
      %84 = vector.shape_cast %83 : vector<1x8x16xf32> to vector<8x16xf32>
      %85 = vector.shape_cast %81 : vector<8x16xf32> to vector<1x8x16xf32>
      tpu.vector_store %arg5[%82, %c0_29, %c0_30], %85 {strides = array<i32>} : memref<8x8x16xf32, #tpu.memory_space<vmem>>, vector<1x8x16xf32>,
      scf.yield %47, %45, %81, %79 : vector<8x16xf32>, vector<8x16xf32>, vector<8x16xf32>, vector<8x16xf32>
    }
    %c8_i32_3 = arith.constant 8 : i32
    %c0_4 = arith.constant 0 : index
    %c0_5 = arith.constant 0 : index
    %c0_6 = arith.constant 0 : index
    %5 = vector.load %arg6[%c0_4, %c0_5, %c0_6] : memref<2x8x16xf32, #tpu.memory_space<vmem>>, vector<1x8x16xf32>
    %6 = vector.shape_cast %5 : vector<1x8x16xf32> to vector<8x16xf32>
    %7 = vector.shape_cast %4#0 : vector<8x16xf32> to vector<1x8x16xf32>
    tpu.vector_store %arg6[%c0_4, %c0_5, %c0_6], %7 {strides = array<i32>} : memref<2x8x16xf32, #tpu.memory_space<vmem>>, vector<1x8x16xf32>,
    %c1 = arith.constant 1 : index
    %c0_7 = arith.constant 0 : index
    %c0_8 = arith.constant 0 : index
    %8 = vector.load %arg6[%c1, %c0_7, %c0_8] : memref<2x8x16xf32, #tpu.memory_space<vmem>>, vector<1x8x16xf32>
    %9 = vector.shape_cast %8 : vector<1x8x16xf32> to vector<8x16xf32>
    %10 = vector.shape_cast %4#2 : vector<8x16xf32> to vector<1x8x16xf32>
    tpu.vector_store %arg6[%c1, %c0_7, %c0_8], %10 {strides = array<i32>} : memref<2x8x16xf32, #tpu.memory_space<vmem>>, vector<1x8x16xf32>,
    %c0_9 = arith.constant 0 : index
    %c0_10 = arith.constant 0 : index
    %c0_11 = arith.constant 0 : index
    %11 = vector.load %arg7[%c0_9, %c0_10, %c0_11] : memref<2x8x16xf32, #tpu.memory_space<vmem>>, vector<1x8x16xf32>
    %12 = vector.shape_cast %11 : vector<1x8x16xf32> to vector<8x16xf32>
    %13 = vector.shape_cast %4#1 : vector<8x16xf32> to vector<1x8x16xf32>
    tpu.vector_store %arg7[%c0_9, %c0_10, %c0_11], %13 {strides = array<i32>} : memref<2x8x16xf32, #tpu.memory_space<vmem>>, vector<1x8x16xf32>,
    %c1_12 = arith.constant 1 : index
    %c0_13 = arith.constant 0 : index
    %c0_14 = arith.constant 0 : index
    %14 = vector.load %arg7[%c1_12, %c0_13, %c0_14] : memref<2x8x16xf32, #tpu.memory_space<vmem>>, vector<1x8x16xf32>
    %15 = vector.shape_cast %14 : vector<1x8x16xf32> to vector<8x16xf32>
    %16 = vector.shape_cast %4#3 : vector<8x16xf32> to vector<1x8x16xf32>
    tpu.vector_store %arg7[%c1_12, %c0_13, %c0_14], %16 {strides = array<i32>} : memref<2x8x16xf32, #tpu.memory_space<vmem>>, vector<1x8x16xf32>,
    return
  }
}

module attributes {stable_mosaic.version = 11 : i64} {
  func.func @kernel(%arg0: memref<5x8x128xf32, #tpu.memory_space<vmem>>, %arg1: memref<8x8x32xf32, #tpu.memory_space<vmem>>, %arg2: memref<2x8x32xf32, #tpu.memory_space<vmem>>, %arg3: memref<2x8x32xf32, #tpu.memory_space<vmem>>, %arg4: memref<32x128xf32, #tpu.memory_space<vmem>>, %arg5: memref<32x128xf32, #tpu.memory_space<vmem>>, %arg6: memref<32x128xf32, #tpu.memory_space<vmem>>, %arg7: memref<32x128xf32, #tpu.memory_space<vmem>>, %arg8: memref<1x128xf32, #tpu.memory_space<vmem>>, %arg9: memref<32x32xf32, #tpu.memory_space<vmem>>, %arg10: memref<1x32xf32, #tpu.memory_space<vmem>>, %arg11: memref<32x32xf32, #tpu.memory_space<vmem>>, %arg12: memref<32x32xf32, #tpu.memory_space<vmem>>, %arg13: memref<1x32xf32, #tpu.memory_space<vmem>>, %arg14: memref<5x8x32xf32, #tpu.memory_space<vmem>>, %arg15: memref<2x8x32xf32, #tpu.memory_space<vmem>>, %arg16: memref<2x8x32xf32, #tpu.memory_space<vmem>>) attributes {dimension_semantics = [], scalar_prefetch = 0 : i64, scratch_operands = 2 : i64, tpu.core_type = #tpu.core_type<tc>} {
    %c0 = arith.constant 0 : index
    %c0_0 = arith.constant 0 : index
    %c0_1 = arith.constant 0 : index
    %0 = vector.load %arg2[%c0, %c0_0, %c0_1] : memref<2x8x32xf32, #tpu.memory_space<vmem>>, vector<2x8x32xf32>
    %c0_2 = arith.constant 0 : index
    %c0_3 = arith.constant 0 : index
    %c0_4 = arith.constant 0 : index
    %1 = vector.load %arg15[%c0_2, %c0_3, %c0_4] : memref<2x8x32xf32, #tpu.memory_space<vmem>>, vector<2x8x32xf32>
    tpu.vector_store %arg15[%c0_2, %c0_3, %c0_4], %0 {strides = array<i32>} : memref<2x8x32xf32, #tpu.memory_space<vmem>>, vector<2x8x32xf32>,
    %c0_5 = arith.constant 0 : index
    %c0_6 = arith.constant 0 : index
    %c0_7 = arith.constant 0 : index
    %2 = vector.load %arg3[%c0_5, %c0_6, %c0_7] : memref<2x8x32xf32, #tpu.memory_space<vmem>>, vector<2x8x32xf32>
    %c0_8 = arith.constant 0 : index
    %c0_9 = arith.constant 0 : index
    %c0_10 = arith.constant 0 : index
    %3 = vector.load %arg16[%c0_8, %c0_9, %c0_10] : memref<2x8x32xf32, #tpu.memory_space<vmem>>, vector<2x8x32xf32>
    tpu.vector_store %arg16[%c0_8, %c0_9, %c0_10], %2 {strides = array<i32>} : memref<2x8x32xf32, #tpu.memory_space<vmem>>, vector<2x8x32xf32>,
    %cst = arith.constant 0.000000e+00 : f32
    %4 = vector.broadcast %cst : f32 to vector<8x32xf32>
    %c0_i32 = arith.constant 0 : i32
    %c5_i32 = arith.constant 5 : i32
    %5 = arith.addi %c0_i32, %c5_i32 : i32
    %c1_i32 = arith.constant 1 : i32
    %6 = scf.for %arg17 = %c0_i32 to %5 step %c1_i32 iter_args(%arg18 = %4) -> (vector<8x32xf32>)  : i32 {
      %7 = arith.index_cast %arg17 : i32 to index
      %c0_12 = arith.constant 0 : index
      %c0_13 = arith.constant 0 : index
      %8 = vector.load %arg0[%7, %c0_12, %c0_13] : memref<5x8x128xf32, #tpu.memory_space<vmem>>, vector<1x8x128xf32>
      %9 = vector.shape_cast %8 : vector<1x8x128xf32> to vector<8x128xf32>
      %c0_14 = arith.constant 0 : index
      %c0_15 = arith.constant 0 : index
      %10 = vector.load %arg4[%c0_14, %c0_15] : memref<32x128xf32, #tpu.memory_space<vmem>>, vector<32x128xf32>
      %cst_16 = arith.constant dense<0.000000e+00> : vector<8x128xf32>
      %11 = tpu.matmul %arg18, %10, %cst_16 {dimension_numbers = #tpu.dot_dimension_numbers<[1], [0], [0], [1], [0, 0, 1, 1], [], []>, precision = #tpu.contract_precision<fp32>} : vector<8x32xf32>, vector<32x128xf32>, vector<8x128xf32> -> vector<8x128xf32>
      %12 = arith.addf %9, %11 : vector<8x128xf32>
      %c0_17 = arith.constant 0 : index
      %c0_18 = arith.constant 0 : index
      %c0_19 = arith.constant 0 : index
      %13 = vector.load %arg15[%c0_17, %c0_18, %c0_19] : memref<2x8x32xf32, #tpu.memory_space<vmem>>, vector<1x8x32xf32>
      %14 = vector.shape_cast %13 : vector<1x8x32xf32> to vector<8x32xf32>
      %c0_20 = arith.constant 0 : index
      %c0_21 = arith.constant 0 : index
      %15 = vector.load %arg5[%c0_20, %c0_21] : memref<32x128xf32, #tpu.memory_space<vmem>>, vector<32x128xf32>
      %cst_22 = arith.constant dense<0.000000e+00> : vector<8x128xf32>
      %16 = tpu.matmul %14, %15, %cst_22 {dimension_numbers = #tpu.dot_dimension_numbers<[1], [0], [0], [1], [0, 0, 1, 1], [], []>, precision = #tpu.contract_precision<fp32>} : vector<8x32xf32>, vector<32x128xf32>, vector<8x128xf32> -> vector<8x128xf32>
      %17 = arith.addf %12, %16 : vector<8x128xf32>
      %c0_23 = arith.constant 0 : index
      %c0_24 = arith.constant 0 : index
      %c0_25 = arith.constant 0 : index
      %18 = vector.load %arg16[%c0_23, %c0_24, %c0_25] : memref<2x8x32xf32, #tpu.memory_space<vmem>>, vector<1x8x32xf32>
      %19 = vector.shape_cast %18 : vector<1x8x32xf32> to vector<8x32xf32>
      %20 = vector.extract_strided_slice %17 {offsets = [0, 0], sizes = [8, 32], strides = [1, 1]} : vector<8x128xf32> to vector<8x32xf32>
      %21 = arith.negf %20 : vector<8x32xf32>
      %22 = math.exp %21 : vector<8x32xf32>
      %cst_26 = arith.constant 1.000000e+00 : f32
      %23 = vector.broadcast %cst_26 : f32 to vector<8x32xf32>
      %24 = arith.addf %23, %22 : vector<8x32xf32>
      %25 = arith.divf %23, %24 : vector<8x32xf32>
      %26 = vector.extract_strided_slice %17 {offsets = [0, 32], sizes = [8, 32], strides = [1, 1]} : vector<8x128xf32> to vector<8x32xf32>
      %27 = arith.negf %26 : vector<8x32xf32>
      %28 = math.exp %27 : vector<8x32xf32>
      %cst_27 = arith.constant 1.000000e+00 : f32
      %29 = vector.broadcast %cst_27 : f32 to vector<8x32xf32>
      %30 = arith.addf %29, %28 : vector<8x32xf32>
      %31 = arith.divf %29, %30 : vector<8x32xf32>
      %32 = vector.extract_strided_slice %17 {offsets = [0, 64], sizes = [8, 32], strides = [1, 1]} : vector<8x128xf32> to vector<8x32xf32>
      %33 = math.tanh %32 : vector<8x32xf32>
      %34 = vector.extract_strided_slice %17 {offsets = [0, 96], sizes = [8, 32], strides = [1, 1]} : vector<8x128xf32> to vector<8x32xf32>
      %35 = arith.negf %34 : vector<8x32xf32>
      %36 = math.exp %35 : vector<8x32xf32>
      %cst_28 = arith.constant 1.000000e+00 : f32
      %37 = vector.broadcast %cst_28 : f32 to vector<8x32xf32>
      %38 = arith.addf %37, %36 : vector<8x32xf32>
      %39 = arith.divf %37, %38 : vector<8x32xf32>
      %40 = arith.mulf %31, %19 : vector<8x32xf32>
      %41 = arith.mulf %25, %33 : vector<8x32xf32>
      %42 = arith.addf %40, %41 : vector<8x32xf32>
      %43 = math.tanh %42 : vector<8x32xf32>
      %44 = arith.mulf %39, %43 : vector<8x32xf32>
      %c0_29 = arith.constant 0 : index
      %c0_30 = arith.constant 0 : index
      %c0_31 = arith.constant 0 : index
      %45 = vector.load %arg15[%c0_29, %c0_30, %c0_31] : memref<2x8x32xf32, #tpu.memory_space<vmem>>, vector<1x8x32xf32>
      %46 = vector.shape_cast %45 : vector<1x8x32xf32> to vector<8x32xf32>
      %47 = vector.shape_cast %44 : vector<8x32xf32> to vector<1x8x32xf32>
      tpu.vector_store %arg15[%c0_29, %c0_30, %c0_31], %47 {strides = array<i32>} : memref<2x8x32xf32, #tpu.memory_space<vmem>>, vector<1x8x32xf32>,
      %c0_32 = arith.constant 0 : index
      %c0_33 = arith.constant 0 : index
      %c0_34 = arith.constant 0 : index
      %48 = vector.load %arg16[%c0_32, %c0_33, %c0_34] : memref<2x8x32xf32, #tpu.memory_space<vmem>>, vector<1x8x32xf32>
      %49 = vector.shape_cast %48 : vector<1x8x32xf32> to vector<8x32xf32>
      %50 = vector.shape_cast %42 : vector<8x32xf32> to vector<1x8x32xf32>
      tpu.vector_store %arg16[%c0_32, %c0_33, %c0_34], %50 {strides = array<i32>} : memref<2x8x32xf32, #tpu.memory_space<vmem>>, vector<1x8x32xf32>,
      %c0_35 = arith.constant 0 : index
      %c0_36 = arith.constant 0 : index
      %51 = vector.load %arg6[%c0_35, %c0_36] : memref<32x128xf32, #tpu.memory_space<vmem>>, vector<32x128xf32>
      %cst_37 = arith.constant dense<0.000000e+00> : vector<8x128xf32>
      %52 = tpu.matmul %44, %51, %cst_37 {dimension_numbers = #tpu.dot_dimension_numbers<[1], [0], [0], [1], [0, 0, 1, 1], [], []>, precision = #tpu.contract_precision<fp32>} : vector<8x32xf32>, vector<32x128xf32>, vector<8x128xf32> -> vector<8x128xf32>
      %c1 = arith.constant 1 : index
      %c0_38 = arith.constant 0 : index
      %c0_39 = arith.constant 0 : index
      %53 = vector.load %arg15[%c1, %c0_38, %c0_39] : memref<2x8x32xf32, #tpu.memory_space<vmem>>, vector<1x8x32xf32>
      %54 = vector.shape_cast %53 : vector<1x8x32xf32> to vector<8x32xf32>
      %c0_40 = arith.constant 0 : index
      %c0_41 = arith.constant 0 : index
      %55 = vector.load %arg7[%c0_40, %c0_41] : memref<32x128xf32, #tpu.memory_space<vmem>>, vector<32x128xf32>
      %cst_42 = arith.constant dense<0.000000e+00> : vector<8x128xf32>
      %56 = tpu.matmul %54, %55, %cst_42 {dimension_numbers = #tpu.dot_dimension_numbers<[1], [0], [0], [1], [0, 0, 1, 1], [], []>, precision = #tpu.contract_precision<fp32>} : vector<8x32xf32>, vector<32x128xf32>, vector<8x128xf32> -> vector<8x128xf32>
      %57 = arith.addf %52, %56 : vector<8x128xf32>
      %c0_43 = arith.constant 0 : index
      %c0_44 = arith.constant 0 : index
      %58 = vector.load %arg8[%c0_43, %c0_44] : memref<1x128xf32, #tpu.memory_space<vmem>>, vector<1x128xf32>
      %59 = vector.broadcast %58 : vector<1x128xf32> to vector<8x128xf32>
      %60 = arith.addf %57, %59 : vector<8x128xf32>
      %c1_45 = arith.constant 1 : index
      %c0_46 = arith.constant 0 : index
      %c0_47 = arith.constant 0 : index
      %61 = vector.load %arg16[%c1_45, %c0_46, %c0_47] : memref<2x8x32xf32, #tpu.memory_space<vmem>>, vector<1x8x32xf32>
      %62 = vector.shape_cast %61 : vector<1x8x32xf32> to vector<8x32xf32>
      %63 = vector.extract_strided_slice %60 {offsets = [0, 0], sizes = [8, 32], strides = [1, 1]} : vector<8x128xf32> to vector<8x32xf32>
      %64 = arith.negf %63 : vector<8x32xf32>
      %65 = math.exp %64 : vector<8x32xf32>
      %cst_48 = arith.constant 1.000000e+00 : f32
      %66 = vector.broadcast %cst_48 : f32 to vector<8x32xf32>
      %67 = arith.addf %66, %65 : vector<8x32xf32>
      %68 = arith.divf %66, %67 : vector<8x32xf32>
      %69 = vector.extract_strided_slice %60 {offsets = [0, 32], sizes = [8, 32], strides = [1, 1]} : vector<8x128xf32> to vector<8x32xf32>
      %70 = arith.negf %69 : vector<8x32xf32>
      %71 = math.exp %70 : vector<8x32xf32>
      %cst_49 = arith.constant 1.000000e+00 : f32
      %72 = vector.broadcast %cst_49 : f32 to vector<8x32xf32>
      %73 = arith.addf %72, %71 : vector<8x32xf32>
      %74 = arith.divf %72, %73 : vector<8x32xf32>
      %75 = vector.extract_strided_slice %60 {offsets = [0, 64], sizes = [8, 32], strides = [1, 1]} : vector<8x128xf32> to vector<8x32xf32>
      %76 = math.tanh %75 : vector<8x32xf32>
      %77 = vector.extract_strided_slice %60 {offsets = [0, 96], sizes = [8, 32], strides = [1, 1]} : vector<8x128xf32> to vector<8x32xf32>
      %78 = arith.negf %77 : vector<8x32xf32>
      %79 = math.exp %78 : vector<8x32xf32>
      %cst_50 = arith.constant 1.000000e+00 : f32
      %80 = vector.broadcast %cst_50 : f32 to vector<8x32xf32>
      %81 = arith.addf %80, %79 : vector<8x32xf32>
      %82 = arith.divf %80, %81 : vector<8x32xf32>
      %83 = arith.mulf %74, %62 : vector<8x32xf32>
      %84 = arith.mulf %68, %76 : vector<8x32xf32>
      %85 = arith.addf %83, %84 : vector<8x32xf32>
      %86 = math.tanh %85 : vector<8x32xf32>
      %87 = arith.mulf %82, %86 : vector<8x32xf32>
      %c1_51 = arith.constant 1 : index
      %c0_52 = arith.constant 0 : index
      %c0_53 = arith.constant 0 : index
      %88 = vector.load %arg15[%c1_51, %c0_52, %c0_53] : memref<2x8x32xf32, #tpu.memory_space<vmem>>, vector<1x8x32xf32>
      %89 = vector.shape_cast %88 : vector<1x8x32xf32> to vector<8x32xf32>
      %90 = vector.shape_cast %87 : vector<8x32xf32> to vector<1x8x32xf32>
      tpu.vector_store %arg15[%c1_51, %c0_52, %c0_53], %90 {strides = array<i32>} : memref<2x8x32xf32, #tpu.memory_space<vmem>>, vector<1x8x32xf32>,
      %c1_54 = arith.constant 1 : index
      %c0_55 = arith.constant 0 : index
      %c0_56 = arith.constant 0 : index
      %91 = vector.load %arg16[%c1_54, %c0_55, %c0_56] : memref<2x8x32xf32, #tpu.memory_space<vmem>>, vector<1x8x32xf32>
      %92 = vector.shape_cast %91 : vector<1x8x32xf32> to vector<8x32xf32>
      %93 = vector.shape_cast %85 : vector<8x32xf32> to vector<1x8x32xf32>
      tpu.vector_store %arg16[%c1_54, %c0_55, %c0_56], %93 {strides = array<i32>} : memref<2x8x32xf32, #tpu.memory_space<vmem>>, vector<1x8x32xf32>,
      %c0_57 = arith.constant 0 : index
      %c0_58 = arith.constant 0 : index
      %c0_59 = arith.constant 0 : index
      %94 = vector.load %arg1[%c0_57, %c0_58, %c0_59] : memref<8x8x32xf32, #tpu.memory_space<vmem>>, vector<8x8x32xf32>
      %c0_60 = arith.constant 0 : index
      %c0_61 = arith.constant 0 : index
      %95 = vector.load %arg9[%c0_60, %c0_61] : memref<32x32xf32, #tpu.memory_space<vmem>>, vector<32x32xf32>
      %cst_62 = arith.constant dense<0.000000e+00> : vector<8x32xf32>
      %96 = tpu.matmul %87, %95, %cst_62 {dimension_numbers = #tpu.dot_dimension_numbers<[1], [0], [0], [1], [0, 0, 1, 1], [], []>, precision = #tpu.contract_precision<fp32>} : vector<8x32xf32>, vector<32x32xf32>, vector<8x32xf32> -> vector<8x32xf32>
      %c0_63 = arith.constant 0 : index
      %c0_64 = arith.constant 0 : index
      %97 = vector.load %arg10[%c0_63, %c0_64] : memref<1x32xf32, #tpu.memory_space<vmem>>, vector<1x32xf32>
      %98 = vector.broadcast %97 : vector<1x32xf32> to vector<8x32xf32>
      %99 = arith.addf %96, %98 : vector<8x32xf32>
      %100 = vector.shape_cast %99 : vector<8x32xf32> to vector<8x1x32xf32>
      "tpu.trace_start"() <{level = 10 : i32, message = "bqd,bkd->bqk"}> : () -> ()
      %cst_65 = arith.constant dense<0.000000e+00> : vector<8x1x8xf32>
      %101 = tpu.matmul %100, %94, %cst_65 {dimension_numbers = #tpu.dot_dimension_numbers<[2], [2], [1], [1], [0, 0, 0, 1, 1, 1], [0], [0]>, precision = #tpu.contract_precision<fp32>} : vector<8x1x32xf32>, vector<8x8x32xf32>, vector<8x1x8xf32> -> vector<8x1x8xf32>
      "tpu.trace_stop"() : () -> ()
      %cst_66 = arith.constant dense<0xFF800000> : vector<8x1xf32>
      %102 = vector.multi_reduction <maximumf>, %101, %cst_66 [2] : vector<8x1x8xf32> to vector<8x1xf32>
      %103 = vector.shape_cast %102 : vector<8x1xf32> to vector<8x1x1xf32>
      %104 = vector.broadcast %103 : vector<8x1x1xf32> to vector<8x1x8xf32>
      %105 = arith.subf %101, %104 : vector<8x1x8xf32>
      %106 = math.exp %105 : vector<8x1x8xf32>
      %cst_67 = arith.constant dense<0.000000e+00> : vector<8x1xf32>
      %107 = vector.multi_reduction <add>, %106, %cst_67 [2] : vector<8x1x8xf32> to vector<8x1xf32>
      %108 = vector.shape_cast %107 : vector<8x1xf32> to vector<8x1x1xf32>
      %109 = vector.broadcast %108 : vector<8x1x1xf32> to vector<8x1x8xf32>
      %110 = arith.divf %106, %109 : vector<8x1x8xf32>
      "tpu.trace_start"() <{level = 10 : i32, message = "bqk,bkd->bqd"}> : () -> ()
      %cst_68 = arith.constant dense<0.000000e+00> : vector<8x1x32xf32>
      %111 = tpu.matmul %110, %94, %cst_68 {dimension_numbers = #tpu.dot_dimension_numbers<[2], [1], [1], [2], [0, 0, 0, 1, 1, 2], [0], [0]>, precision = #tpu.contract_precision<fp32>} : vector<8x1x8xf32>, vector<8x8x32xf32>, vector<8x1x32xf32> -> vector<8x1x32xf32>
      "tpu.trace_stop"() : () -> ()
      %112 = vector.shape_cast %111 : vector<8x1x32xf32> to vector<8x32xf32>
      %c0_69 = arith.constant 0 : index
      %c0_70 = arith.constant 0 : index
      %113 = vector.load %arg11[%c0_69, %c0_70] : memref<32x32xf32, #tpu.memory_space<vmem>>, vector<32x32xf32>
      %cst_71 = arith.constant dense<0.000000e+00> : vector<8x32xf32>
      %114 = tpu.matmul %112, %113, %cst_71 {dimension_numbers = #tpu.dot_dimension_numbers<[1], [0], [0], [1], [0, 0, 1, 1], [], []>, precision = #tpu.contract_precision<fp32>} : vector<8x32xf32>, vector<32x32xf32>, vector<8x32xf32> -> vector<8x32xf32>
      %c0_72 = arith.constant 0 : index
      %c0_73 = arith.constant 0 : index
      %115 = vector.load %arg12[%c0_72, %c0_73] : memref<32x32xf32, #tpu.memory_space<vmem>>, vector<32x32xf32>
      %cst_74 = arith.constant dense<0.000000e+00> : vector<8x32xf32>
      %116 = tpu.matmul %87, %115, %cst_74 {dimension_numbers = #tpu.dot_dimension_numbers<[1], [0], [0], [1], [0, 0, 1, 1], [], []>, precision = #tpu.contract_precision<fp32>} : vector<8x32xf32>, vector<32x32xf32>, vector<8x32xf32> -> vector<8x32xf32>
      %117 = arith.addf %114, %116 : vector<8x32xf32>
      %c0_75 = arith.constant 0 : index
      %c0_76 = arith.constant 0 : index
      %118 = vector.load %arg13[%c0_75, %c0_76] : memref<1x32xf32, #tpu.memory_space<vmem>>, vector<1x32xf32>
      %119 = vector.broadcast %118 : vector<1x32xf32> to vector<8x32xf32>
      %120 = arith.addf %117, %119 : vector<8x32xf32>
      %121 = math.tanh %120 : vector<8x32xf32>
      %122 = arith.index_cast %arg17 : i32 to index
      %c0_77 = arith.constant 0 : index
      %c0_78 = arith.constant 0 : index
      %123 = vector.load %arg14[%122, %c0_77, %c0_78] : memref<5x8x32xf32, #tpu.memory_space<vmem>>, vector<1x8x32xf32>
      %124 = vector.shape_cast %123 : vector<1x8x32xf32> to vector<8x32xf32>
      %125 = vector.shape_cast %121 : vector<8x32xf32> to vector<1x8x32xf32>
      tpu.vector_store %arg14[%122, %c0_77, %c0_78], %125 {strides = array<i32>} : memref<5x8x32xf32, #tpu.memory_space<vmem>>, vector<1x8x32xf32>,
      scf.yield %121 : vector<8x32xf32>
    }
    %c5_i32_11 = arith.constant 5 : i32
    return
  }
}

</mosaic_0001>

<bundles_post_ra>
// kernel: model_forward.3
= control target key start
LH: loop header
LB: loop body
LE: loop exit
PB: predicated region body
PF: predicated region fallthrough
CT: control target
= control target key end

     0   :  { %v697_v4 = vmov 0.0   ;;  %v699_v5 = vmov 0.0   ;;  %v701_v6 = vmov 0.0   ;;  %v703_v7 = vmov 0.0   ;;  %s785_s0 = inlined_call_operand.vmem [shape: f32[8,8,64], index: 0, kind: input, shape index: {}]   ;;  %s786_s1 = inlined_call_operand.vmem [shape: f32[8,8,64], index: 1, kind: input, shape index: {}]   ;;  %s787_s2 = inlined_call_operand.vmem [shape: f32[16,64], index: 2, kind: input, shape index: {}]   ;;  %s788_s3 = inlined_call_operand.vmem [shape: f32[16,64], index: 3, kind: input, shape index: {}]   ;;  %s789_s4 = inlined_call_operand.vmem [shape: f32[8,8,16], index: 4, kind: output, shape index: {0}]   ;;  %s790_s5 = inlined_call_operand.vmem [shape: f32[8,8,16], index: 5, kind: output, shape index: {1}]   ;;  %s791_s6 = inlined_call_operand.vmem [shape: f32[2,8,16], index: 6, kind: output, shape index: {2}]   ;;  %s792_s7 = inlined_call_operand.vmem [shape: f32[2,8,16], index: 7, kind: output, shape index: {3}]  }
   0x1   :  { %v680_v0 = vld [vmem:[%s787_s2] sm:$0xff]  ;;  %v685_v1 = vld [vmem:[%s787_s2 + $0x8] sm:$0xff]  ;;  %s705_s2 = smov 0  }
   0x2   :  { %v690_v2 = vld [vmem:[%s788_s3] sm:$0xff]  ;;  %v695_v3 = vld [vmem:[%s788_s3 + $0x8] sm:$0xff] }
   0x3 LB: > { %s631_s3 = smov 80   ;;  %v59_v8 = vand.u32 4294901760, %v685_v1  ;;  %v61_v10 = vand.u32 4294901760, %v680_v0  ;;  %v270_v18 = vand.u32 4294901760, %v695_v3  ;;  %v272_v20 = vand.u32 4294901760, %v690_v2  ;;  %s523_s9 = sshll.u32 %s629_s2, 3  ;;  %s629_s2 = sphi %s705_s2, %s30_s2   ;;  %v625_v7 = vphi %v703_v7, %v796_v7   ;;  %v621_v6 = vphi %v701_v6, %v795_v6   ;;  %v617_v5 = vphi %v699_v5, %v794_v5   ;;  %v613_v4 = vphi %v697_v4, %v793_v4  }
   0x4   : > { %40 = vrot.lane.b32.xlu0 %v625_v7, %s631_s3  ;;  %vm42_vm0 = vcmask 130048   ;;  %s37_s12 = scalar_lea.vmem %s785_s0, %s523_s9  ;;  %s35_s13 = ssub.s32 7, %s629_s2 }
   0x5   : > { %v87_v9 = vsub.f32 %v685_v1, %v59_v8  ;;  %144 = vmatpush.msra.mxu3 %v59_v8  ;;  %60 = vmatpush.msra.mxu0 %v59_v8  ;;  %v93_v12 = vsub.f32 %v680_v0, %v61_v10  ;;  %v298_v19 = vsub.f32 %v695_v3, %v270_v18  ;;  %v38_v52 = vld [vmem:[%s37_s12] sm:$0xff]  ;;  %s737_s14 = sshll.u32 %s35_s13, 3  ;;  %s632_s18 = smov 96  }
   0x6   : > { %v304_v22 = vsub.f32 %v690_v2, %v272_v20  ;;  %s249_s17 = scalar_lea.vmem %s786_s1, %s737_s14  ;;  %s633_s19 = smov 16  }
   0x7   : > { %v88_v11 = vand.u32 4294901760, %v87_v9  ;;  %119 = vmatpush.msra.mxu2 %v87_v9  ;;  %146 = vmatpush.msra.mxu3 %v61_v10  ;;  %v94_v14 = vand.u32 4294901760, %v93_v12  ;;  %v299_v21 = vand.u32 4294901760, %v298_v19  ;;  %s634_s20 = smov 32   ;;  %s246_s23 = scalar_lea.vmem %s789_s4, %s523_s9 }
   0x8   : > { %62 = vmatpush.msra.mxu0 %v61_v10  ;;  %v305_v24 = vand.u32 4294901760, %v304_v22  ;;  %s457_s26 = scalar_lea.vmem %s790_s5, %s737_s14  ;;  %s30_s2 = sadd.s32 1, %s629_s2  }
   0x9   : > { %v89_v13 = vsub.f32 %v87_v9, %v88_v11  ;;  %122 = vmatpush.msra.mxu2 %v93_v12  ;;  %v95_v16 = vsub.f32 %v93_v12, %v94_v14  ;;  %v300_v23 = vsub.f32 %v298_v19, %v299_v21  ;;  %p27_p0 = scmp.ge.s32.totalorder %s30_s2, 8  }
   0xa   : > { %171 = vmatpush.msrb.mxu0 %v88_v11  ;;  %v306_v26 = vsub.f32 %v304_v22, %v305_v24  ;;  %s635_s27 = smov (%p27_p0), 112   ;;  %s636_s28 = smov (%p27_p0), 80  }
   0xb   : > { %v90_v15 = vand.u32 4294901760, %v89_v13  ;;  %v96_v17 = vand.u32 4294901760, %v95_v16  ;;  %271 = vmatpush.msrb.mxu2 %v270_v18  ;;  %v301_v25 = vand.u32 4294901760, %v300_v23 }
   0xc   : > { %252 = vrot.lane.b32.xlu0 %v617_v5, %s631_s3  ;;  %175 = vmatpush.msrb.mxu0 %v94_v14  ;;  %v307_v27 = vand.u32 4294901760, %v306_v26 }
   0xd   : > { %91 = vmatpush.msra.mxu1 %v90_v15  ;;  %273 = vmatpush.msrb.mxu2 %v272_v20 }
   0xe   : > { %302 = vmatpush.msrb.mxu3 %v301_v25 }
   0xf   : > { %97 = vmatpush.msra.mxu1 %v96_v17 }
  0x10   : > { %308 = vmatpush.msrb.mxu3 %v307_v27 }
  0x11   : > { %196 = vmatpush.msrb.mxu1 %v59_v8  ;;  %v250_v8 = vld [vmem:[%s249_s17] sm:$0xff] }
  0x13   : > { %198 = vmatpush.msrb.mxu1 %v61_v10 }
  0x76   : > { %v41_v28 = vpop.permute.xlu0 %40 }
  0x77   : > { %v43_v29 = vsel %vm42_vm0, %v41_v28, 0 }
  0x78   : > { %v63_v30 = vand.u32 4294901760, %v43_v29 }
  0x7a   : > { %v64_v31 = vsub.f32 %v43_v29, %v63_v30  ;;  %99 = vmatmul.f32.vlgmr.msra.gmra.mxu1 %v63_v30 }
  0x7b   : > { %355 = vmatpush.msra.mxu1 %v270_v18 }
  0x7c   : > { %125 = vmatmul.f32.vlgmr.msra.gmra.mxu2 %v64_v31  ;;  %v65_v32 = vand.u32 4294901760, %v64_v31 }
  0x7d   : > { %357 = vmatpush.msra.mxu1 %v272_v20  ;;  %382 = vmatpush.msra.mxu2 %v299_v21 }
  0x7e   : > { %150 = vmatmul.f32.vlgmr.msra.gmra.mxu3 %v65_v32  ;;  %v253_v33 = vpop.permute.xlu0 %252  ;;  %v66_v34 = vsub.f32 %v64_v31, %v65_v32 }
  0x7f   : > { %v254_v35 = vsel %vm42_vm0, %v253_v33, 0  ;;  %407 = vmatpush.msra.mxu3 %v270_v18  ;;  %386 = vmatpush.msra.mxu2 %v305_v24 }
  0x80   : > { %v274_v36 = vand.u32 4294901760, %v254_v35  ;;  %v67_v37 = vand.u32 4294901760, %v66_v34 }
  0x81   : > { %409 = vmatpush.msra.mxu3 %v272_v20 }
  0x82   : > { %v275_v38 = vsub.f32 %v254_v35, %v274_v36  ;;  %68 = vmatmul.f32.vlgmr.msra.gmra.mxu0 %v67_v37  ;;  %200 = vmatmul.f32.vlgmr.msrb.gmra.mxu1 %v63_v30 }
  0x83   : > { %330 = vmatpush.msra.mxu0 %v298_v19 }
  0x84   : > { %v276_v39 = vand.u32 4294901760, %v275_v38 }
  0x85   : > { %333 = vmatpush.msra.mxu0 %v304_v22 }
  0x86   : > { %310 = vmatmul.f32.vlgmr.msrb.gmra.mxu3 %v274_v36  ;;  %v277_v40 = vsub.f32 %v275_v38, %v276_v39 }
  0x88   : > { %v278_v41 = vand.u32 4294901760, %v277_v40 }
  0x8a   : > { %177 = vmatmul.f32.vlgmr.msrb.gmra.mxu0 %v63_v30  ;;  %279 = vmatmul.f32.vlgmr.msrb.gmra.mxu2 %v278_v41 }
  0x8b   : > { %361 = vmatmul.f32.vlgmr.msra.gmra.mxu1 %v276_v39 }
  0x8e   : > { %411 = vmatmul.f32.vlgmr.msra.gmra.mxu3 %v274_v36 }
  0x92   : > { %336 = vmatmul.f32.vlgmr.msra.gmra.mxu0 %v275_v38  ;;  %388 = vmatmul.f32.vlgmr.msra.gmra.mxu2 %v274_v36 }
  0xf7   : > { %v100_v42 = vpop.f32.mrf.mxu1 }
  0xff   : > { %v69_v43 = vpop.f32.mrf.mxu0  ;;  %v126_v45 = vpop.f32.mrf.mxu2 }
 0x100   : > { %v101_v44 = vadd.f32 %v100_v42, %v69_v43  ;;  %v201_v51 = vpop.f32.mrf.mxu1 }
 0x101   : > { %v151_v47 = vpop.f32.mrf.mxu3 }
 0x102   : > { %v127_v46 = vadd.f32 %v126_v45, %v101_v44 }
 0x104   : > { %v152_v48 = vadd.f32 %v151_v47, %v127_v46 }
 0x107   : > { %v178_v49 = vpop.f32.mrf.mxu0 }
 0x108   : > { %v179_v50 = vadd.f32 %v178_v49, %v152_v48  ;;  %v362_v60 = vpop.f32.mrf.mxu1 }
 0x109   : > { %v311_v55 = vpop.f32.mrf.mxu3 }
 0x10a   : > { %v202_v53 = vadd.f32 %v201_v51, %v179_v50 }
 0x10c   : > { %v204_v54 = vadd.f32 %v202_v53, %v38_v52 }
 0x10d   : > { %v280_v56 = vpop.f32.mrf.mxu2 }
 0x10e   : > { %v312_v57 = vadd.f32 %v311_v55, %v280_v56  ;;  %575 = vtanh.f32 %v204_v54  ;;  %v524_v12 = vmul.f32 -1.442695, %v204_v54 }
 0x10f   : > { %v337_v58 = vpop.f32.mrf.mxu0 }
 0x110   : > { %v338_v59 = vadd.f32 %v337_v58, %v312_v57 }
 0x111   : > { %v412_v7 = vpop.f32.mrf.mxu3 }
 0x112   : > { %v363_v62 = vadd.f32 %v362_v60, %v338_v59 }
 0x114   : > { %v576_v61 = vpop.eup %575 }
 0x115   : > { %227 = vrot.lane.b32.xlu1 %v576_v61, %s632_s18  ;;  %v389_v63 = vpop.f32.mrf.mxu2 }
 0x116   : > { %v390_v5 = vadd.f32 %v389_v63, %v363_v62 }
 0x118   : > { %v413_v9 = vadd.f32 %v412_v7, %v390_v5 }
 0x11a   : > { %v415_v10 = vadd.f32 %v413_v9, %v250_v8 }
 0x11c   : > { %577 = vtanh.f32 %v415_v10  ;;  %v526_v15 = vmul.f32 -1.442695, %v415_v10 }
 0x11d   : > { %579 = vpow2.f32 %v524_v12 }
 0x122   : > { %v578_v11 = vpop.eup %577 }
 0x123   : > { %438 = vrot.lane.b32.xlu1 %v578_v11, %s632_s18  ;;  %v580_v13 = vpop.eup %579 }
 0x124   : > { %v208_v14 = vadd.f32 1.0, %v580_v13 }
 0x126   : > { %581 = vrcp.f32 %v208_v14  ;;  %v220_v24 = vand.u32 2147483648, %v208_v14  ;;  %vm214_vm2 = vweird.f32 %v208_v14  ;;  %v218_v25 = vand.u32 2147483647, %v208_v14 }
 0x127   : > { %583 = vpow2.f32 %v526_v15 }
 0x128   : > { %v221_v28 = vor.u32 1.1754944e-38, %v220_v24  ;;  %vm219_vm4 = vcmp.eq.f32.partialorder %v218_v25, 8.507059e+37 }
 0x12c   : > { %v582_v16 = vpop.eup %581 }
 0x12d   : > { %v584_v17 = vpop.eup %583  ;;  %v210_v18 = vmul.f32 %v582_v16, %v208_v14  ;;  %vm215_vm1 = vweird.f32 %v582_v16 }
 0x12e   : > { %v419_v19 = vadd.f32 1.0, %v584_v17  ;;  %vm216_vm3 = vmor %vm214_vm2, %vm215_vm1 }
 0x12f   : > { %v211_v20 = vsub.f32 1.0, %v210_v18 }
 0x130   : > { %585 = vrcp.f32 %v419_v19  ;;  %v431_v35 = vand.u32 2147483648, %v419_v19  ;;  %vm425_vm6 = vweird.f32 %v419_v19  ;;  %v429_v36 = vand.u32 2147483647, %v419_v19 }
 0x131   : > { %v212_v21 = vmul.f32 %v582_v16, %v211_v20 }
 0x132   : > { %v432_v38 = vor.u32 1.1754944e-38, %v431_v35  ;;  %vm430_vm8 = vcmp.eq.f32.partialorder %v429_v36, 8.507059e+37 }
 0x133   : > { %v213_v23 = vadd.f32 %v582_v16, %v212_v21 }
 0x135   : > { %v217_v27 = vsel %vm216_vm3, %v582_v16, %v213_v23 }
 0x136   : > { %v586_v22 = vpop.eup %585  ;;  %v222_v31 = vsel %vm219_vm4, %v221_v28, %v217_v27 }
 0x137   : > { %v421_v26 = vmul.f32 %v586_v22, %v419_v19  ;;  %vm426_vm5 = vweird.f32 %v586_v22  ;;  %v225_v42 = vmul.f32 %v621_v6, %v222_v31 }
 0x138   : > { %vm427_vm7 = vmor %vm425_vm6, %vm426_vm5 }
 0x139   : > { %v422_v29 = vsub.f32 1.0, %v421_v26 }
 0x13b   : > { %v423_v33 = vmul.f32 %v586_v22, %v422_v29 }
 0x13d   : > { %v424_v34 = vadd.f32 %v586_v22, %v423_v33 }
 0x13f   : > { %v428_v37 = vsel %vm427_vm7, %v586_v22, %v424_v34 }
 0x140   : > { %v433_v40 = vsel %vm430_vm8, %v432_v38, %v428_v37 }
 0x141   : > { %v436_v46 = vmul.f32 %v613_v4, %v433_v40 }
 0x187   : > { %v228_v30 = vpop.permute.xlu1 %227 }
 0x188   : > { %v230_v32 = vmul.f32 %v228_v30, %v222_v31 }
 0x18a   : > { %232 = vrot.lane.b32.xlu2 %v230_v32, %s633_s19 }
 0x195   : > { %v439_v39 = vpop.permute.xlu1 %438 }
 0x196   : > { %v441_v41 = vmul.f32 %v439_v39, %v433_v40 }
 0x198   : > { %443 = vrot.lane.b32.xlu2 %v441_v41, %s633_s19 }
 0x1e4   : > { %v233_v43 = vpop.permute.xlu2 %232 }
 0x1e5   : > { %v235_v44 = vadd.f32 %v233_v43, %v225_v42  }
 0x1e7   : > { %587 = vtanh.f32 %v235_v44 }
 0x1ed   : > { %v588_v45 = vpop.eup %587 }
 0x1ee   : > { %238 = vrot.lane.b32.xlu0 %v588_v45, %s634_s20 }
 0x1f2   : > { %v444_v47 = vpop.permute.xlu2 %443 }
 0x1f3   : > { %v446_v48 = vadd.f32 %v444_v47, %v436_v46  }
 0x1f5   : > { %589 = vtanh.f32 %v446_v48 }
 0x1fb   : > { %v590_v49 = vpop.eup %589 }
 0x1fc   : > { %449 = vrot.lane.b32.xlu1 %v590_v49, %s634_s20 }
 0x204   :  { %472 = vrot.lane.b32.xlu1 (%p27_p0), %v235_v44, %s635_s27 }
 0x20c   :  { %477 = vrot.lane.b32.xlu1 (%p27_p0), %v446_v48, %s635_s27 }
 0x260   : > { %v239_v50 = vpop.permute.xlu0 %238 }
 0x261   : > { %v241_v51 = vmul.f32 %v239_v50, %v222_v31  }
 0x263   : > { %243 = vrot.lane.b32.xlu2 %v241_v51, %s631_s3  ;;  %v796_v7 = vmov %v241_v51 }
 0x26e   : > { %v450_v6 = vpop.permute.xlu1 %449 }
 0x26f   : > { %v452_v52 = vmul.f32 %v450_v6, %v433_v40   ;;  %v795_v6 = vmov %v235_v44 }
 0x271   : > { %454 = vrot.lane.b32.xlu0 %v452_v52, %s631_s3  ;;  %v794_v5 = vmov %v452_v52 }
 0x276   :  { %v473_v54 = vpop.permute.xlu1 (%p27_p0), %472 }
 0x277   :  { %475 = vst.msk [vmem:[%s792_s7] sm:$0xff] (%p27_p0), %vm42_vm0, %v473_v54 }
 0x279   :  { %460 = vrot.lane.b32.xlu0 (%p27_p0), %v241_v51, %s636_s28 }
 0x27e   :  { %v478_v56 = vpop.permute.xlu1 (%p27_p0), %477 }
 0x27f   :  { %528 = vst.msk [vmem:[%s792_s7 + $0x8] sm:$0xff] (%p27_p0), %vm42_vm0, %v478_v56 }
 0x281   :  { %466 = vrot.lane.b32.xlu0 (%p27_p0), %v452_v52, %s636_s28 }
 0x2bd   : > { %v244_v53 = vpop.permute.xlu2 %243 }
 0x2be   : > { %247 = vst.msk [vmem:[%s246_s23] sm:$0xff] %vm42_vm0, %v244_v53 }
 0x2e0   :  { %29 = sbr.rel (!%p27_p0) target bundleno = 3 (0x3), region = 73 }
 0x2e3   : > { %v455_v4 = vpop.permute.xlu0 %454 }
 0x2e4   : > { %458 = vst.msk [vmem:[%s457_s26] sm:$0xff] %vm42_vm0, %v455_v4  ;;  %v793_v4 = vmov %v446_v48 }
 0x2eb   :  { %v461_v55 = vpop.permute.xlu0 %460 }
 0x2ec   :  { %464 = vst.msk [vmem:[%s791_s6] sm:$0xff] %vm42_vm0, %v461_v55 }
 0x2f3   :  { %v467_v57 = vpop.permute.xlu0 %466 }
 0x2f4   :  { %527 = vst.msk [vmem:[%s791_s6 + $0x8] sm:$0xff] %vm42_vm0, %v467_v57 }

// kernel: model_forward.5
= control target key start
LH: loop header
LB: loop body
LE: loop exit
PB: predicated region body
PF: predicated region fallthrough
CT: control target
= control target key end

     0   :  { %19 = vsyncpa [#allocation5], 0  ;;  %vm50_vm0 = vcmask 261120   ;;  %v4419_v4 = vmov 0.0   ;;  %s4421_s21 = smov 0   ;;  %s5141_s0 = inlined_call_operand.vmem [shape: f32[5,8,128], index: 0, kind: input, shape index: {}]   ;;  %s5142_s1 = inlined_call_operand.vmem [shape: f32[8,8,32], index: 1, kind: input, shape index: {}]   ;;  %s5143_s2 = inlined_call_operand.vmem [shape: f32[2,8,32], index: 2, kind: input, shape index: {}]   ;;  %s5144_s3 = inlined_call_operand.vmem [shape: f32[2,8,32], index: 3, kind: input, shape index: {}]   ;;  %s5145_s4 = inlined_call_operand.vmem [shape: f32[32,128], index: 4, kind: input, shape index: {}]   ;;  %s5146_s5 = inlined_call_operand.vmem [shape: f32[32,128], index: 5, kind: input, shape index: {}]   ;;  %s5147_s6 = inlined_call_operand.vmem [shape: f32[32,128], index: 6, kind: input, shape index: {}]   ;;  %s5148_s7 = inlined_call_operand.vmem [shape: f32[32,128], index: 7, kind: input, shape index: {}]   ;;  %s5149_s8 = inlined_call_operand.vmem [shape: f32[1,128], index: 8, kind: input, shape index: {}]   ;;  %s5150_s9 = inlined_call_operand.vmem [shape: f32[32,32], index: 9, kind: input, shape index: {}]   ;;  %s5151_s10 = inlined_call_operand.vmem [shape: f32[1,32], index: 10, kind: input, shape index: {}]   ;;  %s5152_s11 = inlined_call_operand.vmem [shape: f32[32,32], index: 11, kind: input, shape index: {}]   ;;  %s5153_s12 = inlined_call_operand.vmem [shape: f32[32,32], index: 12, kind: input, shape index: {}]   ;;  %s5154_s13 = inlined_call_operand.vmem [shape: f32[1,32], index: 13, kind: input, shape index: {}]   ;;  %s5155_s14 = inlined_call_operand.hbm [shape: f32[5,8,32], index: 14, kind: output, shape index: {}]  }
   0x1   :  { %v48_v0 = vld [vmem:[%s5143_s2] sm:$0xff]  ;;  %v49_v1 = vld [vmem:[%s5143_s2 + $0x8] sm:$0xff] }
   0x2   :  { %51 = vst.msk [vmem:[#allocation2] sm:$0xff] %vm50_vm0, %v48_v0  ;;  %v53_v2 = vld [vmem:[%s5144_s3] sm:$0xff]  ;;  %v54_v3 = vld [vmem:[%s5144_s3 + $0x8] sm:$0xff] }
   0x3   :  { %52 = vst.msk [vmem:[#allocation2 + $0x8] sm:$0xff] %vm50_vm0, %v49_v1 }
   0x4   :  { %55 = vst.msk [vmem:[#allocation3] sm:$0xff] %vm50_vm0, %v53_v2 }
   0x5   :  { %56 = vst.msk [vmem:[#allocation3 + $0x8] sm:$0xff] %vm50_vm0, %v54_v3 }
   0x6 LB: > { %v70_v5 = vld [vmem:[%s5145_s4 + $0x18] sm:$0xff]  ;;  %v69_v6 = vld [vmem:[%s5145_s4 + $0x10] sm:$0xff]  ;;  %v68_v7 = vld [vmem:[%s5145_s4 + $0x8] sm:$0xff]  ;;  %v72_v15 = vsel %vm50_vm0, %v4316_v4, 0  ;;  %s4201_s20 = sshll.u32 %s4320_s21, 3  ;;  %s4322_s23 = smov 64   ;;  %s4320_s21 = sphi %s4421_s21, %s62_s21   ;;  %v4316_v4 = vphi %v4419_v4, %v4278_v4  }
   0x7   : > { %v4436_v8 = vand.u32 4294901760, %v70_v5  ;;  %v4438_v9 = vand.u32 4294901760, %v69_v6  ;;  %v4440_v10 = vand.u32 4294901760, %v68_v7  ;;  %v67_v11 = vld [vmem:[%s5145_s4] sm:$0xff]  ;;  %v264_v12 = vld [vmem:[%s5146_s5 + $0x18] sm:$0xff]  ;;  %v263_v13 = vld [vmem:[%s5146_s5 + $0x10] sm:$0xff]  ;;  %s65_s3 = scalar_lea.vmem %s5141_s0, %s4201_s20 }
   0x8   : > { %v4451_v14 = vand.u32 4294901760, %v67_v11  ;;  %v4454_v16 = vand.u32 4294901760, %v264_v12  ;;  %v4456_v17 = vand.u32 4294901760, %v263_v13  ;;  %v262_v18 = vld [vmem:[%s5146_s5 + $0x8] sm:$0xff]  ;;  %v4468_v22 = vand.u32 4294901760, %v72_v15  ;;  %v261_v42 = vld [vmem:[%s5146_s5] sm:$0xff] }
   0x9   : > { %87 = vmatpush.msra.mxu0 %v4436_v8  ;;  %v116_v19 = vsub.f32 %v70_v5, %v4436_v8  ;;  %187 = vmatpush.msra.mxu3 %v4436_v8  ;;  %v122_v20 = vsub.f32 %v69_v6, %v4438_v9  ;;  %v4466_v21 = vsub.f32 %v68_v7, %v4440_v10  ;;  %v4479_v26 = vand.u32 4294901760, %v262_v18  ;;  %v260_v43 = vld [vmem:[#allocation2] sm:$0xff]  ;;  %s4323_s24 = smov 32   ;;  %s4324_s22 = smov 96  }
   0xa   : > { %v4471_v23 = vsub.f32 %v67_v11, %v4451_v14  ;;  %v4474_v24 = vsub.f32 %v264_v12, %v4454_v16  ;;  %v4477_v25 = vsub.f32 %v263_v13, %v4456_v17  ;;  %v95_v29 = vsub.f32 %v72_v15, %v4468_v22  ;;  %s4169_s28 = scalar_lea.vmem [#allocation4], %s4201_s20  ;;  %s62_s21 = sadd.s32 1, %s4320_s21  }
   0xb   : > { %158 = vmatpush.msra.mxu2 %v116_v19  ;;  %89 = vmatpush.msra.mxu0 %v4438_v9  ;;  %v117_v27 = vand.u32 4294901760, %v116_v19  ;;  %v123_v28 = vand.u32 4294901760, %v122_v20  ;;  %v129_v30 = vand.u32 4294901760, %v4466_v21  ;;  %v4489_v34 = vsub.f32 %v262_v18, %v4479_v26  ;;  %p59_p0 = scmp.ge.s32.totalorder %s62_s21, 5  }
   0xc   : > { %189 = vmatpush.msra.mxu3 %v4438_v9  ;;  %v311_v31 = vand.u32 4294901760, %v4474_v24  ;;  %v135_v32 = vand.u32 4294901760, %v4471_v23  ;;  %v317_v33 = vand.u32 4294901760, %v4477_v25  ;;  %v96_v37 = vand.u32 4294901760, %v95_v29  ;;  %s4177_s15 = sshll.u32 (%p59_p0), %s5155_s14, 4  ;;  %s4325_s16 = smov (%p59_p0), [#allocation4]   ;;  %s4178_s15 = int_to_ptr.hbm [resolvable:$true] %s4177_s15 }
   0xd   : > { %161 = vmatpush.msra.mxu2 %v122_v20  ;;  %91 = vmatpush.msra.mxu0 %v4440_v10  ;;  %v118_v35 = vsub.f32 %v116_v19, %v117_v27  ;;  %v124_v36 = vsub.f32 %v122_v20, %v123_v28  ;;  %v130_v38 = vsub.f32 %v4466_v21, %v129_v30  ;;  %v323_v41 = vand.u32 4294901760, %v4489_v34  ;;  %s4326_s17 = smov (%p59_p0), 128   ;;  %s4327_s20 = smov (%p59_p0), 8  }
   0xe   : > { %191 = vmatpush.msra.mxu3 %v4440_v10  ;;  %v312_v39 = vsub.f32 %v4474_v24, %v311_v31  ;;  %v318_v40 = vsub.f32 %v4477_v25, %v317_v33  ;;  %v97_v46 = vsub.f32 %v95_v29, %v96_v37  ;;  %v136_v47 = vsub.f32 %v4471_v23, %v135_v32 }
   0xf   : > { %v119_v44 = vand.u32 4294901760, %v118_v35  ;;  %164 = vmatpush.msra.mxu2 %v4466_v21  ;;  %93 = vmatpush.msra.mxu0 %v4451_v14  ;;  %v125_v45 = vand.u32 4294901760, %v124_v36  ;;  %v131_v48 = vand.u32 4294901760, %v130_v38  ;;  %v324_v51 = vsub.f32 %v4489_v34, %v323_v41  ;;  %v66_v21 = vld [vmem:[%s65_s3] sm:$0xff] }
  0x10   : > { %193 = vmatpush.msra.mxu3 %v4451_v14  ;;  %v313_v49 = vand.u32 4294901760, %v312_v39  ;;  %v98_v50 = vand.u32 4294901760, %v97_v46  ;;  %v286_v52 = vand.u32 4294901760, %v261_v42  ;;  %v266_v53 = vsel %vm50_vm0, %v260_v43, 0 }
  0x11   : > { %216 = vmatpush.msrb.mxu0 %v117_v27  ;;  %120 = vmatpush.msra.mxu1 %v119_v44  ;;  %v319_v54 = vand.u32 4294901760, %v318_v40  ;;  %v288_v55 = vand.u32 4294901760, %v266_v53  ;;  %v137_v56 = vand.u32 4294901760, %v136_v47  ;;  %v325_v59 = vand.u32 4294901760, %v324_v51  ;;  %v513_v51 = vld [vmem:[%s5148_s7 + $0x8] sm:$0xff] }
  0x12   : > { %167 = vmatpush.msra.mxu2 %v4471_v23  ;;  %197 = vmatmul.f32.vlgmr.msra.gmra.mxu3 %v96_v37  ;;  %v328_v57 = vsub.f32 %v261_v42, %v286_v52  ;;  %vm2368_vm9 = vcmask 57344   ;;  %vm2561_vm14 = vcmask 64512  }
  0x13   : > { %170 = vmatmul.f32.vlgmr.msra.gmra.mxu2 %v95_v29  ;;  %126 = vmatpush.msra.mxu1 %v125_v45  ;;  %v289_v58 = vsub.f32 %v266_v53, %v288_v55 }
  0x14   : > { %99 = vmatmul.f32.vlgmr.msra.gmra.mxu0 %v98_v50  ;;  %281 = vmatpush.msrb.mxu2 %v4454_v16  ;;  %v329_v60 = vand.u32 4294901760, %v328_v57  ;;  %v514_v50 = vld [vmem:[%s5148_s7 + $0x10] sm:$0xff] }
  0x15   : > { %314 = vmatpush.msrb.mxu3 %v313_v49  ;;  %132 = vmatpush.msra.mxu1 %v131_v48  ;;  %v290_v61 = vand.u32 4294901760, %v289_v58  ;;  %v515_v49 = vld [vmem:[%s5148_s7 + $0x18] sm:$0xff]  ;;  %v4566_v53 = vand.u32 4294901760, %v514_v50 }
  0x16   : > { %220 = vmatpush.msrb.mxu0 %v123_v28  ;;  %283 = vmatpush.msrb.mxu2 %v4456_v17  ;;  %v330_v62 = vsub.f32 %v328_v57, %v329_v60  ;;  %v454_v28 = vld [vmem:[#allocation3] sm:$0xff] }
  0x17   : > { %320 = vmatpush.msrb.mxu3 %v319_v54  ;;  %138 = vmatpush.msra.mxu1 %v137_v56  ;;  %v291_v63 = vsub.f32 %v289_v58, %v290_v61  ;;  %v4568_v54 = vand.u32 4294901760, %v513_v51  ;;  %v511_v56 = vld [vmem:[#allocation2 + $0x8] sm:$0xff] }
  0x18   : > { %224 = vmatpush.msrb.mxu0 %v129_v30  ;;  %140 = vmatmul.f32.vlgmr.msra.gmra.mxu1 %v4468_v22  ;;  %v331_v0 = vand.u32 4294901760, %v330_v62 }
  0x19   : > { %285 = vmatpush.msrb.mxu2 %v4479_v26  ;;  %247 = vmatpush.msrb.mxu1 %v4436_v8  ;;  %v292_v1 = vand.u32 4294901760, %v291_v63  ;;  %v567_v63 = vsub.f32 %v514_v50, %v4566_v53 }
  0x1a   : > { %326 = vmatpush.msrb.mxu3 %v325_v59  ;;  %228 = vmatpush.msrb.mxu0 %v135_v32  ;;  %v517_v59 = vsel %vm50_vm0, %v511_v56, 0 }
  0x1b   : > { %287 = vmatpush.msrb.mxu2 %v286_v52  ;;  %249 = vmatpush.msrb.mxu1 %v4438_v9 }
  0x1c   : > { %332 = vmatpush.msrb.mxu3 %v331_v0  ;;  %230 = vmatmul.f32.vlgmr.msrb.gmra.mxu0 %v4468_v22  ;;  %v573_v0 = vsub.f32 %v513_v51, %v4568_v54 }
  0x1d   : > { %293 = vmatmul.f32.vlgmr.msrb.gmra.mxu2 %v292_v1  ;;  %251 = vmatpush.msrb.mxu1 %v4440_v10  ;;  %v539_v1 = vand.u32 4294901760, %v517_v59 }
  0x1e   : > { %334 = vmatmul.f32.vlgmr.msrb.gmra.mxu3 %v288_v55  ;;  %410 = vmatpush.msra.mxu2 %v311_v31 }
  0x1f   : > { %352 = vmatpush.msra.mxu0 %v4474_v24  ;;  %253 = vmatpush.msrb.mxu1 %v4451_v14 }
  0x20   : > { %441 = vmatpush.msra.mxu3 %v4454_v16  ;;  %414 = vmatpush.msra.mxu2 %v317_v33 }
  0x21   : > { %355 = vmatpush.msra.mxu0 %v4477_v25  ;;  %255 = vmatmul.f32.vlgmr.msrb.gmra.mxu1 %v4468_v22 }
  0x22   : > { %443 = vmatpush.msra.mxu3 %v4456_v17  ;;  %381 = vmatpush.msra.mxu1 %v4454_v16 }
  0x23   : > { %418 = vmatpush.msra.mxu2 %v323_v41  ;;  %358 = vmatpush.msra.mxu0 %v4489_v34 }
  0x24   : > { %445 = vmatpush.msra.mxu3 %v4479_v26  ;;  %383 = vmatpush.msra.mxu1 %v4456_v17 }
  0x25   : > { %422 = vmatpush.msra.mxu2 %v329_v60  ;;  %361 = vmatpush.msra.mxu0 %v328_v57  ;;  %v509_v57 = vld [vmem:[%s5147_s6 + $0x18] sm:$0xff] }
  0x26   : > { %424 = vmatmul.f32.vlgmr.msra.gmra.mxu2 %v288_v55  ;;  %364 = vmatmul.f32.vlgmr.msra.gmra.mxu0 %v289_v58  ;;  %v4579_v60 = vand.u32 4294901760, %v509_v57 }
  0x27   : > { %385 = vmatpush.msra.mxu1 %v4479_v26  ;;  %447 = vmatpush.msra.mxu3 %v286_v52 }
  0x28   : > { %449 = vmatmul.f32.vlgmr.msra.gmra.mxu3 %v288_v55  ;;  %v512_v55 = vld [vmem:[%s5148_s7] sm:$0xff] }
  0x29   : > { %387 = vmatpush.msra.mxu1 %v286_v52  ;;  %v4564_v52 = vand.u32 4294901760, %v515_v49  ;;  %v4576_v58 = vand.u32 4294901760, %v512_v55 }
  0x2a   : > { %391 = vmatmul.f32.vlgmr.msra.gmra.mxu1 %v290_v61  ;;  %v508_v61 = vld [vmem:[%s5147_s6 + $0x10] sm:$0xff] }
  0x2b   : > { %532 = vmatpush.msrb.mxu0 %v4564_v52  ;;  %v561_v62 = vsub.f32 %v515_v49, %v4564_v52  ;;  %632 = vmatpush.msrb.mxu3 %v4564_v52 }
  0x2d   : > { %534 = vmatpush.msrb.mxu0 %v4566_v53  ;;  %634 = vmatpush.msrb.mxu3 %v4566_v53 }
  0x2e   : > { %603 = vmatpush.msrb.mxu2 %v561_v62 }
  0x2f   : > { %536 = vmatpush.msrb.mxu0 %v4568_v54  ;;  %636 = vmatpush.msrb.mxu3 %v4568_v54 }
  0x30   : > { %606 = vmatpush.msrb.mxu2 %v567_v63 }
  0x31   : > { %538 = vmatpush.msrb.mxu0 %v4576_v58  ;;  %638 = vmatpush.msrb.mxu3 %v4576_v58 }
  0x32   : > { %609 = vmatpush.msrb.mxu2 %v573_v0 }
  0x91   : > { %v100_v2 = vpop.f32.mrf.mxu0 }
  0x95   : > { %v141_v3 = vpop.f32.mrf.mxu1  ;;  %v198_v5 = vpop.f32.mrf.mxu3 }
  0x96   : > { %v171_v4 = vpop.f32.mrf.mxu2  ;;  %v142_v6 = vadd.f32 %v141_v3, %v100_v2  ;;  %v579_v2 = vsub.f32 %v512_v55, %v4576_v58  ;;  %v4591_v3 = vsub.f32 %v509_v57, %v4579_v60 }
  0x98   : > { %v172_v8 = vadd.f32 %v171_v4, %v142_v6  ;;  %v4593_v4 = vand.u32 4294901760, %v508_v61  ;;  %v568_v6 = vand.u32 4294901760, %v567_v63  ;;  %612 = vmatpush.msrb.mxu2 %v579_v2 }
  0x99   : > { %v231_v7 = vpop.f32.mrf.mxu0 }
  0x9a   : > { %v199_v11 = vadd.f32 %v198_v5, %v172_v8  ;;  %v562_v5 = vand.u32 4294901760, %v561_v62  ;;  %v540_v8 = vsub.f32 %v517_v59, %v539_v1  ;;  %719 = vmatpush.msra.mxu2 %v4579_v60 }
  0x9c   : > { %v232_v15 = vadd.f32 %v231_v7, %v199_v11  ;;  %v574_v7 = vand.u32 4294901760, %v573_v0  ;;  %v4599_v11 = vsub.f32 %v508_v61, %v4593_v4  ;;  %661 = vmatpush.msra.mxu0 %v562_v5  ;;  %615 = vmatmul.f32.vlgmr.msrb.gmra.mxu2 %v540_v8 }
  0x9d   : > { %721 = vmatpush.msra.mxu2 %v4593_v4 }
  0x9e   : > { %v256_v9 = vpop.f32.mrf.mxu1  ;;  %665 = vmatpush.msra.mxu0 %v568_v6 }
  0x9f   : > { %v257_v19 = vadd.f32 %v256_v9, %v232_v15  ;;  %v580_v9 = vand.u32 4294901760, %v579_v2  ;;  %v541_v15 = vand.u32 4294901760, %v540_v8 }
  0xa0   : > { %v294_v10 = vpop.f32.mrf.mxu2  ;;  %669 = vmatpush.msra.mxu0 %v574_v7 }
  0xa1   : > { %v335_v12 = vpop.f32.mrf.mxu3  ;;  %v259_v24 = vadd.f32 %v257_v19, %v66_v21  ;;  %v581_v21 = vsub.f32 %v579_v2, %v580_v9  ;;  %642 = vmatmul.f32.vlgmr.msrb.gmra.mxu3 %v541_v15 }
  0xa2   : > { %v336_v13 = vadd.f32 %v335_v12, %v294_v10  ;;  %v749_v10 = vand.u32 4294901760, %v4591_v3  ;;  %v563_v12 = vsub.f32 %v561_v62, %v562_v5  ;;  %673 = vmatpush.msra.mxu0 %v580_v9 }
  0xa3   : > { %v365_v14 = vpop.f32.mrf.mxu0 }
  0xa4   : > { %v366_v16 = vadd.f32 %v365_v14, %v336_v13  ;;  %v569_v13 = vsub.f32 %v567_v63, %v568_v6  ;;  %v575_v14 = vsub.f32 %v573_v0, %v574_v7 }
  0xa6   : > { %v570_v19 = vand.u32 4294901760, %v569_v13 }
  0xa7   : > { %v392_v17 = vpop.f32.mrf.mxu1 }
  0xa8   : > { %v393_v18 = vadd.f32 %v392_v17, %v366_v16  ;;  %v750_v16 = vsub.f32 %v4591_v3, %v749_v10  ;;  %v755_v17 = vand.u32 4294901760, %v4599_v11 }
  0xa9   : > { %v425_v20 = vpop.f32.mrf.mxu2 }
  0xaa   : > { %v426_v22 = vadd.f32 %v425_v20, %v393_v18  ;;  %v564_v18 = vand.u32 4294901760, %v563_v12  ;;  %v542_v20 = vsub.f32 %v540_v8, %v541_v15  ;;  %v4226_v8 = vld [vmem:[%s5149_s8] ss:$0 sm:$0xff] }
  0xab   : > { %v450_v23 = vpop.f32.mrf.mxu3 }
  0xac   : > { %v451_v25 = vadd.f32 %v450_v23, %v426_v22  ;;  %v751_v22 = vand.u32 4294901760, %v750_v16  ;;  %v756_v23 = vsub.f32 %v4599_v11, %v755_v17  ;;  %565 = vmatpush.msrb.mxu1 %v564_v18 }
  0xae   : > { %v453_v26 = vadd.f32 %v451_v25, %v259_v24  ;;  %v576_v24 = vand.u32 4294901760, %v575_v14  ;;  %v543_v25 = vand.u32 4294901760, %v542_v20  ;;  %752 = vmatpush.msra.mxu3 %v751_v22  ;;  %571 = vmatpush.msrb.mxu1 %v570_v19 }
  0xb0   : > { %4229 = vtanh.f32 %v453_v26  ;;  %v4202_v29 = vmul.f32 -1.442695, %v453_v26  ;;  %v757_v26 = vand.u32 4294901760, %v756_v23  ;;  %544 = vmatmul.f32.vlgmr.msrb.gmra.mxu0 %v543_v25  ;;  %577 = vmatpush.msrb.mxu1 %v576_v24 }
  0xb1   : > { %790 = vmatpush.msrb.mxu0 %v4591_v3 }
  0xb2   : > { %4231 = vpow2.f32 %v4202_v29  ;;  %758 = vmatpush.msra.mxu3 %v757_v26 }
  0xb3   : > { %793 = vmatpush.msrb.mxu0 %v4599_v11 }
  0xb6   : > { %v4230_v27 = vpop.eup %4229 }
  0xb7   : > { %481 = vrot.lane.b32.xlu0 %v4230_v27, %s4322_s23  ;;  %v582_v27 = vand.u32 4294901760, %v581_v21 }
  0xb8   : > { %v4232_v30 = vpop.eup %4231  ;;  %675 = vmatmul.f32.vlgmr.msra.gmra.mxu0 %v539_v1 }
  0xb9   : > { %v458_v31 = vadd.f32 1.0, %v4232_v30  ;;  %583 = vmatpush.msrb.mxu1 %v582_v27  ;;  %v507_v30 = vld [vmem:[%s5147_s6 + $0x8] sm:$0xff] }
  0xba   : > { %585 = vmatmul.f32.vlgmr.msrb.gmra.mxu1 %v539_v1 }
  0xbb   : > { %4233 = vrcp.f32 %v458_v31  ;;  %v470_v37 = vand.u32 2147483648, %v458_v31  ;;  %vm464_vm2 = vweird.f32 %v458_v31  ;;  %v468_v38 = vand.u32 2147483647, %v458_v31  ;;  %692 = vmatpush.msra.mxu1 %v4564_v52 }
  0xbd   : > { %v471_v40 = vor.u32 1.1754944e-38, %v470_v37  ;;  %vm469_vm4 = vcmp.eq.f32.partialorder %v468_v38, 8.507059e+37  ;;  %694 = vmatpush.msra.mxu1 %v4566_v53 }
  0xbf   : > { %476 = vrot.lane.b32.xlu0 %v454_v28, %s4323_s24  ;;  %696 = vmatpush.msra.mxu1 %v4568_v54 }
  0xc1   : > { %v4234_v32 = vpop.eup %4233  ;;  %698 = vmatpush.msra.mxu1 %v4576_v58 }
  0xc2   : > { %v460_v33 = vmul.f32 %v4234_v32, %v458_v31  ;;  %vm465_vm1 = vweird.f32 %v4234_v32  ;;  %700 = vmatmul.f32.vlgmr.msra.gmra.mxu1 %v539_v1  ;;  %v722_v31 = vand.u32 4294901760, %v507_v30 }
  0xc3   : > { %vm466_vm3 = vmor %vm464_vm2, %vm465_vm1  ;;  %819 = vmatpush.msrb.mxu1 %v4579_v60 }
  0xc4   : > { %v461_v34 = vsub.f32 1.0, %v460_v33  ;;  %v760_v33 = vsub.f32 %v507_v30, %v722_v31  ;;  %723 = vmatpush.msra.mxu2 %v722_v31 }
  0xc5   : > { %821 = vmatpush.msrb.mxu1 %v4593_v4 }
  0xc6   : > { %v462_v35 = vmul.f32 %v4234_v32, %v461_v34  ;;  %796 = vmatpush.msrb.mxu0 %v760_v33 }
  0xc7   : > { %823 = vmatpush.msrb.mxu1 %v722_v31 }
  0xc8   : > { %v463_v36 = vadd.f32 %v4234_v32, %v462_v35  ;;  %v761_v35 = vand.u32 4294901760, %v760_v33 }
  0xca   : > { %v467_v39 = vsel %vm466_vm3, %v4234_v32, %v463_v36  ;;  %v506_v32 = vld [vmem:[%s5147_s6] sm:$0xff]  ;;  %v762_v37 = vsub.f32 %v760_v33, %v761_v35  ;;  %v960_v33 = vld [vmem:[%s5150_s9 + $0x18] sm:$0xff] }
  0xcb   : > { %v4546_v42 = vsel %vm469_vm4, %v471_v40, %v467_v39  ;;  %v724_v34 = vand.u32 4294901760, %v506_v32 }
  0xcc   : > { %v763_v39 = vand.u32 4294901760, %v762_v37 }
  0xcd   : > { %v766_v36 = vsub.f32 %v506_v32, %v724_v34  ;;  %825 = vmatpush.msrb.mxu1 %v724_v34  ;;  %725 = vmatpush.msra.mxu2 %v724_v34 }
  0xce   : > { %764 = vmatpush.msra.mxu3 %v763_v39 }
  0xcf   : > { %v767_v38 = vand.u32 4294901760, %v766_v36  ;;  %799 = vmatpush.msrb.mxu0 %v766_v36  ;;  %848 = vmatpush.msrb.mxu2 %v749_v10 }
  0xd1   : > { %v768_v40 = vsub.f32 %v766_v36, %v767_v38  ;;  %852 = vmatpush.msrb.mxu2 %v755_v17 }
  0xd3   : > { %856 = vmatpush.msrb.mxu2 %v761_v35  ;;  %v979_v35 = vand.u32 4294901760, %v960_v33 }
  0xd5   : > { %860 = vmatpush.msrb.mxu2 %v767_v38  ;;  %v1009_v37 = vsub.f32 %v960_v33, %v979_v35  ;;  %980 = vmatpush.msra.mxu0 %v979_v35 }
  0xd7   : > { %v1010_v39 = vand.u32 4294901760, %v1009_v37 }
 0x11f   : > { %v616_v54 = vpop.f32.mrf.mxu2 }
 0x124   : > { %v643_v56 = vpop.f32.mrf.mxu3 }
 0x129   : > { %v482_v41 = vpop.permute.xlu0 %481 }
 0x12a   : > { %v484_v43 = vmul.f32 %v482_v41, %v4546_v42  ;;  %v769_v41 = vand.u32 4294901760, %v768_v40 }
 0x12c   : > { %486 = vrot.lane.b32.xlu1 %v484_v43, %s4323_s24  ;;  %770 = vmatpush.msra.mxu3 %v769_v41  ;;  %v1011_v41 = vsub.f32 %v1009_v37, %v1010_v39 }
 0x12d   : > { %v545_v51 = vpop.f32.mrf.mxu0 }
 0x12e   : > { %879 = vmatpush.msrb.mxu3 %v4579_v60 }
 0x130   : > { %881 = vmatpush.msrb.mxu3 %v4593_v4 }
 0x131   : > { %v477_v44 = vpop.permute.xlu0 %476 }
 0x132   : > { %v479_v45 = vmul.f32 %v477_v44, %v4546_v42  ;;  %883 = vmatpush.msrb.mxu3 %v722_v31 }
 0x134   : > { %885 = vmatpush.msrb.mxu3 %v724_v34  ;;  %v959_v34 = vld [vmem:[%s5150_s9 + $0x10] sm:$0xff] }
 0x135   : > { %v676_v58 = vpop.f32.mrf.mxu0  ;;  %v981_v36 = vand.u32 4294901760, %v959_v34 }
 0x137   : > { %v586_v52 = vpop.f32.mrf.mxu1  ;;  %v1015_v38 = vsub.f32 %v959_v34, %v981_v36  ;;  %982 = vmatpush.msra.mxu0 %v981_v36 }
 0x138   : > { %v587_v53 = vadd.f32 %v586_v52, %v545_v51 }
 0x139   : > { %v1016_v40 = vand.u32 4294901760, %v1015_v38 }
 0x13a   : > { %v617_v55 = vadd.f32 %v616_v54, %v587_v53 }
 0x13c   : > { %v644_v57 = vadd.f32 %v643_v56, %v617_v55 }
 0x13e   : > { %v677_v59 = vadd.f32 %v676_v58, %v644_v57 }
 0x13f   : > { %v701_v60 = vpop.f32.mrf.mxu1 }
 0x140   : > { %v702_v61 = vadd.f32 %v701_v60, %v677_v59 }
 0x19e   : > { %v487_v46 = vpop.permute.xlu1 %486 }
 0x19f   : > { %v4551_v47 = vadd.f32 %v487_v46, %v479_v45 }
 0x1a1   : > { %4235 = vtanh.f32 %v4551_v47 }
 0x1a7   : > { %v4236_v48 = vpop.eup %4235 }
 0x1a8   : > { %492 = vrot.lane.b32.xlu1 %v4236_v48, %s4322_s23 }
 0x21a   : > { %v493_v28 = vpop.permute.xlu1 %492 }
 0x21b   : > { %v495_v29 = vmul.f32 %v493_v28, %v4546_v42  ;;  %v897_v42 = vld [vmem:[#allocation3 + $0x8] sm:$0xff] }
 0x21c   : > { %919 = vrot.lane.b32.xlu0 %v897_v42, %s4323_s24  ;;  %v1017_v42 = vsub.f32 %v1015_v38, %v1016_v40 }
 0x21d   : > { %497 = vrot.lane.b32.xlu2 %v495_v29, %s4323_s24 }
 0x277   : > { %v498_v43 = vpop.permute.xlu2 %497 }
 0x278   : > { %500 = vst.msk [vmem:[#allocation2] sm:$0xff] %vm50_vm0, %v498_v43  ;;  %v704_v44 = vsel %vm50_vm0, %v498_v43, 0  ;;  %v1012_v43 = vand.u32 4294901760, %v1011_v41 }
 0x279   : > { %v726_v45 = vand.u32 4294901760, %v704_v44 }
 0x27a   : > { %1013 = vmatpush.msra.mxu1 %v1012_v43 }
 0x27b   : > { %v727_v46 = vsub.f32 %v704_v44, %v726_v45  ;;  %772 = vmatmul.f32.vlgmr.msra.gmra.mxu3 %v726_v45  ;;  %v1018_v44 = vand.u32 4294901760, %v1017_v42 }
 0x27c   : > { %1080 = vmatpush.msra.mxu3 %v979_v35 }
 0x27d   : > { %v728_v48 = vand.u32 4294901760, %v727_v46  ;;  %802 = vmatmul.f32.vlgmr.msrb.gmra.mxu0 %v727_v46  ;;  %1019 = vmatpush.msra.mxu1 %v1018_v44 }
 0x27e   : > { %1082 = vmatpush.msra.mxu3 %v981_v36 }
 0x27f   : > { %v729_v49 = vsub.f32 %v727_v46, %v728_v48  ;;  %829 = vmatmul.f32.vlgmr.msrb.gmra.mxu1 %v728_v48  ;;  %v958_v48 = vld [vmem:[%s5150_s9 + $0x8] sm:$0xff] }
 0x281   : > { %v730_v50 = vand.u32 4294901760, %v729_v49  ;;  %v983_v49 = vand.u32 4294901760, %v958_v48 }
 0x283   : > { %731 = vmatmul.f32.vlgmr.msra.gmra.mxu2 %v730_v50  ;;  %887 = vmatmul.f32.vlgmr.msrb.gmra.mxu3 %v726_v45  ;;  %v957_v50 = vld [vmem:[%s5150_s9] sm:$0xff]  ;;  %v1021_v51 = vsub.f32 %v958_v48, %v983_v49 }
 0x284   : > { %1051 = vmatpush.msra.mxu2 %v1009_v37  ;;  %v985_v52 = vand.u32 4294901760, %v957_v50  ;;  %1084 = vmatpush.msra.mxu3 %v983_v49 }
 0x285   : > { %984 = vmatpush.msra.mxu0 %v983_v49  ;;  %v1022_v53 = vand.u32 4294901760, %v1021_v51 }
 0x286   : > { %1054 = vmatpush.msra.mxu2 %v1015_v38  ;;  %v1027_v54 = vsub.f32 %v957_v50, %v985_v52  ;;  %1086 = vmatpush.msra.mxu3 %v985_v52 }
 0x287   : > { %986 = vmatpush.msra.mxu0 %v985_v52  ;;  %v1023_v55 = vsub.f32 %v1021_v51, %v1022_v53 }
 0x288   : > { %1057 = vmatpush.msra.mxu2 %v1021_v51  ;;  %v1028_v56 = vand.u32 4294901760, %v1027_v54 }
 0x289   : > { %1109 = vmatpush.msrb.mxu0 %v1010_v39  ;;  %v1024_v57 = vand.u32 4294901760, %v1023_v55 }
 0x28a   : > { %1060 = vmatpush.msra.mxu2 %v1027_v54  ;;  %v1029_v58 = vsub.f32 %v1027_v54, %v1028_v56 }
 0x28b   : > { %862 = vmatmul.f32.vlgmr.msrb.gmra.mxu2 %v726_v45  ;;  %1113 = vmatpush.msrb.mxu0 %v1016_v40 }
 0x28c   : > { %1025 = vmatpush.msra.mxu1 %v1024_v57  ;;  %v1030_v59 = vand.u32 4294901760, %v1029_v58 }
 0x28d   : > { %1117 = vmatpush.msrb.mxu0 %v1022_v53 }
 0x28e   : > { %v920_v28 = vpop.permute.xlu0 %919  ;;  %1031 = vmatpush.msra.mxu1 %v1030_v59 }
 0x28f   : > { %1121 = vmatpush.msrb.mxu0 %v1028_v56  ;;  %v4722_v56 = vld [vmem:[%s5142_s1 + $0x20] sm:$0xff] }
 0x290   : > { %1140 = vmatpush.msrb.mxu1 %v979_v35  ;;  %v4708_v35 = vld [vmem:[%s5142_s1 + $0x18] sm:$0xff] }
 0x291   : > { %v1616_v40 = vsel %vm50_vm0, %v4708_v35, 0 }
 0x292   : > { %1142 = vmatpush.msrb.mxu1 %v981_v36 }
 0x294   : > { %1144 = vmatpush.msrb.mxu1 %v983_v49 }
 0x296   : > { %1146 = vmatpush.msrb.mxu1 %v985_v52 }
 0x2fa   : > { %v803_v2 = vpop.f32.mrf.mxu0 }
 0x2fc   : > { %v830_v4 = vpop.f32.mrf.mxu1 }
 0x2fe   : > { %v773_v62 = vpop.f32.mrf.mxu3 }
 0x306   : > { %v732_v63 = vpop.f32.mrf.mxu2  ;;  %v888_v9 = vpop.f32.mrf.mxu3 }
 0x307   : > { %v733_v0 = vadd.f32 %v732_v63, %v702_v61 }
 0x309   : > { %v774_v1 = vadd.f32 %v773_v62, %v733_v0 }
 0x30b   : > { %v804_v3 = vadd.f32 %v803_v2, %v774_v1 }
 0x30d   : > { %v831_v5 = vadd.f32 %v830_v4, %v804_v3  ;;  %v4680_v3 = vld [vmem:[%s5142_s1] sm:$0xff] }
 0x30e   : > { %v863_v6 = vpop.f32.mrf.mxu2  ;;  %v1163_v4 = vsel %vm50_vm0, %v4680_v3, 0 }
 0x30f   : > { %v864_v7 = vadd.f32 %v863_v6, %v831_v5  ;;  %v1180_v5 = vand.u32 4294901760, %v1163_v4 }
 0x311   : > { %v889_v10 = vadd.f32 %v888_v9, %v864_v7  ;;  %v1207_v6 = vsub.f32 %v1163_v4, %v1180_v5  ;;  %1181 = vmatpush.xpose.msrb.mxu2 %v1180_v5 }
 0x313   : > { %v895_v11 = vadd.f32 %v4226_v8, %v889_v10  ;;  %v1208_v7 = vand.u32 4294901760, %v1207_v6  ;;  %v4687_v10 = vld [vmem:[%s5142_s1 + $0x8] sm:$0xff] }
 0x315   : > { %4237 = vtanh.f32 %v895_v11  ;;  %v4203_v13 = vmul.f32 -1.442695, %v895_v11  ;;  %v1209_v8 = vsub.f32 %v1207_v6, %v1208_v7  ;;  %v1314_v11 = vsel %vm50_vm0, %v4687_v10, 0 }
 0x317   : > { %4239 = vpow2.f32 %v4203_v13  ;;  %v1210_v9 = vand.u32 4294901760, %v1209_v8 }
 0x319   : > { %1211 = vmatpush.xpose.msrb.mxu3 %v1210_v9 }
 0x31b   : > { %v4238_v12 = vpop.eup %4237 }
 0x31c   : > { %924 = vrot.lane.b32.xlu2 %v4238_v12, %s4322_s23  ;;  %v1331_v12 = vand.u32 4294901760, %v1314_v11 }
 0x31d   : > { %v4240_v14 = vpop.eup %4239 }
 0x31e   : > { %v901_v15 = vadd.f32 1.0, %v4240_v14  ;;  %v1358_v13 = vsub.f32 %v1314_v11, %v1331_v12 }
 0x320   : > { %4241 = vrcp.f32 %v901_v15  ;;  %v913_v21 = vand.u32 2147483648, %v901_v15  ;;  %vm907_vm6 = vweird.f32 %v901_v15  ;;  %v911_v22 = vand.u32 2147483647, %v901_v15 }
 0x321   : > { %v1359_v14 = vand.u32 4294901760, %v1358_v13 }
 0x322   : > { %v914_v24 = vor.u32 1.1754944e-38, %v913_v21  ;;  %vm912_vm8 = vcmp.eq.f32.partialorder %v911_v22, 8.507059e+37 }
 0x326   : > { %v4242_v16 = vpop.eup %4241 }
 0x327   : > { %v903_v17 = vmul.f32 %v4242_v16, %v901_v15  ;;  %vm908_vm5 = vweird.f32 %v4242_v16  ;;  %v1360_v15 = vsub.f32 %v1358_v13, %v1359_v14 }
 0x328   : > { %vm909_vm7 = vmor %vm907_vm6, %vm908_vm5 }
 0x329   : > { %v904_v18 = vsub.f32 1.0, %v903_v17  ;;  %v4227_v17 = vld [vmem:[%s5151_s10] ss:$0 sm:$0xff] }
 0x32b   : > { %v905_v19 = vmul.f32 %v4242_v16, %v904_v18  ;;  %v4697_v18 = vld [vmem:[%s5142_s1 + $0x10] sm:$0xff] }
 0x32c   : > { %v1465_v22 = vsel %vm50_vm0, %v4697_v18, 0 }
 0x32d   : > { %v906_v20 = vadd.f32 %v4242_v16, %v905_v19 }
 0x32f   : > { %v910_v23 = vsel %vm909_vm7, %v4242_v16, %v906_v20  ;;  %v1361_v16 = vand.u32 4294901760, %v1360_v15 }
 0x330   : > { %v915_v25 = vsel %vm912_vm8, %v914_v24, %v910_v23 }
 0x331   : > { %v922_v29 = vmul.f32 %v920_v28, %v915_v25 }
 0x376   : > { %v925_v26 = vpop.permute.xlu2 %924 }
 0x377   : > { %v927_v27 = vmul.f32 %v925_v26, %v915_v25  ;;  %v1482_v26 = vand.u32 4294901760, %v1465_v22 }
 0x379   : > { %929 = vrot.lane.b32.xlu1 %v927_v27, %s4323_s24 }
 0x3eb   : > { %v930_v30 = vpop.permute.xlu1 %929 }
 0x3ec   : > { %v4640_v31 = vadd.f32 %v930_v30, %v922_v29 }
 0x3ee   : > { %4243 = vtanh.f32 %v4640_v31 }
 0x3f4   : > { %v4244_v32 = vpop.eup %4243 }
 0x3f5   : > { %935 = vrot.lane.b32.xlu2 %v4244_v32, %s4322_s23  ;;  %v4701_v32 = vsub.f32 %v1465_v22, %v1482_v26  ;;  %s4175_s23 = sshll.u32 (%p59_p0), %s4325_s16, 4  ;;  %s4176_s23 = int_to_ptr.vmem [resolvable:$true] %s4175_s23 }
 0x3f7   : > { %v1510_v38 = vand.u32 4294901760, %v4701_v32 }
 0x3f9   : > { %v1511_v44 = vsub.f32 %v4701_v32, %v1510_v38 }
 0x3fb   : > { %v1512_v51 = vand.u32 4294901760, %v1511_v44  ;;  %v4756_v44 = vld [vmem:[%s5142_s1 + $0x38] sm:$0xff] }
 0x44f   : > { %v936_v45 = vpop.permute.xlu2 %935 }
 0x450   : > { %v938_v46 = vmul.f32 %v936_v45, %v915_v25  ;;  %v1633_v45 = vand.u32 4294901760, %v1616_v40 }
 0x452   : > { %940 = vrot.lane.b32.xlu0 %v938_v46, %s4323_s24  ;;  %v1660_v52 = vsub.f32 %v1616_v40, %v1633_v45 }
 0x454   : > { %v1661_v58 = vand.u32 4294901760, %v1660_v52 }
 0x4c4   : > { %v941_v60 = vpop.permute.xlu0 %940 }
 0x4c5   : > { %943 = vst.msk [vmem:[#allocation2 + $0x8] sm:$0xff] %vm50_vm0, %v941_v60  ;;  %v965_v61 = vsel %vm50_vm0, %v941_v60, 0  ;;  %v1767_v60 = vsel %vm50_vm0, %v4722_v56, 0 }
 0x4c6   : > { %v4659_v62 = vand.u32 4294901760, %v965_v61 }
 0x4c8   : > { %v4662_v63 = vsub.f32 %v965_v61, %v4659_v62  ;;  %1033 = vmatmul.f32.vlgmr.msra.gmra.mxu1 %v4659_v62 }
 0x4c9   : > { %1257 = vmatpush.xpose.msra.mxu1 %v1180_v5 }
 0x4ca   : > { %1063 = vmatmul.f32.vlgmr.msra.gmra.mxu2 %v4662_v63  ;;  %v4667_v0 = vand.u32 4294901760, %v4662_v63 }
 0x4cb   : > { %1283 = vmatpush.xpose.msra.mxu2 %v1208_v7 }
 0x4cc   : > { %1090 = vmatmul.f32.vlgmr.msra.gmra.mxu3 %v4667_v0  ;;  %v990_v1 = vsub.f32 %v4662_v63, %v4667_v0 }
 0x4cd   : > { %1305 = vmatpush.xpose.msra.mxu3 %v1180_v5  ;;  %v1784_v5 = vand.u32 4294901760, %v1767_v60 }
 0x4ce   : > { %v4672_v2 = vand.u32 4294901760, %v990_v1  ;;  %v1662_v1 = vsub.f32 %v1660_v52, %v1661_v58 }
 0x4cf   : > { %v4730_v9 = vsub.f32 %v1767_v60, %v1784_v5 }
 0x4d0   : > { %992 = vmatmul.f32.vlgmr.msra.gmra.mxu0 %v4672_v2  ;;  %1148 = vmatmul.f32.vlgmr.msrb.gmra.mxu1 %v4659_v62  ;;  %v1663_v8 = vand.u32 4294901760, %v1662_v1 }
 0x4d1   : > { %1234 = vmatpush.xpose.msra.mxu0 %v1207_v6  ;;  %1362 = vmatpush.xpose.msrb.mxu1 %v1361_v16 }
 0x4d8   : > { %1123 = vmatmul.f32.vlgmr.msrb.gmra.mxu0 %v4659_v62 }
 0x4d9   : > { %1332 = vmatpush.xpose.msrb.mxu0 %v1331_v12 }
 0x545   : > { %v1034_v19 = vpop.f32.mrf.mxu1 }
 0x54d   : > { %v993_v20 = vpop.f32.mrf.mxu0  ;;  %v1064_v24 = vpop.f32.mrf.mxu2 }
 0x54e   : > { %v994_v21 = vadd.f32 %v4227_v17, %v993_v20  ;;  %v1149_v33 = vpop.f32.mrf.mxu1 }
 0x54f   : > { %v1091_v27 = vpop.f32.mrf.mxu3 }
 0x550   : > { %v1035_v23 = vadd.f32 %v1034_v19, %v994_v21 }
 0x552   : > { %v1065_v25 = vadd.f32 %v1064_v24, %v1035_v23 }
 0x554   : > { %v1092_v28 = vadd.f32 %v1091_v27, %v1065_v25  ;;  %v4745_v27 = vld [vmem:[%s5142_s1 + $0x30] sm:$0xff] }
 0x555   : > { %v1124_v29 = vpop.f32.mrf.mxu0 }
 0x556   : > { %v1125_v30 = vadd.f32 %v1124_v29, %v1092_v28 }
 0x558   : > { %v4703_v34 = vadd.f32 %v1149_v33, %v1125_v30 }
 0x55a   : > { %v1160_v36 = vsel %vm50_vm0, %v4703_v34, 0  ;;  %v1153_v37 = vrot.slane %v4703_v34, 1  ;;  %v1154_v55 = vrot.slane %v4703_v34, 2  ;;  %v1155_v59 = vrot.slane %v4703_v34, 3 }
 0x55b   : > { %v1182_v39 = vand.u32 4294901760, %v1160_v36  ;;  %v1157_v30 = vrot.slane %v4703_v34, 5  ;;  %v1159_v1 = vrot.slane %v4703_v34, 7 }
 0x55c   : > { %v1311_v41 = vsel %vm50_vm0, %v1153_v37, 0  ;;  %v1462_v61 = vsel %vm50_vm0, %v1154_v55, 0  ;;  %v1613_v4 = vsel %vm50_vm0, %v1155_v59, 0  ;;  %v1158_v59 = vrot.slane %v4703_v34, 6 }
 0x55d   : > { %1213 = vmatmul.f32.vlgmr.msrb.gmra.mxu3 %v1182_v39  ;;  %v1183_v42 = vsub.f32 %v1160_v36, %v1182_v39  ;;  %v1333_v43 = vand.u32 4294901760, %v1311_v41  ;;  %v1484_v6 = vand.u32 4294901760, %v1462_v61  ;;  %v1635_v7 = vand.u32 4294901760, %v1613_v4 }
 0x55e   : > { %1408 = vmatpush.xpose.msrb.mxu3 %v1331_v12  ;;  %v1915_v37 = vsel %vm50_vm0, %v1157_v30, 0 }
 0x55f   : > { %1237 = vmatmul.f32.vlgmr.msra.gmra.mxu0 %v1183_v42  ;;  %v1184_v46 = vand.u32 4294901760, %v1183_v42  ;;  %v1334_v48 = vsub.f32 %v1311_v41, %v1333_v43  ;;  %v1485_v11 = vsub.f32 %v1462_v61, %v1484_v6  ;;  %v1937_v40 = vand.u32 4294901760, %v1915_v37 }
 0x560   : > { %1434 = vmatpush.xpose.msra.mxu0 %v1359_v14  ;;  %v1812_v14 = vand.u32 4294901760, %v4730_v9 }
 0x561   : > { %1261 = vmatmul.f32.vlgmr.msra.gmra.mxu1 %v1184_v46  ;;  %v1185_v49 = vsub.f32 %v1183_v42, %v1184_v46  ;;  %v1335_v50 = vand.u32 4294901760, %v1334_v48  ;;  %v1486_v15 = vand.u32 4294901760, %v1485_v11 }
 0x562   : > { %1456 = vmatpush.xpose.msra.mxu1 %v1331_v12  ;;  %v4735_v12 = vld [vmem:[%s5142_s1 + $0x28] sm:$0xff]  ;;  %v1813_v19 = vsub.f32 %v4730_v9, %v1812_v14 }
 0x563   : > { %v1186_v53 = vand.u32 4294901760, %v1185_v49  ;;  %v1336_v54 = vsub.f32 %v1334_v48, %v1335_v50  ;;  %v1918_v16 = vsel %vm50_vm0, %v4735_v12, 0  ;;  %v1487_v21 = vsub.f32 %v1485_v11, %v1486_v15 }
 0x564   : > { %v1935_v20 = vand.u32 4294901760, %v1918_v16  ;;  %v1814_v23 = vand.u32 4294901760, %v1813_v19  ;;  %v2220_v49 = vsel %vm50_vm0, %v4756_v44, 0 }
 0x565   : > { %1187 = vmatmul.f32.vlgmr.msrb.gmra.mxu2 %v1186_v53  ;;  %1307 = vmatmul.f32.vlgmr.msra.gmra.mxu3 %v1182_v39  ;;  %v1337_v57 = vand.u32 4294901760, %v1336_v54  ;;  %v1488_v25 = vand.u32 4294901760, %v1487_v21 }
 0x566   : > { %1385 = vmatpush.xpose.msrb.mxu2 %v1358_v13  ;;  %1513 = vmatpush.xpose.msra.mxu3 %v1512_v51  ;;  %v1636_v13 = vsub.f32 %v1613_v4, %v1635_v7  ;;  %v1962_v24 = vsub.f32 %v1918_v16, %v1935_v20  ;;  %v2066_v4 = vsel %vm50_vm0, %v1158_v59, 0 }
 0x567   : > { %1338 = vmatmul.f32.vlgmr.msrb.gmra.mxu0 %v1337_v57 }
 0x568   : > { %1536 = vmatpush.xpose.msrb.mxu0 %v4701_v32  ;;  %v1637_v17 = vand.u32 4294901760, %v1636_v13  ;;  %v1963_v29 = vand.u32 4294901760, %v1962_v24  ;;  %v2069_v32 = vsel %vm50_vm0, %v4745_v27, 0 }
 0x569   : > { %1364 = vmatmul.f32.vlgmr.msrb.gmra.mxu1 %v1333_v43 }
 0x56a   : > { %1559 = vmatpush.xpose.msrb.mxu1 %v1482_v26  ;;  %v1638_v22 = vsub.f32 %v1636_v13, %v1637_v17  ;;  %v1964_v36 = vsub.f32 %v1962_v24, %v1963_v29 }
 0x56c   : > { %v1639_v28 = vand.u32 4294901760, %v1638_v22  ;;  %v1965_v41 = vand.u32 4294901760, %v1964_v36 }
 0x56d   : > { %1285 = vmatmul.f32.vlgmr.msra.gmra.mxu2 %v1182_v39  ;;  %1412 = vmatmul.f32.vlgmr.msrb.gmra.mxu3 %v1335_v50 }
 0x56e   : > { %1483 = vmatpush.xpose.msra.mxu2 %v1482_v26  ;;  %1607 = vmatpush.xpose.msrb.mxu3 %v1482_v26  ;;  %v1156_v26 = vrot.slane %v4703_v34, 4 }
 0x56f   : > { %1436 = vmatmul.f32.vlgmr.msra.gmra.mxu0 %v1333_v43 }
 0x570   : > { %1634 = vmatpush.xpose.msra.mxu0 %v1633_v45  ;;  %v1764_v33 = vsel %vm50_vm0, %v1156_v26, 0 }
 0x571   : > { %1458 = vmatmul.f32.vlgmr.msra.gmra.mxu1 %v1333_v43  ;;  %v1786_v39 = vand.u32 4294901760, %v1764_v33 }
 0x572   : > { %1664 = vmatpush.xpose.msra.mxu1 %v1663_v8 }
 0x573   : > { %v1787_v43 = vsub.f32 %v1764_v33, %v1786_v39 }
 0x575   : > { %1388 = vmatmul.f32.vlgmr.msrb.gmra.mxu2 %v1334_v48  ;;  %1515 = vmatmul.f32.vlgmr.msra.gmra.mxu3 %v1484_v6  ;;  %v1788_v48 = vand.u32 4294901760, %v1787_v43 }
 0x576   : > { %1585 = vmatpush.xpose.msrb.mxu2 %v1510_v38  ;;  %1710 = vmatpush.xpose.msra.mxu3 %v1633_v45  ;;  %v2086_v38 = vand.u32 4294901760, %v2069_v32 }
 0x577   : > { %1539 = vmatmul.f32.vlgmr.msrb.gmra.mxu0 %v1485_v11  ;;  %v1789_v53 = vsub.f32 %v1787_v43, %v1788_v48 }
 0x578   : > { %1736 = vmatpush.xpose.msrb.mxu0 %v1661_v58  ;;  %v2113_v42 = vsub.f32 %v2069_v32, %v2086_v38 }
 0x579   : > { %1563 = vmatmul.f32.vlgmr.msrb.gmra.mxu1 %v1486_v15  ;;  %v1790_v58 = vand.u32 4294901760, %v1789_v53 }
 0x57a   : > { %1758 = vmatpush.xpose.msrb.mxu1 %v1633_v45  ;;  %v1938_v45 = vsub.f32 %v1915_v37, %v1937_v40  ;;  %v2114_v46 = vand.u32 4294901760, %v2113_v42 }
 0x57c   : > { %v1939_v50 = vand.u32 4294901760, %v1938_v45  ;;  %v2115_v51 = vsub.f32 %v2113_v42, %v2114_v46 }
 0x57d   : > { %1489 = vmatmul.f32.vlgmr.msra.gmra.mxu2 %v1488_v25  ;;  %1609 = vmatmul.f32.vlgmr.msrb.gmra.mxu3 %v1484_v6 }
 0x57e   : > { %1687 = vmatpush.xpose.msra.mxu2 %v1660_v52  ;;  %1815 = vmatpush.xpose.msrb.mxu3 %v1814_v23  ;;  %v2237_v52 = vand.u32 4294901760, %v2220_v49  ;;  %v1940_v54 = vsub.f32 %v1938_v45, %v1939_v50  ;;  %v2116_v55 = vand.u32 4294901760, %v2115_v51 }
 0x57f   : > { %1640 = vmatmul.f32.vlgmr.msra.gmra.mxu0 %v1639_v28 }
 0x580   : > { %1838 = vmatpush.xpose.msra.mxu0 %v4730_v9  ;;  %v2264_v57 = vsub.f32 %v2220_v49, %v2237_v52  ;;  %v1941_v60 = vand.u32 4294901760, %v1940_v54 }
 0x581   : > { %1666 = vmatmul.f32.vlgmr.msra.gmra.mxu1 %v1635_v7 }
 0x582   : > { %1861 = vmatpush.xpose.msra.mxu1 %v1784_v5  ;;  %v2265_v61 = vand.u32 4294901760, %v2264_v57 }
 0x585   : > { %1587 = vmatmul.f32.vlgmr.msrb.gmra.mxu2 %v1484_v6  ;;  %1714 = vmatmul.f32.vlgmr.msra.gmra.mxu3 %v1637_v17  ;;  %v2217_v6 = vsel %vm50_vm0, %v1159_v1, 0 }
 0x586   : > { %1785 = vmatpush.xpose.msrb.mxu2 %v1784_v5  ;;  %1909 = vmatpush.xpose.msra.mxu3 %v1784_v5  ;;  %v2266_v5 = vsub.f32 %v2264_v57, %v2265_v61  ;;  %v2239_v8 = vand.u32 4294901760, %v2217_v6 }
 0x587   : > { %1738 = vmatmul.f32.vlgmr.msrb.gmra.mxu0 %v1635_v7 }
 0x588   : > { %1936 = vmatpush.xpose.msrb.mxu0 %v1935_v20  ;;  %v2267_v9 = vand.u32 4294901760, %v2266_v5  ;;  %v2240_v34 = vsub.f32 %v2217_v6, %v2239_v8 }
 0x589   : > { %1760 = vmatmul.f32.vlgmr.msrb.gmra.mxu1 %v1635_v7  ;;  %v2088_v7 = vand.u32 4294901760, %v2066_v4 }
 0x58a   : > { %1966 = vmatpush.xpose.msrb.mxu1 %v1965_v41 }
 0x58b   : > { %v2089_v11 = vsub.f32 %v2066_v4, %v2088_v7 }
 0x58d   : > { %1690 = vmatmul.f32.vlgmr.msra.gmra.mxu2 %v1636_v13  ;;  %1817 = vmatmul.f32.vlgmr.msrb.gmra.mxu3 %v1786_v39  ;;  %v2090_v13 = vand.u32 4294901760, %v2089_v11 }
 0x58e   : > { %1887 = vmatpush.xpose.msra.mxu2 %v1812_v14  ;;  %2012 = vmatpush.xpose.msrb.mxu3 %v1935_v20  ;;  %v2241_v14 = vand.u32 4294901760, %v2240_v34 }
 0x58f   : > { %1841 = vmatmul.f32.vlgmr.msra.gmra.mxu0 %v1787_v43  ;;  %v2091_v15 = vsub.f32 %v2089_v11, %v2090_v13 }
 0x590   : > { %2038 = vmatpush.xpose.msra.mxu0 %v1963_v29  ;;  %v2242_v16 = vsub.f32 %v2240_v34, %v2241_v14 }
 0x591   : > { %1865 = vmatmul.f32.vlgmr.msra.gmra.mxu1 %v1788_v48  ;;  %v2092_v17 = vand.u32 4294901760, %v2091_v15 }
 0x592   : > { %2060 = vmatpush.xpose.msra.mxu1 %v1935_v20  ;;  %v2243_v19 = vand.u32 4294901760, %v2242_v16  ;;  %v4765_v20 = vand.u32 4294901760, %v4680_v3 }
 0x595   : > { %1791 = vmatmul.f32.vlgmr.msrb.gmra.mxu2 %v1790_v58  ;;  %1911 = vmatmul.f32.vlgmr.msra.gmra.mxu3 %v1786_v39 }
 0x596   : > { %1989 = vmatpush.xpose.msrb.mxu2 %v1962_v24  ;;  %2117 = vmatpush.xpose.msra.mxu3 %v2116_v55 }
 0x597   : > { %1942 = vmatmul.f32.vlgmr.msrb.gmra.mxu0 %v1941_v60 }
 0x598   : > { %2140 = vmatpush.xpose.msrb.mxu0 %v2113_v42 }
 0x599   : > { %1968 = vmatmul.f32.vlgmr.msrb.gmra.mxu1 %v1937_v40 }
 0x59a   : > { %2163 = vmatpush.xpose.msrb.mxu1 %v2086_v38 }
 0x59d   : > { %1889 = vmatmul.f32.vlgmr.msra.gmra.mxu2 %v1786_v39  ;;  %2016 = vmatmul.f32.vlgmr.msrb.gmra.mxu3 %v1939_v50 }
 0x59e   : > { %2087 = vmatpush.xpose.msra.mxu2 %v2086_v38  ;;  %2211 = vmatpush.xpose.msrb.mxu3 %v2086_v38 }
 0x59f   : > { %2040 = vmatmul.f32.vlgmr.msra.gmra.mxu0 %v1937_v40 }
 0x5a0   : > { %2238 = vmatpush.xpose.msra.mxu0 %v2237_v52 }
 0x5a1   : > { %2062 = vmatmul.f32.vlgmr.msra.gmra.mxu1 %v1937_v40 }
 0x5a2   : > { %2268 = vmatpush.xpose.msra.mxu1 %v2267_v9 }
 0x5a5   : > { %1992 = vmatmul.f32.vlgmr.msrb.gmra.mxu2 %v1938_v45  ;;  %2119 = vmatmul.f32.vlgmr.msra.gmra.mxu3 %v2088_v7 }
 0x5a6   : > { %2189 = vmatpush.xpose.msrb.mxu2 %v2114_v46  ;;  %2314 = vmatpush.xpose.msra.mxu3 %v2237_v52 }
 0x5a7   : > { %2143 = vmatmul.f32.vlgmr.msrb.gmra.mxu0 %v2089_v11 }
 0x5a8   : > { %2340 = vmatpush.xpose.msrb.mxu0 %v2265_v61 }
 0x5a9   : > { %2167 = vmatmul.f32.vlgmr.msrb.gmra.mxu1 %v2090_v13 }
 0x5aa   : > { %2362 = vmatpush.xpose.msrb.mxu1 %v2237_v52 }
 0x5ad   : > { %2093 = vmatmul.f32.vlgmr.msra.gmra.mxu2 %v2092_v17  ;;  %2213 = vmatmul.f32.vlgmr.msrb.gmra.mxu3 %v2088_v7 }
 0x5ae   : > { %2291 = vmatpush.xpose.msra.mxu2 %v2264_v57 }
 0x5af   : > { %2244 = vmatmul.f32.vlgmr.msra.gmra.mxu0 %v2243_v19 }
 0x5b1   : > { %2270 = vmatmul.f32.vlgmr.msra.gmra.mxu1 %v2239_v8 }
 0x5b2   : > { %2657 = vmatpush.msra.mxu1 %v4765_v20 }
 0x5b5   : > { %2191 = vmatmul.f32.vlgmr.msrb.gmra.mxu2 %v2088_v7  ;;  %2318 = vmatmul.f32.vlgmr.msra.gmra.mxu3 %v2241_v14 }
 0x5b6   : > { %2581 = vmatpush.msrb.mxu2 %v4765_v20 }
 0x5b7   : > { %2342 = vmatmul.f32.vlgmr.msrb.gmra.mxu0 %v2239_v8 }
 0x5b9   : > { %2364 = vmatmul.f32.vlgmr.msrb.gmra.mxu1 %v2239_v8 }
 0x5bd   : > { %2294 = vmatmul.f32.vlgmr.msra.gmra.mxu2 %v2240_v34 }
 0x5dc   : > { %v1238_v21 = vpop.f32.mrf.mxu0 }
 0x5de   : > { %v1262_v22 = vpop.f32.mrf.mxu1 }
 0x5e0   : > { %v1214_v23 = vpop.f32.mrf.mxu3 }
 0x5e4   : > { %v1339_v24 = vpop.f32.mrf.mxu0 }
 0x5e6   : > { %v1365_v25 = vpop.f32.mrf.mxu1 }
 0x5e7   : > { %v1366_v42 = vadd.f32 %v1365_v25, %v1339_v24 }
 0x5e8   : > { %v1188_v26 = vpop.f32.mrf.mxu2  ;;  %v1308_v28 = vpop.f32.mrf.mxu3 }
 0x5e9   : > { %v1215_v29 = vadd.f32 %v1214_v23, %v1188_v26 }
 0x5eb   : > { %v1239_v30 = vadd.f32 %v1238_v21, %v1215_v29 }
 0x5ec   : > { %v1437_v32 = vpop.f32.mrf.mxu0 }
 0x5ed   : > { %v1263_v33 = vadd.f32 %v1262_v22, %v1239_v30 }
 0x5ee   : > { %v1459_v39 = vpop.f32.mrf.mxu1 }
 0x5f0   : > { %v1286_v36 = vpop.f32.mrf.mxu2  ;;  %v1413_v37 = vpop.f32.mrf.mxu3 }
 0x5f1   : > { %v1287_v38 = vadd.f32 %v1286_v36, %v1263_v33 }
 0x5f3   : > { %v4769_v40 = vadd.f32 %v1308_v28, %v1287_v38 }
 0x5f4   : > { %v1540_v48 = vpop.f32.mrf.mxu0 }
 0x5f5   : > { %v2369_v41 = vsel %vm2368_vm9, %v4769_v40, -inf }
 0x5f6   : > { %2370 = vmax.xlane.f32.xlu1 %v2369_v41  ;;  %v1564_v50 = vpop.f32.mrf.mxu1 }
 0x5f8   : > { %v1389_v43 = vpop.f32.mrf.mxu2  ;;  %v1516_v45 = vpop.f32.mrf.mxu3 }
 0x5f9   : > { %v1390_v46 = vadd.f32 %v1389_v43, %v1366_v42 }
 0x5fb   : > { %v1414_v49 = vadd.f32 %v1413_v37, %v1390_v46 }
 0x5fc   : > { %v1641_v59 = vpop.f32.mrf.mxu0 }
 0x5fd   : > { %v1438_v51 = vadd.f32 %v1437_v32, %v1414_v49 }
 0x5fe   : > { %v1667_v60 = vpop.f32.mrf.mxu1 }
 0x5ff   : > { %v4773_v52 = vadd.f32 %v1459_v39, %v1438_v51  ;;  %v1668_v9 = vadd.f32 %v1667_v60, %v1641_v59 }
 0x600   : > { %v1490_v53 = vpop.f32.mrf.mxu2  ;;  %v1610_v57 = vpop.f32.mrf.mxu3 }
 0x601   : > { %v1517_v54 = vadd.f32 %v1516_v45, %v1490_v53  ;;  %v2372_v55 = vsel %vm2368_vm9, %v4773_v52, -inf }
 0x602   : > { %2373 = vmax.xlane.f32.xlu2 %v2372_v55 }
 0x603   : > { %v1541_v58 = vadd.f32 %v1540_v48, %v1517_v54 }
 0x604   : > { %v1739_v8 = vpop.f32.mrf.mxu0 }
 0x605   : > { %v1565_v61 = vadd.f32 %v1564_v50, %v1541_v58 }
 0x606   : > { %v1761_v11 = vpop.f32.mrf.mxu1 }
 0x608   : > { %v1588_v1 = vpop.f32.mrf.mxu2  ;;  %v1715_v6 = vpop.f32.mrf.mxu3 }
 0x609   : > { %v1589_v4 = vadd.f32 %v1588_v1, %v1565_v61 }
 0x60b   : > { %v4777_v5 = vadd.f32 %v1610_v57, %v1589_v4 }
 0x60c   : > { %v1842_v19 = vpop.f32.mrf.mxu0 }
 0x60d   : > { %v2375_v7 = vsel %vm2368_vm9, %v4777_v5, -inf }
 0x60e   : > { %2376 = vmax.xlane.f32.xlu0 %v2375_v7  ;;  %v1866_v24 = vpop.f32.mrf.mxu1 }
 0x610   : > { %v1691_v34 = vpop.f32.mrf.mxu2  ;;  %v1818_v16 = vpop.f32.mrf.mxu3 }
 0x611   : > { %v1692_v13 = vadd.f32 %v1691_v34, %v1668_v9 }
 0x613   : > { %v1716_v14 = vadd.f32 %v1715_v6, %v1692_v13 }
 0x614   : > { %v1943_v32 = vpop.f32.mrf.mxu0 }
 0x615   : > { %v1740_v15 = vadd.f32 %v1739_v8, %v1716_v14 }
 0x616   : > { %v1969_v36 = vpop.f32.mrf.mxu1 }
 0x617   : > { %v4781_v17 = vadd.f32 %v1761_v11, %v1740_v15  ;;  %v1970_v38 = vadd.f32 %v1969_v36, %v1943_v32 }
 0x618   : > { %v1792_v21 = vpop.f32.mrf.mxu2  ;;  %v1912_v28 = vpop.f32.mrf.mxu3 }
 0x619   : > { %v1819_v22 = vadd.f32 %v1818_v16, %v1792_v21  ;;  %v2378_v23 = vsel %vm2368_vm9, %v4781_v17, -inf }
 0x61a   : > { %2379 = vmax.xlane.f32.xlu2 %v2378_v23 }
 0x61b   : > { %v1843_v25 = vadd.f32 %v1842_v19, %v1819_v22 }
 0x61c   : > { %v2041_v45 = vpop.f32.mrf.mxu0 }
 0x61d   : > { %v1867_v26 = vadd.f32 %v1866_v24, %v1843_v25 }
 0x61e   : > { %v2063_v48 = vpop.f32.mrf.mxu1 }
 0x620   : > { %v1890_v29 = vpop.f32.mrf.mxu2  ;;  %v2017_v42 = vpop.f32.mrf.mxu3 }
 0x621   : > { %v1891_v30 = vadd.f32 %v1890_v29, %v1867_v26 }
 0x623   : > { %v4785_v33 = vadd.f32 %v1912_v28, %v1891_v30 }
 0x624   : > { %v2144_v59 = vpop.f32.mrf.mxu0 }
 0x625   : > { %v2381_v37 = vsel %vm2368_vm9, %v4785_v33, -inf }
 0x626   : > { %2382 = vmax.xlane.f32.xlu1 %v2381_v37  ;;  %v2168_v55 = vpop.f32.mrf.mxu1 }
 0x628   : > { %v1993_v39 = vpop.f32.mrf.mxu2  ;;  %v2120_v53 = vpop.f32.mrf.mxu3 }
 0x629   : > { %v1994_v41 = vadd.f32 %v1993_v39, %v1970_v38 }
 0x62b   : > { %v2018_v43 = vadd.f32 %v2017_v42, %v1994_v41 }
 0x62c   : > { %v2245_v13 = vpop.f32.mrf.mxu0 }
 0x62d   : > { %v2042_v46 = vadd.f32 %v2041_v45, %v2018_v43 }
 0x62e   : > { %v2271_v8 = vpop.f32.mrf.mxu1 }
 0x62f   : > { %v4789_v49 = vadd.f32 %v2063_v48, %v2042_v46  ;;  %v2272_v15 = vadd.f32 %v2271_v8, %v2245_v13 }
 0x630   : > { %v2094_v51 = vpop.f32.mrf.mxu2  ;;  %v2214_v4 = vpop.f32.mrf.mxu3 }
 0x631   : > { %v2384_v50 = vsel %vm2368_vm9, %v4789_v49, -inf  ;;  %v2121_v58 = vadd.f32 %v2120_v53, %v2094_v51 }
 0x632   : > { %2385 = vmax.xlane.f32.xlu0 %v2384_v50 }
 0x633   : > { %v2145_v1 = vadd.f32 %v2144_v59, %v2121_v58 }
 0x634   : > { %v2343_v26 = vpop.f32.mrf.mxu0 }
 0x635   : > { %v2169_v6 = vadd.f32 %v2168_v55, %v2145_v1 }
 0x636   : > { %v2365_v32 = vpop.f32.mrf.mxu1 }
 0x638   : > { %v2192_v60 = vpop.f32.mrf.mxu2  ;;  %v2319_v22 = vpop.f32.mrf.mxu3 }
 0x639   : > { %v2193_v9 = vadd.f32 %v2192_v60, %v2169_v6  ;;  %v4836_v60 = vand.u32 4294901760, %v4687_v10 }
 0x63b   : > { %v4799_v21 = vadd.f32 %v2214_v4, %v2193_v9 }
 0x63d   : > { %v2387_v24 = vsel %vm2368_vm9, %v4799_v21, -inf }
 0x640   : > { %v2295_v14 = vpop.f32.mrf.mxu2 }
 0x641   : > { %v2296_v19 = vadd.f32 %v2295_v14, %v2272_v15 }
 0x643   : > { %v2320_v23 = vadd.f32 %v2319_v22, %v2296_v19 }
 0x645   : > { %v2344_v29 = vadd.f32 %v2343_v26, %v2320_v23 }
 0x647   : > { %v4808_v37 = vadd.f32 %v2365_v32, %v2344_v29 }
 0x649   : > { %v2390_v38 = vsel %vm2368_vm9, %v4808_v37, -inf }
 0x669   : > { %v2371_v54 = vpop.xlane.xlu1 %2370 }
 0x66a   : > { %v2393_v57 = vsub.f32 %v4769_v40, %v2371_v54 }
 0x66c   : > { %v2401_v61 = vmul.f32 1.442695, %v2393_v57 }
 0x66e   : > { %4245 = vpow2.f32 %v2401_v61 }
 0x674   : > { %v4794_v7 = vpop.eup %4245 }
 0x675   : > { %v2374_v11 = vpop.xlane.xlu2 %2373  ;;  %v2417_v34 = vsel %vm2368_vm9, %v4794_v7, 0.0 }
 0x676   : > { %v2394_v40 = vsub.f32 %v4773_v52, %v2374_v11  ;;  %2418 = vadd.xlane.f32.xlu2 %v2417_v34 }
 0x678   : > { %v2403_v16 = vmul.f32 1.442695, %v2394_v40 }
 0x67a   : > { %4247 = vpow2.f32 %v2403_v16 }
 0x67e   : > { %2388 = vmax.xlane.f32.xlu2 %v2387_v24 }
 0x680   : > { %v4803_v25 = vpop.eup %4247 }
 0x681   : > { %v2377_v28 = vpop.xlane.xlu0 %2376  ;;  %v2420_v52 = vsel %vm2368_vm9, %v4803_v25, 0.0 }
 0x682   : > { %v2395_v30 = vsub.f32 %v4777_v5, %v2377_v28  ;;  %2421 = vadd.xlane.f32.xlu1 %v2420_v52 }
 0x684   : > { %v2405_v36 = vmul.f32 1.442695, %v2395_v30 }
 0x686   : > { %4249 = vpow2.f32 %v2405_v36 }
 0x68a   : > { %2391 = vmax.xlane.f32.xlu1 %v2390_v38 }
 0x68c   : > { %v4812_v39 = vpop.eup %4249 }
 0x68d   : > { %v2380_v41 = vpop.xlane.xlu2 %2379  ;;  %v2423_v42 = vsel %vm2368_vm9, %v4812_v39, 0.0 }
 0x68e   : > { %v2396_v43 = vsub.f32 %v4781_v17, %v2380_v41  ;;  %2424 = vadd.xlane.f32.xlu0 %v2423_v42 }
 0x690   : > { %v2407_v5 = vmul.f32 1.442695, %v2396_v43 }
 0x692   : > { %4251 = vpow2.f32 %v2407_v5 }
 0x698   : > { %v4817_v45 = vpop.eup %4251 }
 0x699   : > { %v2383_v46 = vpop.xlane.xlu1 %2382  ;;  %v2426_v48 = vsel %vm2368_vm9, %v4817_v45, 0.0 }
 0x69a   : > { %v2397_v50 = vsub.f32 %v4785_v33, %v2383_v46  ;;  %2427 = vadd.xlane.f32.xlu2 %v2426_v48  ;;  %v2607_v33 = vsub.f32 %v4680_v3, %v4765_v20 }
 0x69c   : > { %v2409_v51 = vmul.f32 1.442695, %v2397_v50  ;;  %2634 = vmatpush.msra.mxu0 %v2607_v33 }
 0x69e   : > { %4253 = vpow2.f32 %v2409_v51  ;;  %2730 = vmatpush.msrb.mxu0 %v4836_v60 }
 0x6a4   : > { %v4822_v53 = vpop.eup %4253 }
 0x6a5   : > { %v2386_v54 = vpop.xlane.xlu0 %2385  ;;  %v2429_v17 = vsel %vm2368_vm9, %v4822_v53, 0.0 }
 0x6a6   : > { %v2398_v55 = vsub.f32 %v4789_v49, %v2386_v54  ;;  %2430 = vadd.xlane.f32.xlu0 %v2429_v17  ;;  %v2608_v49 = vand.u32 4294901760, %v2607_v33 }
 0x6a8   : > { %v2411_v57 = vmul.f32 1.442695, %v2398_v55  ;;  %v2609_v61 = vsub.f32 %v2607_v33, %v2608_v49  ;;  %2683 = vmatpush.msra.mxu2 %v2608_v49 }
 0x6aa   : > { %4255 = vpow2.f32 %v2411_v57  ;;  %v2610_v1 = vand.u32 4294901760, %v2609_v61 }
 0x6ac   : > { %2611 = vmatpush.msrb.mxu3 %v2610_v1 }
 0x6ae   : > { %2705 = vmatpush.msra.mxu3 %v4765_v20 }
 0x6b0   : > { %v4827_v58 = vpop.eup %4255 }
 0x6b1   : > { %v2432_v59 = vsel %vm2368_vm9, %v4827_v58, 0.0 }
 0x6b2   : > { %2433 = vadd.xlane.f32.xlu1 %v2432_v59 }
 0x6cb   : > { %502 = vrot.lane.b32.xlu1 %v4551_v47, %s4324_s22  ;;  %v4842_v47 = vsub.f32 %v4687_v10, %v4836_v60  ;;  %v4848_v10 = vand.u32 4294901760, %v4697_v18 }
 0x6cd   : > { %v2757_v6 = vand.u32 4294901760, %v4842_v47  ;;  %v4852_v26 = vsub.f32 %v4697_v18, %v4848_v10 }
 0x6cf   : > { %v2758_v34 = vsub.f32 %v4842_v47, %v2757_v6  ;;  %v2906_v38 = vand.u32 4294901760, %v4852_v26 }
 0x6d1   : > { %v2759_v15 = vand.u32 4294901760, %v2758_v34  ;;  %v2907_v50 = vsub.f32 %v4852_v26, %v2906_v38 }
 0x6d3   : > { %2760 = vmatpush.msrb.mxu1 %v2759_v15  ;;  %v2908_v33 = vand.u32 4294901760, %v2907_v50  ;;  %v4902_v50 = vand.u32 4294901760, %v4735_v12 }
 0x6e9   : > { %v2419_v4 = vpop.xlane.xlu2 %2418 }
 0x6ea   : > { %4257 = vrcp.f32 %v2419_v4  ;;  %v2452_v14 = vand.u32 2147483648, %v2419_v4  ;;  %v2450_v20 = vand.u32 2147483647, %v2419_v4  ;;  %vm2446_vm11 = vweird.f32 %v2419_v4 }
 0x6ec   : > { %vm2451_vm13 = vcmp.eq.f32.partialorder %v2450_v20, 8.507059e+37 }
 0x6f0   : > { %v4258_v3 = vpop.eup %4257 }
 0x6f1   : > { %v2442_v8 = vmul.f32 %v4258_v3, %v2419_v4  ;;  %v2389_v9 = vpop.xlane.xlu2 %2388  ;;  %vm2447_vm10 = vweird.f32 %v4258_v3 }
 0x6f2   : > { %v2399_v11 = vsub.f32 %v4799_v21, %v2389_v9  ;;  %vm2448_vm12 = vmor %vm2446_vm11, %vm2447_vm10  ;;  %v2453_v21 = vor.u32 1.1754944e-38, %v2452_v14  ;;  %v4883_v14 = vand.u32 4294901760, %v4722_v56 }
 0x6f3   : > { %v2443_v13 = vsub.f32 1.0, %v2442_v8 }
 0x6f4   : > { %v2413_v40 = vmul.f32 1.442695, %v2399_v11 }
 0x6f5   : > { %v2444_v16 = vmul.f32 %v4258_v3, %v2443_v13  ;;  %v2422_v19 = vpop.xlane.xlu1 %2421 }
 0x6f6   : > { %4259 = vpow2.f32 %v2413_v40  ;;  %v2467_v46 = vand.u32 2147483648, %v2422_v19  ;;  %v2465_v54 = vand.u32 2147483647, %v2422_v19  ;;  %vm2461_vm1 = vweird.f32 %v2422_v19 }
 0x6f7   : > { %v2445_v22 = vadd.f32 %v4258_v3, %v2444_v16  ;;  %4261 = vrcp.f32 %v2422_v19 }
 0x6f8   : > { %v2468_v57 = vor.u32 1.1754944e-38, %v2467_v46  ;;  %vm2466_vm3 = vcmp.eq.f32.partialorder %v2465_v54, 8.507059e+37 }
 0x6f9   : > { %v2449_v23 = vsel %vm2448_vm12, %v4258_v3, %v2445_v22 }
 0x6fa   : > { %v2454_v24 = vsel %vm2451_vm13, %v2453_v21, %v2449_v23 }
 0x6fb   : > { %v2455_v28 = vmul.f32 %v4794_v7, %v2454_v24 }
 0x6fc   : > { %v4855_v52 = vpop.eup %4259 }
 0x6fd   : > { %v4262_v29 = vpop.eup %4261  ;;  %v2392_v30 = vpop.xlane.xlu1 %2391  ;;  %v2435_v32 = vsel %vm2368_vm9, %v4855_v52, 0.0  ;;  %v2563_v36 = vsel %vm2561_vm14, %v2455_v28, 0  ;;  %v4893_v28 = vsub.f32 %v4722_v56, %v4883_v14 }
 0x6fe   : > { %v2457_v41 = vmul.f32 %v4262_v29, %v2422_v19  ;;  %v2400_v42 = vsub.f32 %v4808_v37, %v2392_v30  ;;  %2436 = vadd.xlane.f32.xlu2 %v2435_v32  ;;  %v2582_v43 = vand.u32 4294901760, %v2563_v36  ;;  %vm2462_vm15 = vweird.f32 %v4262_v29 }
 0x6ff   : > { %v4867_v37 = vand.u32 4294901760, %v4708_v35  ;;  %vm2463_vm2 = vmor %vm2461_vm1, %vm2462_vm15 }
 0x700   : > { %v2458_v18 = vsub.f32 1.0, %v2457_v41  ;;  %v2415_v5 = vmul.f32 1.442695, %v2400_v42  ;;  %2613 = vmatmul.f32.vlgmr.msrb.gmra.mxu3 %v2582_v43  ;;  %v2583_v7 = vsub.f32 %v2563_v36, %v2582_v43 }
 0x701   : > { %v2425_v48 = vpop.xlane.xlu0 %2424  ;;  %2806 = vmatpush.msrb.mxu3 %v4836_v60  ;;  %v4872_v4 = vsub.f32 %v4708_v35, %v4867_v37 }
 0x702   : > { %v2459_v51 = vmul.f32 %v4262_v29, %v2458_v18  ;;  %4263 = vpow2.f32 %v2415_v5  ;;  %2637 = vmatmul.f32.vlgmr.msra.gmra.mxu0 %v2583_v7  ;;  %v2584_v17 = vand.u32 4294901760, %v2583_v7  ;;  %v2480_v20 = vand.u32 2147483647, %v2425_v48 }
 0x703   : > { %4265 = vrcp.f32 %v2425_v48  ;;  %2832 = vmatpush.msra.mxu0 %v2757_v6  ;;  %v3055_v35 = vand.u32 4294901760, %v4872_v4  ;;  %vm2476_vm5 = vweird.f32 %v2425_v48 }
 0x704   : > { %v2460_v55 = vadd.f32 %v4262_v29, %v2459_v51  ;;  %2661 = vmatmul.f32.vlgmr.msra.gmra.mxu1 %v2584_v17  ;;  %v2585_v59 = vsub.f32 %v2583_v7, %v2584_v17  ;;  %vm2481_vm7 = vcmp.eq.f32.partialorder %v2480_v20, 8.507059e+37 }
 0x705   : > { %2854 = vmatpush.msra.mxu1 %v4836_v60 }
 0x706   : > { %v2464_v49 = vsel %vm2463_vm2, %v4262_v29, %v2460_v55  ;;  %v2586_v1 = vand.u32 4294901760, %v2585_v59 }
 0x707   : > { %v2469_v61 = vsel %vm2466_vm3, %v2468_v57, %v2464_v49 }
 0x708   : > { %v4874_v3 = vpop.eup %4263  ;;  %2707 = vmatmul.f32.vlgmr.msra.gmra.mxu3 %v2582_v43  ;;  %v2470_v6 = vmul.f32 %v4803_v25, %v2469_v61  ;;  %2587 = vmatmul.f32.vlgmr.msrb.gmra.mxu2 %v2586_v1  ;;  %v2482_v25 = vand.u32 2147483648, %v2425_v48 }
 0x709   : > { %v4266_v8 = vpop.eup %4265  ;;  %v2438_v9 = vsel %vm2368_vm9, %v4874_v3, 0.0  ;;  %2909 = vmatpush.msra.mxu3 %v2908_v33  ;;  %2783 = vmatpush.msrb.mxu2 %v4842_v47  ;;  %v3056_v47 = vsub.f32 %v4872_v4, %v3055_v35 }
 0x70a   : > { %v2472_v11 = vmul.f32 %v4266_v8, %v2425_v48  ;;  %2439 = vadd.xlane.f32.xlu0 %v2438_v9  ;;  %v2712_v60 = vsel %vm2561_vm14, %v2470_v6, 0  ;;  %vm2477_vm4 = vweird.f32 %v4266_v8  ;;  %v2483_v21 = vor.u32 1.1754944e-38, %v2482_v25 }
 0x70b   : > { %v2731_v34 = vand.u32 4294901760, %v2712_v60  ;;  %vm2478_vm6 = vmor %vm2476_vm5, %vm2477_vm4  ;;  %v3057_v32 = vand.u32 4294901760, %v3056_v47 }
 0x70c   : > { %v2473_v13 = vsub.f32 1.0, %v2472_v11 }
 0x70d   : > { %v2732_v40 = vsub.f32 %v2712_v60, %v2731_v34  ;;  %2762 = vmatmul.f32.vlgmr.msrb.gmra.mxu1 %v2731_v34  ;;  %v2428_v15 = vpop.xlane.xlu2 %2427 }
 0x70e   : > { %v2474_v16 = vmul.f32 %v4266_v8, %v2473_v13  ;;  %4267 = vrcp.f32 %v2428_v15  ;;  %2955 = vmatpush.msrb.mxu1 %v4848_v10  ;;  %v2497_v5 = vand.u32 2147483648, %v2428_v15  ;;  %v2495_v46 = vand.u32 2147483647, %v2428_v15 }
 0x70f   : > { %v2733_v19 = vand.u32 4294901760, %v2732_v40  ;;  %vm2491_vm9 = vweird.f32 %v2428_v15 }
 0x710   : > { %v2475_v22 = vadd.f32 %v4266_v8, %v2474_v16  ;;  %2685 = vmatmul.f32.vlgmr.msra.gmra.mxu2 %v2582_v43  ;;  %v2498_v17 = vor.u32 1.1754944e-38, %v2497_v5  ;;  %vm2496_vm11 = vcmp.eq.f32.partialorder %v2495_v46, 8.507059e+37  ;;  %v3474_v46 = vand.u32 4294901760, %v4745_v27  ;;  %v4279_v27 = vld [vmem:[%s5142_s1 + $0x30] sm:$0xff] }
 0x711   : > { %2810 = vmatmul.f32.vlgmr.msrb.gmra.mxu3 %v2733_v19  ;;  %v2734_v23 = vsub.f32 %v2732_v40, %v2733_v19  ;;  %2879 = vmatpush.msra.mxu2 %v4848_v10 }
 0x712   : > { %v2479_v24 = vsel %vm2478_vm6, %v4266_v8, %v2475_v22  ;;  %3003 = vmatpush.msrb.mxu3 %v4848_v10  ;;  %v3204_v10 = vand.u32 4294901760, %v4893_v28 }
 0x713   : > { %v2484_v29 = vsel %vm2481_vm7, %v2483_v21, %v2479_v24  ;;  %v2735_v30 = vand.u32 4294901760, %v2734_v23 }
 0x714   : > { %v4268_v36 = vpop.eup %4267  ;;  %v2485_v41 = vmul.f32 %v4812_v39, %v2484_v29 }
 0x715   : > { %v2487_v42 = vmul.f32 %v4268_v36, %v2428_v15  ;;  %2736 = vmatmul.f32.vlgmr.msrb.gmra.mxu0 %v2735_v30  ;;  %2856 = vmatmul.f32.vlgmr.msra.gmra.mxu1 %v2731_v34  ;;  %vm2492_vm8 = vweird.f32 %v4268_v36 }
 0x716   : > { %945 = vrot.lane.b32.xlu2 %v4640_v31, %s4324_s22  ;;  %v2861_v43 = vsel %vm2561_vm14, %v2485_v41, 0  ;;  %2932 = vmatpush.msrb.mxu0 %v4852_v26  ;;  %v3205_v31 = vsub.f32 %v4893_v28, %v3204_v10  ;;  %vm2493_vm10 = vmor %vm2491_vm9, %vm2492_vm8 }
 0x717   : > { %v2488_v56 = vsub.f32 1.0, %v2487_v42  ;;  %v2880_v18 = vand.u32 4294901760, %v2861_v43  ;;  %3058 = vmatpush.msra.mxu1 %v3057_v32 }
 0x718   : > { %2786 = vmatmul.f32.vlgmr.msrb.gmra.mxu2 %v2732_v40  ;;  %v3206_v26 = vand.u32 4294901760, %v3205_v31 }
 0x719   : > { %v2489_v7 = vmul.f32 %v4268_v36, %v2488_v56  ;;  %v2881_v39 = vsub.f32 %v2861_v43, %v2880_v18  ;;  %2911 = vmatmul.f32.vlgmr.msra.gmra.mxu3 %v2880_v18  ;;  %v2431_v48 = vpop.xlane.xlu0 %2430  ;;  %2981 = vmatpush.msrb.mxu2 %v2906_v38  ;;  %v4914_v38 = vsub.f32 %v4735_v12, %v4902_v50 }
 0x71a   : > { %4269 = vrcp.f32 %v2431_v48  ;;  %3104 = vmatpush.msra.mxu3 %v4867_v37  ;;  %v2512_v11 = vand.u32 2147483648, %v2431_v48  ;;  %vm2506_vm13 = vweird.f32 %v2431_v48 }
 0x71b   : > { %v2490_v51 = vadd.f32 %v4268_v36, %v2489_v7  ;;  %v2882_v54 = vand.u32 4294901760, %v2881_v39 }
 0x71c   : > { %v2513_v15 = vor.u32 1.1754944e-38, %v2512_v11 }
 0x71d   : > { %v2494_v55 = vsel %vm2493_vm10, %v4268_v36, %v2490_v51  ;;  %2834 = vmatmul.f32.vlgmr.msra.gmra.mxu0 %v2731_v34  ;;  %2959 = vmatmul.f32.vlgmr.msrb.gmra.mxu1 %v2882_v54  ;;  %v2883_v57 = vsub.f32 %v2881_v39, %v2882_v54  ;;  %v2510_v34 = vand.u32 2147483647, %v2431_v48  ;;  %v3501_v51 = vsub.f32 %v4279_v27, %v3474_v46 }
 0x71e   : > { %v2499_v59 = vsel %vm2496_vm11, %v2498_v17, %v2494_v55  ;;  %3028 = vmatpush.msra.mxu0 %v4867_v37  ;;  %3152 = vmatpush.msrb.mxu1 %v4867_v37  ;;  %v3353_v37 = vand.u32 4294901760, %v4914_v38  ;;  %v4947_v54 = vand.u32 4294901760, %v4756_v44 }
 0x71f   : > { %v2500_v33 = vmul.f32 %v4817_v45, %v2499_v59  ;;  %v2884_v49 = vand.u32 4294901760, %v2883_v57  ;;  %vm2511_vm1 = vcmp.eq.f32.partialorder %v2510_v34, 8.507059e+37  ;;  %v3502_v17 = vand.u32 4294901760, %v3501_v51 }
 0x720   : > { %v4270_v61 = vpop.eup %4269  ;;  %v3354_v13 = vsub.f32 %v4914_v38, %v3353_v37 }
 0x721   : > { %v2502_v1 = vmul.f32 %v4270_v61, %v2431_v48  ;;  %2885 = vmatmul.f32.vlgmr.msra.gmra.mxu2 %v2884_v49  ;;  %3005 = vmatmul.f32.vlgmr.msrb.gmra.mxu3 %v2880_v18  ;;  %v3010_v6 = vsel %vm2561_vm14, %v2500_v33, 0  ;;  %vm2507_vm12 = vweird.f32 %v4270_v61  ;;  %v3503_v55 = vsub.f32 %v3501_v51, %v3502_v17 }
 0x722   : > { %v3029_v8 = vand.u32 4294901760, %v3010_v6  ;;  %3081 = vmatpush.msra.mxu2 %v4872_v4  ;;  %3207 = vmatpush.msrb.mxu3 %v3206_v26  ;;  %vm2508_vm15 = vmor %vm2506_vm13, %vm2507_vm12  ;;  %v3355_v4 = vand.u32 4294901760, %v3354_v13  ;;  %v4952_v26 = vsub.f32 %v4756_v44, %v4947_v54  ;;  %v3760_v44 = vld [vmem:[%s5153_s12 + $0x10] sm:$0xff] }
 0x723   : > { %v2503_v9 = vsub.f32 1.0, %v2502_v1  ;;  %v3504_v57 = vand.u32 4294901760, %v3503_v55 }
 0x724   : > { %v3030_v60 = vsub.f32 %v3010_v6, %v3029_v8  ;;  %v3651_v33 = vand.u32 4294901760, %v4952_v26  ;;  %v3761_v6 = vld [vmem:[%s5153_s12 + $0x18] sm:$0xff] }
 0x725   : > { %v2504_v12 = vmul.f32 %v4270_v61, %v2503_v9  ;;  %2935 = vmatmul.f32.vlgmr.msrb.gmra.mxu0 %v2881_v39  ;;  %3060 = vmatmul.f32.vlgmr.msra.gmra.mxu1 %v3029_v8  ;;  %v2434_v45 = vpop.xlane.xlu1 %2433  ;;  %v4963_v34 = vand.u32 4294901760, %v3761_v6 }
 0x726   : > { %4271 = vrcp.f32 %v2434_v45  ;;  %3130 = vmatpush.msrb.mxu0 %v3055_v35  ;;  %3253 = vmatpush.msra.mxu1 %v4883_v14  ;;  %v3031_v40 = vand.u32 4294901760, %v3030_v60  ;;  %v2527_v30 = vand.u32 2147483648, %v2434_v45  ;;  %vm2521_vm3 = vweird.f32 %v2434_v45 }
 0x727   : > { %v2505_v25 = vadd.f32 %v4270_v61, %v2504_v12  ;;  %v3652_v1 = vsub.f32 %v4952_v26, %v3651_v33 }
 0x728   : > { %v3032_v20 = vsub.f32 %v3030_v60, %v3031_v40  ;;  %v2528_v42 = vor.u32 1.1754944e-38, %v2527_v30 }
 0x729   : > { %v2509_v16 = vsel %vm2508_vm15, %v4270_v61, %v2505_v25  ;;  %2983 = vmatmul.f32.vlgmr.msrb.gmra.mxu2 %v2880_v18  ;;  %3108 = vmatmul.f32.vlgmr.msra.gmra.mxu3 %v3031_v40  ;;  %v3653_v9 = vand.u32 4294901760, %v3652_v1  ;;  %v4968_v25 = vand.u32 4294901760, %v3760_v44  ;;  %vm3959_vm15 = vcmask 1042434  }
 0x72a   : > { %v2514_v19 = vsel %vm2511_vm1, %v2513_v15, %v2509_v16  ;;  %3177 = vmatpush.msrb.mxu2 %v4883_v14  ;;  %3301 = vmatpush.msra.mxu3 %v4883_v14  ;;  %v3033_v47 = vand.u32 4294901760, %v3032_v20  ;;  %v2525_v14 = vand.u32 2147483647, %v2434_v45  ;;  %v3758_v15 = vld [vmem:[%s5153_s12] sm:$0xff]  ;;  %v4974_v20 = vsub.f32 %v3761_v6, %v4963_v34 }
 0x72b   : > { %v2515_v35 = vmul.f32 %v4822_v53, %v2514_v19  ;;  %vm3962_vm1 = vcmask 1043459  }
 0x72c   : > { %v4272_v22 = vpop.eup %4271  ;;  %vm2526_vm5 = vcmp.eq.f32.partialorder %v2525_v14, 8.507059e+37 }
 0x72d   : > { %v2517_v21 = vmul.f32 %v4272_v22, %v2434_v45  ;;  %3034 = vmatmul.f32.vlgmr.msra.gmra.mxu0 %v3033_v47  ;;  %3154 = vmatmul.f32.vlgmr.msrb.gmra.mxu1 %v3029_v8  ;;  %v3159_v23 = vsel %vm2561_vm14, %v2515_v35, 0  ;;  %vm2522_vm2 = vweird.f32 %v4272_v22  ;;  %v3759_v45 = vld [vmem:[%s5153_s12 + $0x8] sm:$0xff]  ;;  %v4980_v47 = vsub.f32 %v3760_v44, %v4968_v25 }
 0x72e   : > { %v3178_v24 = vand.u32 4294901760, %v3159_v23  ;;  %3230 = vmatpush.msra.mxu0 %v4893_v28  ;;  %3356 = vmatpush.msrb.mxu1 %v3355_v4  ;;  %vm2523_vm4 = vmor %vm2521_vm3, %vm2522_vm2  ;;  %v4976_v19 = vand.u32 4294901760, %v3759_v45  ;;  %vm3965_vm2 = vcmask 1044484   ;;  %vm3968_vm3 = vcmask 1045509  }
 0x72f   : > { %v2518_v29 = vsub.f32 1.0, %v2517_v21  ;;  %v3811_v14 = vand.u32 4294901760, %v4980_v47 }
 0x730   : > { %v3179_v32 = vsub.f32 %v3159_v23, %v3178_v24  ;;  %v4987_v30 = vsub.f32 %v3759_v45, %v4976_v19 }
 0x731   : > { %v2519_v36 = vmul.f32 %v4272_v22, %v2518_v29  ;;  %3084 = vmatmul.f32.vlgmr.msra.gmra.mxu2 %v3030_v60  ;;  %3209 = vmatmul.f32.vlgmr.msrb.gmra.mxu3 %v3178_v24  ;;  %v3805_v29 = vand.u32 4294901760, %v4974_v20 }
 0x732   : > { %v3180_v53 = vand.u32 4294901760, %v3179_v32  ;;  %3279 = vmatpush.msra.mxu2 %v3204_v10  ;;  %3402 = vmatpush.msrb.mxu3 %v4902_v50 }
 0x733   : > { %v2520_v41 = vadd.f32 %v4272_v22, %v2519_v36 }
 0x734   : > { %v3181_v43 = vsub.f32 %v3179_v32, %v3180_v53 }
 0x735   : > { %v2524_v56 = vsel %vm2523_vm4, %v4272_v22, %v2520_v41  ;;  %3132 = vmatmul.f32.vlgmr.msrb.gmra.mxu0 %v3029_v8  ;;  %3257 = vmatmul.f32.vlgmr.msra.gmra.mxu1 %v3180_v53  ;;  %v4982_v22 = vand.u32 4294901760, %v3758_v15  ;;  %vm3971_vm4 = vcmask 1046534  }
 0x736   : > { %v2529_v18 = vsel %vm2526_vm5, %v2528_v42, %v2524_v56  ;;  %v3182_v5 = vand.u32 4294901760, %v3181_v43  ;;  %3326 = vmatpush.msrb.mxu0 %v4902_v50  ;;  %3450 = vmatpush.msra.mxu1 %v4902_v50  ;;  %vm3974_vm5 = vcmask 1047559  }
 0x737   : > { %v2530_v28 = vmul.f32 %v4827_v58, %v2529_v18  ;;  %v3806_v18 = vsub.f32 %v4974_v20, %v3805_v29 }
 0x739   : > { %3183 = vmatmul.f32.vlgmr.msrb.gmra.mxu2 %v3182_v5  ;;  %3303 = vmatmul.f32.vlgmr.msra.gmra.mxu3 %v3178_v24  ;;  %v3308_v10 = vsel %vm2561_vm14, %v2530_v28, 0  ;;  %v3817_v5 = vand.u32 4294901760, %v4987_v30 }
 0x73a   : > { %v3327_v7 = vand.u32 4294901760, %v3308_v10  ;;  %3379 = vmatpush.msrb.mxu2 %v4914_v38  ;;  %3505 = vmatpush.msra.mxu3 %v3504_v57 }
 0x73b   : > { %v3818_v55 = vsub.f32 %v4987_v30, %v3817_v5 }
 0x73c   : > { %v3328_v39 = vsub.f32 %v3308_v10, %v3327_v7 }
 0x73d   : > { %3233 = vmatmul.f32.vlgmr.msra.gmra.mxu0 %v3179_v32  ;;  %3358 = vmatmul.f32.vlgmr.msrb.gmra.mxu1 %v3327_v7  ;;  %v503_v48 = vpop.permute.xlu1 %502  ;;  %v3819_v6 = vand.u32 4294901760, %v3818_v55 }
 0x73e   : > { %505 = vst.msk [vmem:[#allocation3] sm:$0xff] %vm50_vm0, %v503_v48  ;;  %v3329_v31 = vand.u32 4294901760, %v3328_v39  ;;  %3428 = vmatpush.msra.mxu0 %v3353_v37  ;;  %3551 = vmatpush.msrb.mxu1 %v3474_v46 }
 0x740   : > { %v3330_v58 = vsub.f32 %v3328_v39, %v3329_v31 }
 0x741   : > { %3281 = vmatmul.f32.vlgmr.msra.gmra.mxu2 %v3178_v24  ;;  %3406 = vmatmul.f32.vlgmr.msrb.gmra.mxu3 %v3329_v31 }
 0x742   : > { %v3331_v50 = vand.u32 4294901760, %v3330_v58  ;;  %3475 = vmatpush.msra.mxu2 %v3474_v46  ;;  %3599 = vmatpush.msrb.mxu3 %v3474_v46 }
 0x745   : > { %3332 = vmatmul.f32.vlgmr.msrb.gmra.mxu0 %v3331_v50  ;;  %3452 = vmatmul.f32.vlgmr.msra.gmra.mxu1 %v3327_v7 }
 0x746   : > { %3528 = vmatpush.msrb.mxu0 %v3501_v51  ;;  %3654 = vmatpush.msra.mxu1 %v3653_v9 }
 0x749   : > { %3382 = vmatmul.f32.vlgmr.msrb.gmra.mxu2 %v3328_v39  ;;  %v3812_v39 = vsub.f32 %v4980_v47, %v3811_v14 }
 0x74a   : > { %3577 = vmatpush.msrb.mxu2 %v3502_v17  ;;  %v3807_v17 = vand.u32 4294901760, %v3806_v18 }
 0x74d   : > { %3430 = vmatmul.f32.vlgmr.msra.gmra.mxu0 %v3327_v7 }
 0x74e   : > { %3624 = vmatpush.msra.mxu0 %v4947_v54 }
 0x771   : > { %v2437_v59 = vpop.xlane.xlu2 %2436 }
 0x772   : > { %4273 = vrcp.f32 %v2437_v59  ;;  %v2542_v37 = vand.u32 2147483648, %v2437_v59  ;;  %v2540_v60 = vand.u32 2147483647, %v2437_v59  ;;  %vm2536_vm7 = vweird.f32 %v2437_v59 }
 0x774   : > { %v2543_v40 = vor.u32 1.1754944e-38, %v2542_v37  ;;  %vm2541_vm9 = vcmp.eq.f32.partialorder %v2540_v60, 8.507059e+37 }
 0x778   : > { %v4274_v38 = vpop.eup %4273 }
 0x779   : > { %v2532_v49 = vmul.f32 %v4274_v38, %v2437_v59  ;;  %v946_v61 = vpop.permute.xlu2 %945  ;;  %vm2537_vm6 = vweird.f32 %v4274_v38 }
 0x77a   : > { %948 = vst.msk [vmem:[#allocation3 + $0x8] sm:$0xff] %vm50_vm0, %v946_v61  ;;  %vm2538_vm8 = vmor %vm2536_vm7, %vm2537_vm6 }
 0x77b   : > { %v2533_v8 = vsub.f32 1.0, %v2532_v49  ;;  %v3813_v49 = vand.u32 4294901760, %v3812_v39 }
 0x77d   : > { %v2534_v11 = vmul.f32 %v4274_v38, %v2533_v8  ;;  %v2440_v12 = vpop.xlane.xlu0 %2439 }
 0x77e   : > { %4275 = vrcp.f32 %v2440_v12  ;;  %v2555_v53 = vand.u32 2147483647, %v2440_v12  ;;  %v2557_v41 = vand.u32 2147483648, %v2440_v12  ;;  %vm2551_vm11 = vweird.f32 %v2440_v12 }
 0x77f   : > { %v2535_v13 = vadd.f32 %v4274_v38, %v2534_v11  ;;  %v2638_v28 = vpop.f32.mrf.mxu0 }
 0x780   : > { %vm2556_vm13 = vcmp.eq.f32.partialorder %v2555_v53, 8.507059e+37  ;;  %v2558_v31 = vor.u32 1.1754944e-38, %v2557_v41 }
 0x781   : > { %v2539_v16 = vsel %vm2538_vm8, %v4274_v38, %v2535_v13  ;;  %v2662_v42 = vpop.f32.mrf.mxu1 }
 0x782   : > { %v2544_v4 = vsel %vm2541_vm9, %v2543_v40, %v2539_v16 }
 0x783   : > { %v2545_v35 = vmul.f32 %v4855_v52, %v2544_v4  ;;  %v4993_v52 = vsub.f32 %v3758_v15, %v4982_v22  ;;  %v2614_v10 = vpop.f32.mrf.mxu3 }
 0x784   : > { %v4276_v21 = vpop.eup %4275 }
 0x785   : > { %v2547_v23 = vmul.f32 %v4276_v21, %v2440_v12  ;;  %v3457_v24 = vsel %vm2561_vm14, %v2545_v35, 0  ;;  %vm2552_vm10 = vweird.f32 %v4276_v21  ;;  %v3823_v48 = vand.u32 4294901760, %v4993_v52 }
 0x786   : > { %v4989_v32 = vand.u32 4294901760, %v3457_v24  ;;  %vm2553_vm12 = vmor %vm2551_vm11, %vm2552_vm10 }
 0x787   : > { %v2548_v36 = vsub.f32 1.0, %v2547_v23  ;;  %v3824_v61 = vsub.f32 %v4993_v52, %v3823_v48 }
 0x788   : > { %3507 = vmatmul.f32.vlgmr.msra.gmra.mxu3 %v4989_v32  ;;  %v3477_v43 = vsub.f32 %v3457_v24, %v4989_v32 }
 0x789   : > { %v2549_v56 = vmul.f32 %v4276_v21, %v2548_v36  ;;  %3700 = vmatpush.msra.mxu3 %v4947_v54  ;;  %v3825_v44 = vand.u32 4294901760, %v3824_v61 }
 0x78a   : > { %3531 = vmatmul.f32.vlgmr.msrb.gmra.mxu0 %v3477_v43  ;;  %v3478_v7 = vand.u32 4294901760, %v3477_v43  ;;  %v2763_v8 = vpop.f32.mrf.mxu1 }
 0x78b   : > { %v2550_v46 = vadd.f32 %v4276_v21, %v2549_v56  ;;  %3726 = vmatpush.msrb.mxu0 %v3651_v33  ;;  %v2588_v58 = vpop.f32.mrf.mxu2  ;;  %v2708_v11 = vpop.f32.mrf.mxu3 }
 0x78c   : > { %3555 = vmatmul.f32.vlgmr.msrb.gmra.mxu1 %v3478_v7  ;;  %v3479_v50 = vsub.f32 %v3477_v43, %v3478_v7  ;;  %v2615_v51 = vadd.f32 %v2614_v10, %v2588_v58  ;;  %v3756_v58 = vld [vmem:[%s5152_s11 + $0x10] sm:$0xff] }
 0x78d   : > { %v2554_v27 = vsel %vm2553_vm12, %v4276_v21, %v2550_v46  ;;  %3748 = vmatpush.msrb.mxu1 %v4947_v54  ;;  %v3757_v46 = vld [vmem:[%s5152_s11 + $0x18] sm:$0xff] }
 0x78e   : > { %v2559_v57 = vsel %vm2556_vm13, %v2558_v31, %v2554_v27  ;;  %v3480_v59 = vand.u32 4294901760, %v3479_v50  ;;  %v2639_v33 = vadd.f32 %v2638_v28, %v2615_v51  ;;  %v5075_v39 = vand.u32 4294901760, %v3757_v46  ;;  %v3755_v51 = vld [vmem:[%s5152_s11 + $0x8] sm:$0xff] }
 0x78f   : > { %v2560_v38 = vmul.f32 %v4874_v3, %v2559_v57  ;;  %v5085_v27 = vand.u32 4294901760, %v3756_v58 }
 0x790   : > { %3481 = vmatmul.f32.vlgmr.msra.gmra.mxu2 %v3480_v59  ;;  %3601 = vmatmul.f32.vlgmr.msrb.gmra.mxu3 %v4989_v32  ;;  %v2663_v54 = vadd.f32 %v2662_v42, %v2639_v33  ;;  %v4020_v50 = vsub.f32 %v3757_v46, %v5075_v39  ;;  %v5096_v59 = vand.u32 4294901760, %v3755_v51 }
 0x791   : > { %v3606_v1 = vsel %vm2561_vm14, %v2560_v38, 0  ;;  %3677 = vmatpush.msra.mxu2 %v4952_v26  ;;  %3808 = vmatpush.msrb.mxu3 %v3807_v17  ;;  %vm3956_vm14 = vcmask 1041409   ;;  %v3754_v17 = vld [vmem:[%s5152_s11] sm:$0xff]  ;;  %v4026_v57 = vsub.f32 %v3756_v58, %v5085_v27 }
 0x792   : > { %v2737_v37 = vpop.f32.mrf.mxu0  ;;  %v3625_v9 = vand.u32 4294901760, %v3606_v1  ;;  %v4021_v55 = vand.u32 4294901760, %v4020_v50  ;;  %v5098_v38 = vand.u32 4294901760, %v3754_v17 }
 0x793   : > { %v2764_v3 = vadd.f32 %v2763_v8, %v2737_v37  ;;  %3814 = vmatpush.msrb.mxu3 %v3813_v49  ;;  %v2686_v60 = vpop.f32.mrf.mxu2  ;;  %v4027_v61 = vand.u32 4294901760, %v4026_v57 }
 0x794   : > { %3656 = vmatmul.f32.vlgmr.msra.gmra.mxu1 %v3625_v9  ;;  %v3626_v12 = vsub.f32 %v3606_v1, %v3625_v9  ;;  %v2687_v45 = vadd.f32 %v2686_v60, %v2663_v54  ;;  %v2811_v35 = vpop.f32.mrf.mxu3  ;;  %v4022_v49 = vsub.f32 %v4020_v50, %v4021_v55  ;;  %v4032_v1 = vsub.f32 %v3755_v51, %v5096_v59 }
 0x795   : > { %3820 = vmatpush.msrb.mxu3 %v3819_v6  ;;  %3875 = vmatpush.msra.mxu1 %v4963_v34  ;;  %v4038_v54 = vsub.f32 %v3754_v17, %v5098_v38 }
 0x796   : > { %v3627_v13 = vand.u32 4294901760, %v3626_v12  ;;  %v2709_v40 = vadd.f32 %v2708_v11, %v2687_v45 }
 0x797   : > { %3826 = vmatpush.msrb.mxu3 %v3825_v44  ;;  %3877 = vmatpush.msra.mxu1 %v4968_v25  ;;  %v4033_v44 = vand.u32 4294901760, %v4032_v1  ;;  %v4039_v45 = vand.u32 4294901760, %v4038_v54 }
 0x798   : > { %3579 = vmatmul.f32.vlgmr.msrb.gmra.mxu2 %v4989_v32  ;;  %3704 = vmatmul.f32.vlgmr.msra.gmra.mxu3 %v3627_v13  ;;  %v3628_v26 = vsub.f32 %v3626_v12, %v3627_v13 }
 0x799   : > { %3775 = vmatpush.msrb.mxu2 %v4963_v34  ;;  %3879 = vmatpush.msra.mxu1 %v4976_v19 }
 0x79a   : > { %v3629_v15 = vand.u32 4294901760, %v3628_v26  ;;  %3935 = vmatpush.msra.mxu3 %v4963_v34  ;;  %v2835_v34 = vpop.f32.mrf.mxu0 }
 0x79b   : > { %3777 = vmatpush.msrb.mxu2 %v4968_v25  ;;  %3881 = vmatpush.msra.mxu1 %v4982_v22  ;;  %v2787_v16 = vpop.f32.mrf.mxu2 }
 0x79c   : > { %3630 = vmatmul.f32.vlgmr.msra.gmra.mxu0 %v3629_v15  ;;  %3750 = vmatmul.f32.vlgmr.msrb.gmra.mxu1 %v3625_v9  ;;  %v2788_v4 = vadd.f32 %v2787_v16, %v2764_v3  ;;  %v4028_v3 = vsub.f32 %v4026_v57, %v4027_v61  ;;  %v4034_v15 = vsub.f32 %v4032_v1, %v4033_v44 }
 0x79d   : > { %3937 = vmatpush.msra.mxu3 %v4968_v25  ;;  %3779 = vmatpush.msrb.mxu2 %v4976_v19  ;;  %v2857_v25 = vpop.f32.mrf.mxu1 }
 0x79e   : > { %3846 = vmatpush.msra.mxu0 %v4974_v20  ;;  %v2812_v21 = vadd.f32 %v2811_v35, %v2788_v4  ;;  %v4029_v26 = vand.u32 4294901760, %v4028_v3  ;;  %v4040_v35 = vsub.f32 %v4038_v54, %v4039_v45 }
 0x79f   : > { %3939 = vmatpush.msra.mxu3 %v4976_v19  ;;  %3781 = vmatpush.msrb.mxu2 %v4982_v22 }
 0x7a0   : > { %3680 = vmatmul.f32.vlgmr.msra.gmra.mxu2 %v3626_v12  ;;  %3828 = vmatmul.f32.vlgmr.msrb.gmra.mxu3 %v4659_v62  ;;  %v2836_v23 = vadd.f32 %v2835_v34, %v2812_v21  ;;  %v4035_v34 = vand.u32 4294901760, %v4034_v15 }
 0x7a1   : > { %3849 = vmatpush.msra.mxu0 %v4980_v47  ;;  %3941 = vmatpush.msra.mxu3 %v4982_v22 }
 0x7a2   : > { %3904 = vmatpush.msra.mxu2 %v3805_v29  ;;  %v2858_v24 = vadd.f32 %v2857_v25, %v2836_v23  ;;  %v5052_v22 = vpop.f32.mrf.mxu0  ;;  %v4041_v25 = vand.u32 4294901760, %v4040_v35 }
 0x7a3   : > { %3852 = vmatpush.msra.mxu0 %v4987_v30  ;;  %4091 = vmatpush.msrb.mxu3 %v5075_v39 }
 0x7a4   : > { %3728 = vmatmul.f32.vlgmr.msrb.gmra.mxu0 %v3625_v9  ;;  %3885 = vmatmul.f32.vlgmr.msra.gmra.mxu1 %v4667_v0  ;;  %v3955_v19 = vrot.slane %v2858_v24, 7  ;;  %v2912_v0 = vpop.f32.mrf.mxu3  ;;  %v2886_v20 = vpop.f32.mrf.mxu2  ;;  %v4023_v9 = vand.u32 4294901760, %v4022_v49 }
 0x7a5   : > { %3855 = vmatpush.msra.mxu0 %v4993_v52  ;;  %3908 = vmatpush.msra.mxu2 %v3811_v14  ;;  %v5050_v47 = vpop.f32.mrf.mxu1  ;;  %v2913_v6 = vadd.f32 %v2912_v0, %v2886_v20 }
 0x7a6   : > { %v5040_v32 = vsel %vm3956_vm14, %v3955_v19, %v2709_v40  ;;  %4093 = vmatpush.msrb.mxu3 %v5085_v27  ;;  %4024 = vmatpush.msrb.mxu1 %v4023_v9 }
 0x7a7   : > { %3912 = vmatpush.msra.mxu2 %v3817_v5  ;;  %3991 = vmatpush.msrb.mxu0 %v5075_v39  ;;  %v2937_v16 = vadd.f32 %v5052_v22, %v2913_v6 }
 0x7a8   : > { %3787 = vmatmul.f32.vlgmr.msrb.gmra.mxu2 %v4672_v2  ;;  %3943 = vmatmul.f32.vlgmr.msra.gmra.mxu3 %v4659_v62 }
 0x7a9   : > { %3916 = vmatpush.msra.mxu2 %v3823_v48  ;;  %3993 = vmatpush.msrb.mxu0 %v5085_v27  ;;  %v2961_v19 = vadd.f32 %v5050_v47, %v2937_v16 }
 0x7aa   : > { %v3035_v36 = vpop.f32.mrf.mxu0  ;;  %4095 = vmatpush.msrb.mxu3 %v5096_v59  ;;  %4030 = vmatpush.msrb.mxu1 %v4029_v26 }
 0x7ab   : > { %4062 = vmatpush.msrb.mxu2 %v4020_v50  ;;  %3995 = vmatpush.msrb.mxu0 %v5096_v59 }
 0x7ac   : > { %3858 = vmatmul.f32.vlgmr.msra.gmra.mxu0 %v4662_v63  ;;  %v5054_v29 = vpop.f32.mrf.mxu3  ;;  %v5056_v30 = vpop.f32.mrf.mxu2  ;;  %4097 = vmatpush.msrb.mxu3 %v5098_v38 }
 0x7ad   : > { %v3061_v2 = vpop.f32.mrf.mxu1  ;;  %4065 = vmatpush.msrb.mxu2 %v4026_v57  ;;  %3997 = vmatpush.msrb.mxu0 %v5098_v38 }
 0x7ae   : > { %v3062_v37 = vadd.f32 %v3061_v2, %v3035_v36  ;;  %4036 = vmatpush.msrb.mxu1 %v4035_v34  ;;  %v2985_v36 = vadd.f32 %v5056_v30, %v2961_v19 }
 0x7af   : > { %4068 = vmatpush.msrb.mxu2 %v4032_v1  ;;  %4120 = vmatpush.msra.mxu0 %v4021_v55 }
 0x7b0   : > { %3918 = vmatmul.f32.vlgmr.msra.gmra.mxu2 %v4659_v62  ;;  %4042 = vmatpush.msrb.mxu1 %v4041_v25 }
 0x7b1   : > { %4071 = vmatpush.msrb.mxu2 %v4038_v54  ;;  %4124 = vmatpush.msra.mxu0 %v4027_v61 }
 0x7b2   : > { %v5062_v63 = vpop.f32.mrf.mxu0  ;;  %4151 = vmatpush.msra.mxu1 %v5075_v39 }
 0x7b3   : > { %4128 = vmatpush.msra.mxu0 %v4033_v44 }
 0x7b4   : > { %v5058_v14 = vpop.f32.mrf.mxu3  ;;  %v3085_v52 = vpop.f32.mrf.mxu2  ;;  %4153 = vmatpush.msra.mxu1 %v5085_v27 }
 0x7b5   : > { %v5060_v53 = vpop.f32.mrf.mxu1  ;;  %v3086_v13 = vadd.f32 %v3085_v52, %v3062_v37  ;;  %4132 = vmatpush.msra.mxu0 %v4039_v45 }
 0x7b6   : > { %4155 = vmatpush.msra.mxu1 %v5096_v59 }
 0x7b7   : > { %v3110_v24 = vadd.f32 %v5058_v14, %v3086_v13 }
 0x7b8   : > { %4157 = vmatpush.msra.mxu1 %v5098_v38 }
 0x7b9   : > { %v3134_v14 = vadd.f32 %v5062_v63, %v3110_v24 }
 0x7ba   : > { %v3234_v43 = vpop.f32.mrf.mxu0 }
 0x7bb   : > { %v3156_v30 = vadd.f32 %v5060_v53, %v3134_v14 }
 0x7bc   : > { %v3210_v62 = vpop.f32.mrf.mxu3  ;;  %v3184_v41 = vpop.f32.mrf.mxu2 }
 0x7bd   : > { %v5064_v42 = vpop.f32.mrf.mxu1  ;;  %v3211_v11 = vadd.f32 %v3210_v62, %v3184_v41 }
 0x7bf   : > { %v3235_v23 = vadd.f32 %v3234_v43, %v3211_v11 }
 0x7c1   : > { %v3259_v52 = vadd.f32 %v5064_v42, %v3235_v23 }
 0x7c2   : > { %v3333_v28 = vpop.f32.mrf.mxu0 }
 0x7c4   : > { %v5066_v56 = vpop.f32.mrf.mxu3  ;;  %v5068_v18 = vpop.f32.mrf.mxu2 }
 0x7c5   : > { %v3359_v5 = vpop.f32.mrf.mxu1  ;;  %v3283_v41 = vadd.f32 %v5068_v18, %v3259_v52 }
 0x7c6   : > { %v3360_v40 = vadd.f32 %v3359_v5, %v3333_v28  ;;  %v3007_v28 = vadd.f32 %v5054_v29, %v2985_v36 }
 0x7c8   : > { %v3958_v39 = vrot.slane %v3007_v28, 6 }
 0x7ca   : > { %v5079_v31 = vpop.f32.mrf.mxu0 }
 0x7cc   : > { %v5070_v10 = vpop.f32.mrf.mxu3  ;;  %v3383_v7 = vpop.f32.mrf.mxu2 }
 0x7cd   : > { %v5077_v48 = vpop.f32.mrf.mxu1  ;;  %v3384_v21 = vadd.f32 %v3383_v7, %v3360_v40  ;;  %v3305_v7 = vadd.f32 %v5066_v56, %v3283_v41  ;;  %v3960_v56 = vsel %vm3959_vm15, %v3958_v39, %v5040_v32 }
 0x7cf   : > { %v3408_v22 = vadd.f32 %v5070_v10, %v3384_v21  ;;  %v3964_v27 = vrot.slane %v3305_v7, 4 }
 0x7d1   : > { %v3432_v5 = vadd.f32 %v5079_v31, %v3408_v22  ;;  %v3961_v31 = vrot.slane %v3156_v30, 5 }
 0x7d3   : > { %v3454_v63 = vadd.f32 %v5077_v48, %v3432_v5  ;;  %v3963_v59 = vsel %vm3962_vm1, %v3961_v31, %v3960_v56 }
 0x7d4   : > { %v3966_v38 = vsel %vm3965_vm2, %v3964_v27, %v3963_v59 }
 0x7d5   : > { %v3967_v53 = vrot.slane %v3454_v63, 3 }
 0x807   : > { %v3532_v60 = vpop.f32.mrf.mxu0 }
 0x809   : > { %v3556_v12 = vpop.f32.mrf.mxu1 }
 0x80b   : > { %v3508_v33 = vpop.f32.mrf.mxu3 }
 0x811   : > { %v3657_v47 = vpop.f32.mrf.mxu1 }
 0x813   : > { %v3482_v8 = vpop.f32.mrf.mxu2  ;;  %v3602_v20 = vpop.f32.mrf.mxu3 }
 0x814   : > { %v3509_v4 = vadd.f32 %v3508_v33, %v3482_v8  ;;  %v3969_v33 = vsel %vm3968_vm3, %v3967_v53, %v3966_v38 }
 0x816   : > { %v3533_v0 = vadd.f32 %v3532_v60, %v3509_v4 }
 0x818   : > { %v3557_v43 = vadd.f32 %v3556_v12, %v3533_v0 }
 0x819   : > { %v3631_v62 = vpop.f32.mrf.mxu0  ;;  %v3751_v55 = vpop.f32.mrf.mxu1 }
 0x81a   : > { %v3658_v42 = vadd.f32 %v3657_v47, %v3631_v62 }
 0x81b   : > { %v3580_v2 = vpop.f32.mrf.mxu2  ;;  %v3705_v50 = vpop.f32.mrf.mxu3 }
 0x81c   : > { %v3581_v10 = vadd.f32 %v3580_v2, %v3557_v43  ;;  %v4228_v2 = vld [vmem:[%s5154_s13] ss:$0 sm:$0xff] }
 0x81e   : > { %v3603_v58 = vadd.f32 %v3602_v20, %v3581_v10 }
 0x820   : > { %v3970_v57 = vrot.slane %v3603_v58, 2 }
 0x821   : > { %v3729_v51 = vpop.f32.mrf.mxu0  ;;  %v3886_v45 = vpop.f32.mrf.mxu1 }
 0x822   : > { %v3972_v61 = vsel %vm3971_vm4, %v3970_v57, %v3969_v33 }
 0x823   : > { %v3681_v46 = vpop.f32.mrf.mxu2  ;;  %v3829_v44 = vpop.f32.mrf.mxu3 }
 0x824   : > { %v3682_v18 = vadd.f32 %v3681_v46, %v3658_v42 }
 0x826   : > { %v3706_v29 = vadd.f32 %v3705_v50, %v3682_v18 }
 0x828   : > { %v3730_v17 = vadd.f32 %v3729_v51, %v3706_v29 }
 0x829   : > { %v3859_v60 = vpop.f32.mrf.mxu0 }
 0x82a   : > { %v3752_v48 = vadd.f32 %v3751_v55, %v3730_v17 }
 0x82b   : > { %v3788_v3 = vpop.f32.mrf.mxu2  ;;  %v3944_v15 = vpop.f32.mrf.mxu3 }
 0x82c   : > { %v3973_v49 = vrot.slane %v3752_v48, 1  ;;  %v3830_v11 = vadd.f32 %v3829_v44, %v3788_v3 }
 0x82e   : > { %v3975_v1 = vsel %vm3974_vm5, %v3973_v49, %v3972_v61  ;;  %v3860_v12 = vadd.f32 %v3859_v60, %v3830_v11 }
 0x82f   : > { %v3976_v54 = vsel %vm50_vm0, %v3975_v1, 0 }
 0x830   : > { %v3998_v6 = vand.u32 4294901760, %v3976_v54  ;;  %v3887_v40 = vadd.f32 %v3886_v45, %v3860_v12 }
 0x832   : > { %4044 = vmatmul.f32.vlgmr.msrb.gmra.mxu1 %v3998_v6  ;;  %v3999_v8 = vsub.f32 %v3976_v54, %v3998_v6 }
 0x833   : > { %v3919_v13 = vpop.f32.mrf.mxu2 }
 0x834   : > { %4074 = vmatmul.f32.vlgmr.msrb.gmra.mxu2 %v3999_v8  ;;  %v4000_v37 = vand.u32 4294901760, %v3999_v8  ;;  %v3920_v26 = vadd.f32 %v3919_v13, %v3887_v40 }
 0x836   : > { %4101 = vmatmul.f32.vlgmr.msrb.gmra.mxu3 %v4000_v37  ;;  %v4001_v32 = vsub.f32 %v3999_v8, %v4000_v37  ;;  %v3945_v16 = vadd.f32 %v3944_v15, %v3920_v26 }
 0x838   : > { %v4002_v9 = vand.u32 4294901760, %v4001_v32 }
 0x83a   : > { %4003 = vmatmul.f32.vlgmr.msrb.gmra.mxu0 %v4002_v9  ;;  %4159 = vmatmul.f32.vlgmr.msra.gmra.mxu1 %v3998_v6 }
 0x842   : > { %4134 = vmatmul.f32.vlgmr.msra.gmra.mxu0 %v3998_v6 }
 0x8af   : > { %v4045_v4 = vpop.f32.mrf.mxu1 }
 0x8b7   : > { %v4004_v35 = vpop.f32.mrf.mxu0  ;;  %v4075_v23 = vpop.f32.mrf.mxu2 }
 0x8b8   : > { %v4005_v21 = vadd.f32 %v4004_v35, %v3945_v16  ;;  %v4160_v22 = vpop.f32.mrf.mxu1 }
 0x8b9   : > { %v4102_v24 = vpop.f32.mrf.mxu3 }
 0x8ba   : > { %v4046_v34 = vadd.f32 %v4045_v4, %v4005_v21 }
 0x8bc   : > { %v4076_v25 = vadd.f32 %v4075_v23, %v4046_v34 }
 0x8be   : > { %v4103_v19 = vadd.f32 %v4102_v24, %v4076_v25 }
 0x8bf   : > { %v4135_v0 = vpop.f32.mrf.mxu0 }
 0x8c0   : > { %v4136_v20 = vadd.f32 %v4135_v0, %v4103_v19 }
 0x8c2   : > { %v4161_v36 = vadd.f32 %v4160_v22, %v4136_v20 }
 0x8c4   : > { %v4167_v52 = vadd.f32 %v4228_v2, %v4161_v36 }
 0x8c6   : > { %4277 = vtanh.f32 %v4167_v52 }
 0x8c9   :  { %61 = sbr.rel (!%p59_p0) target bundleno = 6 (0x6), region = 87 }
 0x8cc   : > { %v4278_v4 = vpop.eup %4277  }
 0x8cd   : > { %4170 = vst.msk [vmem:[%s4169_s28] sm:$0xff] %vm50_vm0, %v4278_v4 }
 0x8ce   :  { %4183 = dma.vmem_to_hbm [thread:$0]  %s4176_s23, 640, %s4178_s15, [#allocation5], %s4326_s17, %s4326_s17, %s4327_s20  }
 0x8cf   :  { %4312 = dma.done.wait [#allocation5], 640  }
 0x8d0   :  { %4313 = vsyncadd [#allocation5], 4294966656 }
 0x8d1   :  { %4188 = vsyncpa [#allocation5], 1 }

</bundles_post_ra>
